<compile_context>
chip_gen: v6e
topology: v6e:2x2x1
jax: 0.10.0
libtpu: 0.0.40
codegen_flags: <defaults>
</compile_context>

<pallas_src>
import functools

import jax
import jax.numpy as jnp
from jax import lax
from jax.experimental import pallas as pl
from jax.experimental.pallas import tpu as pltpu

LANE = 128        # padded lane width for channels / hidden / logits
N_CLASSES = 10    # fc2 output size in the reference module


# ----------------------------------------------------------------------------
# Fused kernel.  One batch tile (Bt images) per grid step.
# ----------------------------------------------------------------------------
def _cnn4_fused_kernel(p1_ref, w1_ref, b1_ref, w2_ref, b2_ref,
                       wf1_ref, bf1_ref, wf2_ref, bf2_ref,
                       o_ref, scr_ref, *, oh2, ow2, bt):
    f32, bf16 = jnp.float32, jnp.bfloat16
    npos = oh2 * ow2            # conv2 output positions per image

    # ---- conv1 + relu, scattered into the zero-padded bf16 phase scratch --
    # scr_ref[p*2+q, A, B, b, :] == conv2's zero-padded input pixel
    # (2A+p, 2B+q) of image b.  Per-step zeroing is kept deliberately: with
    # "parallel" semantics each TensorCore owns its own scratch.
    scr_ref[...] = jnp.zeros_like(scr_ref)
    b1 = b1_ref[...]
    for r in range(2):
        for s in range(2):
            g = r * 2 + s                     # parity group of conv1 rows
            pq = (1 - r) * 2 + (1 - s)        # phase buffer it feeds
            pg = p1_ref[g * npos:(g + 1) * npos, :, :]        # [npos, bt, d1]
            pg = pg.reshape(npos * bt, pg.shape[-1])
            yg = jnp.dot(pg, w1_ref[...], preferred_element_type=f32)
            yg = jnp.maximum(yg + b1, 0.0).astype(bf16)       # [npos*bt, LANE]
            scr_ref[pq, r:r + oh2, s:s + ow2, :, :] = (
                yg.reshape(oh2, ow2, bt, LANE))

    # ---- conv2 + relu: 16 accumulating tap matmuls, M = npos*bt -----------
    acc2 = jnp.zeros((npos * bt, LANE), f32)
    for kh in range(4):
        dh, p = kh // 2, kh % 2
        for kw in range(4):
            dw, q = kw // 2, kw % 2
            slab = scr_ref[p * 2 + q, dh:dh + oh2, dw:dw + ow2, :, :]
            slab = slab.reshape(npos * bt, LANE)              # bf16, aligned
            acc2 = acc2 + jnp.dot(slab, w2_ref[kh * 4 + kw],
                                  preferred_element_type=f32)
    y2 = jnp.maximum(acc2 + b2_ref[...], 0.0).astype(bf16)    # rows: (pos, b)

    # ---- fc1: position-indexed accumulation (no activation relayout) ------
    acc1 = jnp.zeros((bt, LANE), f32)
    for pos in range(npos):
        acc1 = acc1 + jnp.dot(y2[pos * bt:(pos + 1) * bt, :], wf1_ref[pos],
                              preferred_element_type=f32)
    h = jnp.maximum(acc1 + bf1_ref[...], 0.0).astype(bf16)    # [bt, LANE]

    # ---- fc2 ---------------------------------------------------------------
    out = jnp.dot(h, wf2_ref[...], preferred_element_type=f32) + bf2_ref[...]
    o_ref[...] = out.astype(o_ref.dtype)


# ----------------------------------------------------------------------------
# Batch tiling policy: bt multiple of 8 (batch sits in sublanes), >= 2 grid
# steps (both v7x TensorCores), larger tiles for larger batches so conv2 runs
# with M = npos*bt >= 256 on the 256-wide v6e/v7x MXUs.
# ----------------------------------------------------------------------------
def _batch_tiling(B):
    if B <= 32:
        bt = 8
    elif B <= 128:
        bt = 16
    else:
        bt = 32
    steps = max(2, -(-B // bt))
    return bt, steps * bt


# ----------------------------------------------------------------------------
# One-time parameter packing (call OUTSIDE the jitted forward).
# Activations are quantized to bf16 before every matmul (f32 accumulation).
# ----------------------------------------------------------------------------
def pack_params(params):
    w1, b1, w2, b2, wf1, bf1, wf2, bf2 = params
    c1, cin = int(w1.shape[0]), int(w1.shape[1])
    c2 = int(w2.shape[0])
    lin = int(wf1.shape[0])
    ncls = int(wf2.shape[0])
    sp2 = int(wf1.shape[1]) // c2
    oh2 = ow2 = int(round(sp2 ** 0.5))
    assert oh2 * ow2 == sp2
    assert max(c1, c2, lin, ncls) <= LANE

    f32, bf16 = jnp.float32, jnp.bfloat16
    d1 = 16 * cin

    # conv1: rows ordered (kh, kw, cin); K kept at d1 (no zero pad).
    w1m = jnp.transpose(w1, (2, 3, 1, 0)).reshape(d1, c1)
    w1p = jnp.zeros((d1, LANE), f32).at[:, :c1].set(w1m).astype(bf16)
    b1p = jnp.zeros((1, LANE), f32).at[0, :c1].set(b1)

    # conv2: one [LANE, LANE] block per tap (kh*4+kw), in/out channels padded.
    w2t = jnp.transpose(w2, (2, 3, 1, 0)).reshape(16, c1, c2)
    w2p = jnp.zeros((16, LANE, LANE), f32).at[:, :c1, :c2].set(w2t).astype(bf16)
    b2p = jnp.zeros((1, LANE), f32).at[0, :c2].set(b2)

    # fc1: torch flatten order is (c, oh, ow); repack per spatial position so
    # the kernel accumulates fc_acc += Y2_pos[bt, c] @ wf1p[pos, c, l].
    wf1r = jnp.transpose(wf1.reshape(lin, c2, oh2, ow2), (2, 3, 1, 0))
    wf1p = jnp.zeros((oh2, ow2, LANE, LANE), f32).at[:, :, :c2, :lin].set(wf1r)
    wf1p = wf1p.reshape(oh2 * ow2, LANE, LANE).astype(bf16)
    bf1p = jnp.zeros((1, LANE), f32).at[0, :lin].set(bf1)

    # fc2: [ncls, lin] -> [lin, ncls] padded to [LANE, LANE].
    wf2p = jnp.zeros((LANE, LANE), f32).at[:lin, :ncls].set(wf2.T).astype(bf16)
    bf2p = jnp.zeros((1, LANE), f32).at[0, :ncls].set(bf2)

    return (w1p, b1p, w2p, b2p, wf1p, bf1p, wf2p, bf2p)


# ----------------------------------------------------------------------------
# Forward: light XLA glue (conv1 im2col of the tiny input) + fused kernel.
# ----------------------------------------------------------------------------
def cnn4_forward(x_nchw, packed):
    w1p, b1p, w2p, b2p, wf1p, bf1p, wf2p, bf2p = packed
    npos = int(wf1p.shape[0])
    oh2 = ow2 = int(round(npos ** 0.5))
    d1 = int(w1p.shape[0])
    B, cin, H, W = x_nchw.shape
    oh1, ow1 = H // 2, W // 2
    assert oh1 == 2 * oh2 and ow1 == 2 * ow2, "in_dim must match fc1 sizing"
    assert d1 == 16 * cin

    bt, b_pad = _batch_tiling(B)
    assert bt % 8 == 0 and b_pad % bt == 0

    # NCHW -> NHWC, pad, im2col for conv1 only.  Rows are grouped by conv1
    # output-position parity with the BATCH INNERMOST (in sublanes), so the
    # kernel's conv1 results scatter into the phase scratch with contiguous,
    # sublane-aligned stores and conv2's tap slabs are contiguous reads.
    x = jnp.transpose(x_nchw, (0, 2, 3, 1)).astype(jnp.float32)
    xp = jnp.pad(x, ((0, 0), (1, 1), (1, 1), (0, 0)))
    taps = [xp[:, kh:kh + 2 * oh1:2, kw:kw + 2 * ow1:2, :]
            for kh in range(4) for kw in range(4)]
    p1 = jnp.stack(taps, axis=3).reshape(B, oh1, ow1, d1)
    p1 = p1.reshape(B, oh2, 2, ow2, 2, d1)
    p1 = jnp.transpose(p1, (2, 4, 1, 3, 0, 5))            # (r, s, a, b, B, d1)
    p1 = p1.reshape(4 * npos, B, d1).astype(jnp.bfloat16)
    if b_pad != B:
        p1 = jnp.pad(p1, ((0, 0), (0, b_pad - B), (0, 0)))

    kernel = functools.partial(_cnn4_fused_kernel, oh2=oh2, ow2=ow2, bt=bt)
    c2d = lambda i: (0, 0)
    c3d = lambda i: (0, 0, 0)
    out = pl.pallas_call(
        kernel,
        out_shape=jax.ShapeDtypeStruct((b_pad, LANE), jnp.float32),
        grid=(b_pad // bt,),
        in_specs=[
            pl.BlockSpec((4 * npos, bt, d1), lambda i: (0, i, 0)),   # patches
            pl.BlockSpec((d1, LANE), c2d),                           # w1
            pl.BlockSpec((1, LANE), c2d),                            # b1
            pl.BlockSpec((16, LANE, LANE), c3d),                     # w2
            pl.BlockSpec((1, LANE), c2d),                            # b2
            pl.BlockSpec((npos, LANE, LANE), c3d),                   # fc1 w
            pl.BlockSpec((1, LANE), c2d),                            # fc1 b
            pl.BlockSpec((LANE, LANE), c2d),                         # fc2 w
            pl.BlockSpec((1, LANE), c2d),                            # fc2 b
        ],
        out_specs=pl.BlockSpec((bt, LANE), lambda i: (i, 0)),
        scratch_shapes=[pltpu.VMEM((4, oh2 + 1, ow2 + 1, bt, LANE),
                                   jnp.bfloat16)],
        compiler_params=pltpu.CompilerParams(
            dimension_semantics=("parallel",)),
    )(p1, w1p, b1p, w2p, b2p, wf1p, bf1p, wf2p, bf2p)
    return out[:B, :N_CLASSES]


# ----------------------------------------------------------------------------
# Pure-JAX reference (matches the PyTorch module) for validation.
# ----------------------------------------------------------------------------
def reference_forward(x, params):
    w1, b1, w2, b2, wf1, bf1, wf2, bf2 = params
    dn = ("NCHW", "OIHW", "NCHW")
    y = lax.conv_general_dilated(x, w1, (2, 2), ((1, 1), (1, 1)),
                                 dimension_numbers=dn,
                                 precision=lax.Precision.HIGHEST)
    y = jax.nn.relu(y + b1[None, :, None, None])
    y = lax.conv_general_dilated(y, w2, (2, 2), ((1, 1), (1, 1)),
                                 dimension_numbers=dn,
                                 precision=lax.Precision.HIGHEST)
    y = jax.nn.relu(y + b2[None, :, None, None])
    y = y.reshape(y.shape[0], -1)
    y = jax.nn.relu(y @ wf1.T + bf1)
    return y @ wf2.T + bf2


# ----------------------------------------------------------------------------
# Deterministic synthetic parameters (shapes from the module's __init__).
# ----------------------------------------------------------------------------
def make_params(key, in_ch, in_dim, width, linear_size):
    c1 = 4 * width
    c2 = 8 * width
    fc1_in = c2 * (in_dim // 4) * (in_dim // 4)
    ks = jax.random.split(key, 8)
    scale = 0.1
    w1 = scale * jax.random.normal(ks[0], (c1, in_ch, 4, 4), jnp.float32)
    b1 = scale * jax.random.normal(ks[1], (c1,), jnp.float32)
    w2 = scale * jax.random.normal(ks[2], (c2, c1, 4, 4), jnp.float32)
    b2 = scale * jax.random.normal(ks[3], (c2,), jnp.float32)
    wf1 = scale * jax.random.normal(ks[4], (linear_size, fc1_in), jnp.float32)
    bf1 = scale * jax.random.normal(ks[5], (linear_size,), jnp.float32)
    wf2 = scale * jax.random.normal(ks[6], (10, linear_size), jnp.float32)
    bf2 = scale * jax.random.normal(ks[7], (10,), jnp.float32)
    return (w1, b1, w2, b2, wf1, bf1, wf2, bf2)


if __name__ == "__main__":
    key = jax.random.PRNGKey(0)
    # Primary config (batch=2, in_ch=4, in_dim=16, width=2) plus extra shapes
    # (different oh2/ow2, odd batches, different widths) to exercise the
    # parity scatter/gather index math beyond a single configuration.
    configs = [
        dict(B=2, in_ch=4, in_dim=16, width=2, linear_size=32),
        dict(B=3, in_ch=3, in_dim=8, width=1, linear_size=24),
        dict(B=5, in_ch=2, in_dim=16, width=4, linear_size=64),
    ]
    fwd = jax.jit(cnn4_forward)
    for cfg in configs:
        key, k_x, k_p = jax.random.split(key, 3)
        x = jax.random.normal(
            k_x, (cfg["B"], cfg["in_ch"], cfg["in_dim"], cfg["in_dim"]),
            jnp.float32)
        params = make_params(k_p, cfg["in_ch"], cfg["in_dim"],
                             cfg["width"], cfg["linear_size"])
        packed = pack_params(params)          # one-time packing
        out = jax.block_until_ready(fwd(x, packed))
        assert out.shape == (cfg["B"], 10), out.shape
        assert out.dtype == jnp.float32
        ref = jax.block_until_ready(reference_forward(x, params))
        max_err = float(jnp.max(jnp.abs(out - ref)))
        assert max_err < 0.1, f"{cfg}: mismatch vs reference, max err {max_err}"

    print("KERNEL_OK")
</pallas_src>

<mosaic_0001>
module attributes {stable_mosaic.version = 11 : i64} {
  func.func @_cnn4_fused_kernel(%arg0: i32, %arg1: memref<64x8x64xbf16, #tpu.memory_space<vmem>>, %arg2: memref<64x128xbf16, #tpu.memory_space<vmem>>, %arg3: memref<1x128xf32, #tpu.memory_space<vmem>>, %arg4: memref<16x128x128xbf16, #tpu.memory_space<vmem>>, %arg5: memref<1x128xf32, #tpu.memory_space<vmem>>, %arg6: memref<16x128x128xbf16, #tpu.memory_space<vmem>>, %arg7: memref<1x128xf32, #tpu.memory_space<vmem>>, %arg8: memref<128x128xbf16, #tpu.memory_space<vmem>>, %arg9: memref<1x128xf32, #tpu.memory_space<vmem>>, %arg10: memref<8x128xf32, #tpu.memory_space<vmem>>, %arg11: memref<4x5x5x8x128xbf16, #tpu.memory_space<vmem>>) attributes {dimension_semantics = [#tpu.dimension_semantics<parallel>], iteration_bounds = array<i64: 2>, scalar_prefetch = 0 : i64, scratch_operands = 1 : i64, tpu.core_type = #tpu.core_type<tc>, window_params = [{transform_indices = @transform_0, window_bounds = array<i64: 64, 8, 64>}, {pipeline_mode = #tpu.pipeline_mode<synchronous>, transform_indices = @transform_1, window_bounds = array<i64: 64, 128>}, {pipeline_mode = #tpu.pipeline_mode<synchronous>, transform_indices = @transform_2, window_bounds = array<i64: 1, 128>}, {pipeline_mode = #tpu.pipeline_mode<synchronous>, transform_indices = @transform_3, window_bounds = array<i64: 16, 128, 128>}, {pipeline_mode = #tpu.pipeline_mode<synchronous>, transform_indices = @transform_4, window_bounds = array<i64: 1, 128>}, {pipeline_mode = #tpu.pipeline_mode<synchronous>, transform_indices = @transform_5, window_bounds = array<i64: 16, 128, 128>}, {pipeline_mode = #tpu.pipeline_mode<synchronous>, transform_indices = @transform_6, window_bounds = array<i64: 1, 128>}, {pipeline_mode = #tpu.pipeline_mode<synchronous>, transform_indices = @transform_7, window_bounds = array<i64: 128, 128>}, {pipeline_mode = #tpu.pipeline_mode<synchronous>, transform_indices = @transform_8, window_bounds = array<i64: 1, 128>}, {transform_indices = @transform_9, window_bounds = array<i64: 8, 128>}]} {
    %cst = arith.constant 0.000000e+00 : bf16
    %0 = vector.broadcast %cst : bf16 to vector<4x5x5x8x128xbf16>
    %c0 = arith.constant 0 : index
    %c0_0 = arith.constant 0 : index
    %c0_1 = arith.constant 0 : index
    %c0_2 = arith.constant 0 : index
    %c0_3 = arith.constant 0 : index
    %1 = vector.load %arg11[%c0, %c0_0, %c0_1, %c0_2, %c0_3] : memref<4x5x5x8x128xbf16, #tpu.memory_space<vmem>>, vector<4x5x5x8x128xbf16>
    tpu.vector_store %arg11[%c0, %c0_0, %c0_1, %c0_2, %c0_3], %0 {strides = array<i32>} : memref<4x5x5x8x128xbf16, #tpu.memory_space<vmem>>, vector<4x5x5x8x128xbf16>,
    %c0_4 = arith.constant 0 : index
    %c0_5 = arith.constant 0 : index
    %2 = vector.load %arg3[%c0_4, %c0_5] : memref<1x128xf32, #tpu.memory_space<vmem>>, vector<1x128xf32>
    %c0_6 = arith.constant 0 : index
    %c0_7 = arith.constant 0 : index
    %c0_8 = arith.constant 0 : index
    %3 = vector.load %arg1[%c0_6, %c0_7, %c0_8] : memref<64x8x64xbf16, #tpu.memory_space<vmem>>, vector<16x8x64xbf16>
    %4 = vector.shape_cast %3 : vector<16x8x64xbf16> to vector<128x64xbf16>
    %c0_9 = arith.constant 0 : index
    %c0_10 = arith.constant 0 : index
    %5 = vector.load %arg2[%c0_9, %c0_10] : memref<64x128xbf16, #tpu.memory_space<vmem>>, vector<64x128xbf16>
    %cst_11 = arith.constant dense<0.000000e+00> : vector<128x128xf32>
    %6 = tpu.matmul %4, %5, %cst_11 {dimension_numbers = #tpu.dot_dimension_numbers<[1], [0], [0], [1], [0, 0, 1, 1], [], []>} : vector<128x64xbf16>, vector<64x128xbf16>, vector<128x128xf32> -> vector<128x128xf32>
    %7 = vector.broadcast %2 : vector<1x128xf32> to vector<128x128xf32>
    %8 = arith.addf %6, %7 : vector<128x128xf32>
    %cst_12 = arith.constant 0.000000e+00 : f32
    %9 = vector.broadcast %cst_12 : f32 to vector<128x128xf32>
    %10 = arith.maximumf %8, %9 : vector<128x128xf32>
    %11 = arith.truncf %10 : vector<128x128xf32> to vector<128x128xbf16>
    %12 = vector.shape_cast %11 : vector<128x128xbf16> to vector<4x4x8x128xbf16>
    %c3 = arith.constant 3 : index
    %c0_13 = arith.constant 0 : index
    %c0_14 = arith.constant 0 : index
    %c0_15 = arith.constant 0 : index
    %c0_16 = arith.constant 0 : index
    %13 = vector.load %arg11[%c3, %c0_13, %c0_14, %c0_15, %c0_16] : memref<4x5x5x8x128xbf16, #tpu.memory_space<vmem>>, vector<1x4x4x8x128xbf16>
    %14 = vector.shape_cast %13 : vector<1x4x4x8x128xbf16> to vector<4x4x8x128xbf16>
    %15 = vector.shape_cast %12 : vector<4x4x8x128xbf16> to vector<1x4x4x8x128xbf16>
    tpu.vector_store %arg11[%c3, %c0_13, %c0_14, %c0_15, %c0_16], %15 {strides = array<i32>} : memref<4x5x5x8x128xbf16, #tpu.memory_space<vmem>>, vector<1x4x4x8x128xbf16>,
    %c16 = arith.constant 16 : index
    %c0_17 = arith.constant 0 : index
    %c0_18 = arith.constant 0 : index
    %16 = vector.load %arg1[%c16, %c0_17, %c0_18] : memref<64x8x64xbf16, #tpu.memory_space<vmem>>, vector<16x8x64xbf16>
    %17 = vector.shape_cast %16 : vector<16x8x64xbf16> to vector<128x64xbf16>
    %c0_19 = arith.constant 0 : index
    %c0_20 = arith.constant 0 : index
    %18 = vector.load %arg2[%c0_19, %c0_20] : memref<64x128xbf16, #tpu.memory_space<vmem>>, vector<64x128xbf16>
    %cst_21 = arith.constant dense<0.000000e+00> : vector<128x128xf32>
    %19 = tpu.matmul %17, %18, %cst_21 {dimension_numbers = #tpu.dot_dimension_numbers<[1], [0], [0], [1], [0, 0, 1, 1], [], []>} : vector<128x64xbf16>, vector<64x128xbf16>, vector<128x128xf32> -> vector<128x128xf32>
    %20 = vector.broadcast %2 : vector<1x128xf32> to vector<128x128xf32>
    %21 = arith.addf %19, %20 : vector<128x128xf32>
    %cst_22 = arith.constant 0.000000e+00 : f32
    %22 = vector.broadcast %cst_22 : f32 to vector<128x128xf32>
    %23 = arith.maximumf %21, %22 : vector<128x128xf32>
    %24 = arith.truncf %23 : vector<128x128xf32> to vector<128x128xbf16>
    %25 = vector.shape_cast %24 : vector<128x128xbf16> to vector<4x4x8x128xbf16>
    %c2 = arith.constant 2 : index
    %c0_23 = arith.constant 0 : index
    %c1 = arith.constant 1 : index
    %c0_24 = arith.constant 0 : index
    %c0_25 = arith.constant 0 : index
    %26 = vector.load %arg11[%c2, %c0_23, %c1, %c0_24, %c0_25] : memref<4x5x5x8x128xbf16, #tpu.memory_space<vmem>>, vector<1x4x4x8x128xbf16>
    %27 = vector.shape_cast %26 : vector<1x4x4x8x128xbf16> to vector<4x4x8x128xbf16>
    %28 = vector.shape_cast %25 : vector<4x4x8x128xbf16> to vector<1x4x4x8x128xbf16>
    tpu.vector_store %arg11[%c2, %c0_23, %c1, %c0_24, %c0_25], %28 {strides = array<i32>} : memref<4x5x5x8x128xbf16, #tpu.memory_space<vmem>>, vector<1x4x4x8x128xbf16>,
    %c32 = arith.constant 32 : index
    %c0_26 = arith.constant 0 : index
    %c0_27 = arith.constant 0 : index
    %29 = vector.load %arg1[%c32, %c0_26, %c0_27] : memref<64x8x64xbf16, #tpu.memory_space<vmem>>, vector<16x8x64xbf16>
    %30 = vector.shape_cast %29 : vector<16x8x64xbf16> to vector<128x64xbf16>
    %c0_28 = arith.constant 0 : index
    %c0_29 = arith.constant 0 : index
    %31 = vector.load %arg2[%c0_28, %c0_29] : memref<64x128xbf16, #tpu.memory_space<vmem>>, vector<64x128xbf16>
    %cst_30 = arith.constant dense<0.000000e+00> : vector<128x128xf32>
    %32 = tpu.matmul %30, %31, %cst_30 {dimension_numbers = #tpu.dot_dimension_numbers<[1], [0], [0], [1], [0, 0, 1, 1], [], []>} : vector<128x64xbf16>, vector<64x128xbf16>, vector<128x128xf32> -> vector<128x128xf32>
    %33 = vector.broadcast %2 : vector<1x128xf32> to vector<128x128xf32>
    %34 = arith.addf %32, %33 : vector<128x128xf32>
    %cst_31 = arith.constant 0.000000e+00 : f32
    %35 = vector.broadcast %cst_31 : f32 to vector<128x128xf32>
    %36 = arith.maximumf %34, %35 : vector<128x128xf32>
    %37 = arith.truncf %36 : vector<128x128xf32> to vector<128x128xbf16>
    %38 = vector.shape_cast %37 : vector<128x128xbf16> to vector<4x4x8x128xbf16>
    %c1_32 = arith.constant 1 : index
    %c1_33 = arith.constant 1 : index
    %c0_34 = arith.constant 0 : index
    %c0_35 = arith.constant 0 : index
    %c0_36 = arith.constant 0 : index
    %39 = vector.load %arg11[%c1_32, %c1_33, %c0_34, %c0_35, %c0_36] : memref<4x5x5x8x128xbf16, #tpu.memory_space<vmem>>, vector<1x4x4x8x128xbf16>
    %40 = vector.shape_cast %39 : vector<1x4x4x8x128xbf16> to vector<4x4x8x128xbf16>
    %41 = vector.shape_cast %38 : vector<4x4x8x128xbf16> to vector<1x4x4x8x128xbf16>
    tpu.vector_store %arg11[%c1_32, %c1_33, %c0_34, %c0_35, %c0_36], %41 {strides = array<i32>} : memref<4x5x5x8x128xbf16, #tpu.memory_space<vmem>>, vector<1x4x4x8x128xbf16>,
    %c48 = arith.constant 48 : index
    %c0_37 = arith.constant 0 : index
    %c0_38 = arith.constant 0 : index
    %42 = vector.load %arg1[%c48, %c0_37, %c0_38] : memref<64x8x64xbf16, #tpu.memory_space<vmem>>, vector<16x8x64xbf16>
    %43 = vector.shape_cast %42 : vector<16x8x64xbf16> to vector<128x64xbf16>
    %c0_39 = arith.constant 0 : index
    %c0_40 = arith.constant 0 : index
    %44 = vector.load %arg2[%c0_39, %c0_40] : memref<64x128xbf16, #tpu.memory_space<vmem>>, vector<64x128xbf16>
    %cst_41 = arith.constant dense<0.000000e+00> : vector<128x128xf32>
    %45 = tpu.matmul %43, %44, %cst_41 {dimension_numbers = #tpu.dot_dimension_numbers<[1], [0], [0], [1], [0, 0, 1, 1], [], []>} : vector<128x64xbf16>, vector<64x128xbf16>, vector<128x128xf32> -> vector<128x128xf32>
    %46 = vector.broadcast %2 : vector<1x128xf32> to vector<128x128xf32>
    %47 = arith.addf %45, %46 : vector<128x128xf32>
    %cst_42 = arith.constant 0.000000e+00 : f32
    %48 = vector.broadcast %cst_42 : f32 to vector<128x128xf32>
    %49 = arith.maximumf %47, %48 : vector<128x128xf32>
    %50 = arith.truncf %49 : vector<128x128xf32> to vector<128x128xbf16>
    %51 = vector.shape_cast %50 : vector<128x128xbf16> to vector<4x4x8x128xbf16>
    %c0_43 = arith.constant 0 : index
    %c1_44 = arith.constant 1 : index
    %c1_45 = arith.constant 1 : index
    %c0_46 = arith.constant 0 : index
    %c0_47 = arith.constant 0 : index
    %52 = vector.load %arg11[%c0_43, %c1_44, %c1_45, %c0_46, %c0_47] : memref<4x5x5x8x128xbf16, #tpu.memory_space<vmem>>, vector<1x4x4x8x128xbf16>
    %53 = vector.shape_cast %52 : vector<1x4x4x8x128xbf16> to vector<4x4x8x128xbf16>
    %54 = vector.shape_cast %51 : vector<4x4x8x128xbf16> to vector<1x4x4x8x128xbf16>
    tpu.vector_store %arg11[%c0_43, %c1_44, %c1_45, %c0_46, %c0_47], %54 {strides = array<i32>} : memref<4x5x5x8x128xbf16, #tpu.memory_space<vmem>>, vector<1x4x4x8x128xbf16>,
    %cst_48 = arith.constant 0.000000e+00 : f32
    %55 = vector.broadcast %cst_48 : f32 to vector<128x128xf32>
    %c0_49 = arith.constant 0 : index
    %c0_50 = arith.constant 0 : index
    %c0_51 = arith.constant 0 : index
    %c0_52 = arith.constant 0 : index
    %c0_53 = arith.constant 0 : index
    %56 = vector.load %arg11[%c0_49, %c0_50, %c0_51, %c0_52, %c0_53] : memref<4x5x5x8x128xbf16, #tpu.memory_space<vmem>>, vector<1x4x4x8x128xbf16>
    %57 = vector.shape_cast %56 : vector<1x4x4x8x128xbf16> to vector<4x4x8x128xbf16>
    %58 = vector.shape_cast %57 : vector<4x4x8x128xbf16> to vector<128x128xbf16>
    %c0_54 = arith.constant 0 : index
    %c0_55 = arith.constant 0 : index
    %c0_56 = arith.constant 0 : index
    %59 = vector.load %arg4[%c0_54, %c0_55, %c0_56] : memref<16x128x128xbf16, #tpu.memory_space<vmem>>, vector<1x128x128xbf16>
    %60 = vector.shape_cast %59 : vector<1x128x128xbf16> to vector<128x128xbf16>
    %cst_57 = arith.constant dense<0.000000e+00> : vector<128x128xf32>
    %61 = tpu.matmul %58, %60, %cst_57 {dimension_numbers = #tpu.dot_dimension_numbers<[1], [0], [0], [1], [0, 0, 1, 1], [], []>} : vector<128x128xbf16>, vector<128x128xbf16>, vector<128x128xf32> -> vector<128x128xf32>
    %62 = arith.addf %55, %61 : vector<128x128xf32>
    %c1_58 = arith.constant 1 : index
    %c0_59 = arith.constant 0 : index
    %c0_60 = arith.constant 0 : index
    %c0_61 = arith.constant 0 : index
    %c0_62 = arith.constant 0 : index
    %63 = vector.load %arg11[%c1_58, %c0_59, %c0_60, %c0_61, %c0_62] : memref<4x5x5x8x128xbf16, #tpu.memory_space<vmem>>, vector<1x4x4x8x128xbf16>
    %64 = vector.shape_cast %63 : vector<1x4x4x8x128xbf16> to vector<4x4x8x128xbf16>
    %65 = vector.shape_cast %64 : vector<4x4x8x128xbf16> to vector<128x128xbf16>
    %c1_63 = arith.constant 1 : index
    %c0_64 = arith.constant 0 : index
    %c0_65 = arith.constant 0 : index
    %66 = vector.load %arg4[%c1_63, %c0_64, %c0_65] : memref<16x128x128xbf16, #tpu.memory_space<vmem>>, vector<1x128x128xbf16>
    %67 = vector.shape_cast %66 : vector<1x128x128xbf16> to vector<128x128xbf16>
    %cst_66 = arith.constant dense<0.000000e+00> : vector<128x128xf32>
    %68 = tpu.matmul %65, %67, %cst_66 {dimension_numbers = #tpu.dot_dimension_numbers<[1], [0], [0], [1], [0, 0, 1, 1], [], []>} : vector<128x128xbf16>, vector<128x128xbf16>, vector<128x128xf32> -> vector<128x128xf32>
    %69 = arith.addf %62, %68 : vector<128x128xf32>
    %c0_67 = arith.constant 0 : index
    %c0_68 = arith.constant 0 : index
    %c1_69 = arith.constant 1 : index
    %c0_70 = arith.constant 0 : index
    %c0_71 = arith.constant 0 : index
    %70 = vector.load %arg11[%c0_67, %c0_68, %c1_69, %c0_70, %c0_71] : memref<4x5x5x8x128xbf16, #tpu.memory_space<vmem>>, vector<1x4x4x8x128xbf16>
    %71 = vector.shape_cast %70 : vector<1x4x4x8x128xbf16> to vector<4x4x8x128xbf16>
    %72 = vector.shape_cast %71 : vector<4x4x8x128xbf16> to vector<128x128xbf16>
    %c2_72 = arith.constant 2 : index
    %c0_73 = arith.constant 0 : index
    %c0_74 = arith.constant 0 : index
    %73 = vector.load %arg4[%c2_72, %c0_73, %c0_74] : memref<16x128x128xbf16, #tpu.memory_space<vmem>>, vector<1x128x128xbf16>
    %74 = vector.shape_cast %73 : vector<1x128x128xbf16> to vector<128x128xbf16>
    %cst_75 = arith.constant dense<0.000000e+00> : vector<128x128xf32>
    %75 = tpu.matmul %72, %74, %cst_75 {dimension_numbers = #tpu.dot_dimension_numbers<[1], [0], [0], [1], [0, 0, 1, 1], [], []>} : vector<128x128xbf16>, vector<128x128xbf16>, vector<128x128xf32> -> vector<128x128xf32>
    %76 = arith.addf %69, %75 : vector<128x128xf32>
    %c1_76 = arith.constant 1 : index
    %c0_77 = arith.constant 0 : index
    %c1_78 = arith.constant 1 : index
    %c0_79 = arith.constant 0 : index
    %c0_80 = arith.constant 0 : index
    %77 = vector.load %arg11[%c1_76, %c0_77, %c1_78, %c0_79, %c0_80] : memref<4x5x5x8x128xbf16, #tpu.memory_space<vmem>>, vector<1x4x4x8x128xbf16>
    %78 = vector.shape_cast %77 : vector<1x4x4x8x128xbf16> to vector<4x4x8x128xbf16>
    %79 = vector.shape_cast %78 : vector<4x4x8x128xbf16> to vector<128x128xbf16>
    %c3_81 = arith.constant 3 : index
    %c0_82 = arith.constant 0 : index
    %c0_83 = arith.constant 0 : index
    %80 = vector.load %arg4[%c3_81, %c0_82, %c0_83] : memref<16x128x128xbf16, #tpu.memory_space<vmem>>, vector<1x128x128xbf16>
    %81 = vector.shape_cast %80 : vector<1x128x128xbf16> to vector<128x128xbf16>
    %cst_84 = arith.constant dense<0.000000e+00> : vector<128x128xf32>
    %82 = tpu.matmul %79, %81, %cst_84 {dimension_numbers = #tpu.dot_dimension_numbers<[1], [0], [0], [1], [0, 0, 1, 1], [], []>} : vector<128x128xbf16>, vector<128x128xbf16>, vector<128x128xf32> -> vector<128x128xf32>
    %83 = arith.addf %76, %82 : vector<128x128xf32>
    %c2_85 = arith.constant 2 : index
    %c0_86 = arith.constant 0 : index
    %c0_87 = arith.constant 0 : index
    %c0_88 = arith.constant 0 : index
    %c0_89 = arith.constant 0 : index
    %84 = vector.load %arg11[%c2_85, %c0_86, %c0_87, %c0_88, %c0_89] : memref<4x5x5x8x128xbf16, #tpu.memory_space<vmem>>, vector<1x4x4x8x128xbf16>
    %85 = vector.shape_cast %84 : vector<1x4x4x8x128xbf16> to vector<4x4x8x128xbf16>
    %86 = vector.shape_cast %85 : vector<4x4x8x128xbf16> to vector<128x128xbf16>
    %c4 = arith.constant 4 : index
    %c0_90 = arith.constant 0 : index
    %c0_91 = arith.constant 0 : index
    %87 = vector.load %arg4[%c4, %c0_90, %c0_91] : memref<16x128x128xbf16, #tpu.memory_space<vmem>>, vector<1x128x128xbf16>
    %88 = vector.shape_cast %87 : vector<1x128x128xbf16> to vector<128x128xbf16>
    %cst_92 = arith.constant dense<0.000000e+00> : vector<128x128xf32>
    %89 = tpu.matmul %86, %88, %cst_92 {dimension_numbers = #tpu.dot_dimension_numbers<[1], [0], [0], [1], [0, 0, 1, 1], [], []>} : vector<128x128xbf16>, vector<128x128xbf16>, vector<128x128xf32> -> vector<128x128xf32>
    %90 = arith.addf %83, %89 : vector<128x128xf32>
    %c3_93 = arith.constant 3 : index
    %c0_94 = arith.constant 0 : index
    %c0_95 = arith.constant 0 : index
    %c0_96 = arith.constant 0 : index
    %c0_97 = arith.constant 0 : index
    %91 = vector.load %arg11[%c3_93, %c0_94, %c0_95, %c0_96, %c0_97] : memref<4x5x5x8x128xbf16, #tpu.memory_space<vmem>>, vector<1x4x4x8x128xbf16>
    %92 = vector.shape_cast %91 : vector<1x4x4x8x128xbf16> to vector<4x4x8x128xbf16>
    %93 = vector.shape_cast %92 : vector<4x4x8x128xbf16> to vector<128x128xbf16>
    %c5 = arith.constant 5 : index
    %c0_98 = arith.constant 0 : index
    %c0_99 = arith.constant 0 : index
    %94 = vector.load %arg4[%c5, %c0_98, %c0_99] : memref<16x128x128xbf16, #tpu.memory_space<vmem>>, vector<1x128x128xbf16>
    %95 = vector.shape_cast %94 : vector<1x128x128xbf16> to vector<128x128xbf16>
    %cst_100 = arith.constant dense<0.000000e+00> : vector<128x128xf32>
    %96 = tpu.matmul %93, %95, %cst_100 {dimension_numbers = #tpu.dot_dimension_numbers<[1], [0], [0], [1], [0, 0, 1, 1], [], []>} : vector<128x128xbf16>, vector<128x128xbf16>, vector<128x128xf32> -> vector<128x128xf32>
    %97 = arith.addf %90, %96 : vector<128x128xf32>
    %c2_101 = arith.constant 2 : index
    %c0_102 = arith.constant 0 : index
    %c1_103 = arith.constant 1 : index
    %c0_104 = arith.constant 0 : index
    %c0_105 = arith.constant 0 : index
    %98 = vector.load %arg11[%c2_101, %c0_102, %c1_103, %c0_104, %c0_105] : memref<4x5x5x8x128xbf16, #tpu.memory_space<vmem>>, vector<1x4x4x8x128xbf16>
    %99 = vector.shape_cast %98 : vector<1x4x4x8x128xbf16> to vector<4x4x8x128xbf16>
    %100 = vector.shape_cast %99 : vector<4x4x8x128xbf16> to vector<128x128xbf16>
    %c6 = arith.constant 6 : index
    %c0_106 = arith.constant 0 : index
    %c0_107 = arith.constant 0 : index
    %101 = vector.load %arg4[%c6, %c0_106, %c0_107] : memref<16x128x128xbf16, #tpu.memory_space<vmem>>, vector<1x128x128xbf16>
    %102 = vector.shape_cast %101 : vector<1x128x128xbf16> to vector<128x128xbf16>
    %cst_108 = arith.constant dense<0.000000e+00> : vector<128x128xf32>
    %103 = tpu.matmul %100, %102, %cst_108 {dimension_numbers = #tpu.dot_dimension_numbers<[1], [0], [0], [1], [0, 0, 1, 1], [], []>} : vector<128x128xbf16>, vector<128x128xbf16>, vector<128x128xf32> -> vector<128x128xf32>
    %104 = arith.addf %97, %103 : vector<128x128xf32>
    %c3_109 = arith.constant 3 : index
    %c0_110 = arith.constant 0 : index
    %c1_111 = arith.constant 1 : index
    %c0_112 = arith.constant 0 : index
    %c0_113 = arith.constant 0 : index
    %105 = vector.load %arg11[%c3_109, %c0_110, %c1_111, %c0_112, %c0_113] : memref<4x5x5x8x128xbf16, #tpu.memory_space<vmem>>, vector<1x4x4x8x128xbf16>
    %106 = vector.shape_cast %105 : vector<1x4x4x8x128xbf16> to vector<4x4x8x128xbf16>
    %107 = vector.shape_cast %106 : vector<4x4x8x128xbf16> to vector<128x128xbf16>
    %c7 = arith.constant 7 : index
    %c0_114 = arith.constant 0 : index
    %c0_115 = arith.constant 0 : index
    %108 = vector.load %arg4[%c7, %c0_114, %c0_115] : memref<16x128x128xbf16, #tpu.memory_space<vmem>>, vector<1x128x128xbf16>
    %109 = vector.shape_cast %108 : vector<1x128x128xbf16> to vector<128x128xbf16>
    %cst_116 = arith.constant dense<0.000000e+00> : vector<128x128xf32>
    %110 = tpu.matmul %107, %109, %cst_116 {dimension_numbers = #tpu.dot_dimension_numbers<[1], [0], [0], [1], [0, 0, 1, 1], [], []>} : vector<128x128xbf16>, vector<128x128xbf16>, vector<128x128xf32> -> vector<128x128xf32>
    %111 = arith.addf %104, %110 : vector<128x128xf32>
    %c0_117 = arith.constant 0 : index
    %c1_118 = arith.constant 1 : index
    %c0_119 = arith.constant 0 : index
    %c0_120 = arith.constant 0 : index
    %c0_121 = arith.constant 0 : index
    %112 = vector.load %arg11[%c0_117, %c1_118, %c0_119, %c0_120, %c0_121] : memref<4x5x5x8x128xbf16, #tpu.memory_space<vmem>>, vector<1x4x4x8x128xbf16>
    %113 = vector.shape_cast %112 : vector<1x4x4x8x128xbf16> to vector<4x4x8x128xbf16>
    %114 = vector.shape_cast %113 : vector<4x4x8x128xbf16> to vector<128x128xbf16>
    %c8 = arith.constant 8 : index
    %c0_122 = arith.constant 0 : index
    %c0_123 = arith.constant 0 : index
    %115 = vector.load %arg4[%c8, %c0_122, %c0_123] : memref<16x128x128xbf16, #tpu.memory_space<vmem>>, vector<1x128x128xbf16>
    %116 = vector.shape_cast %115 : vector<1x128x128xbf16> to vector<128x128xbf16>
    %cst_124 = arith.constant dense<0.000000e+00> : vector<128x128xf32>
    %117 = tpu.matmul %114, %116, %cst_124 {dimension_numbers = #tpu.dot_dimension_numbers<[1], [0], [0], [1], [0, 0, 1, 1], [], []>} : vector<128x128xbf16>, vector<128x128xbf16>, vector<128x128xf32> -> vector<128x128xf32>
    %118 = arith.addf %111, %117 : vector<128x128xf32>
    %c1_125 = arith.constant 1 : index
    %c1_126 = arith.constant 1 : index
    %c0_127 = arith.constant 0 : index
    %c0_128 = arith.constant 0 : index
    %c0_129 = arith.constant 0 : index
    %119 = vector.load %arg11[%c1_125, %c1_126, %c0_127, %c0_128, %c0_129] : memref<4x5x5x8x128xbf16, #tpu.memory_space<vmem>>, vector<1x4x4x8x128xbf16>
    %120 = vector.shape_cast %119 : vector<1x4x4x8x128xbf16> to vector<4x4x8x128xbf16>
    %121 = vector.shape_cast %120 : vector<4x4x8x128xbf16> to vector<128x128xbf16>
    %c9 = arith.constant 9 : index
    %c0_130 = arith.constant 0 : index
    %c0_131 = arith.constant 0 : index
    %122 = vector.load %arg4[%c9, %c0_130, %c0_131] : memref<16x128x128xbf16, #tpu.memory_space<vmem>>, vector<1x128x128xbf16>
    %123 = vector.shape_cast %122 : vector<1x128x128xbf16> to vector<128x128xbf16>
    %cst_132 = arith.constant dense<0.000000e+00> : vector<128x128xf32>
    %124 = tpu.matmul %121, %123, %cst_132 {dimension_numbers = #tpu.dot_dimension_numbers<[1], [0], [0], [1], [0, 0, 1, 1], [], []>} : vector<128x128xbf16>, vector<128x128xbf16>, vector<128x128xf32> -> vector<128x128xf32>
    %125 = arith.addf %118, %124 : vector<128x128xf32>
    %c0_133 = arith.constant 0 : index
    %c1_134 = arith.constant 1 : index
    %c1_135 = arith.constant 1 : index
    %c0_136 = arith.constant 0 : index
    %c0_137 = arith.constant 0 : index
    %126 = vector.load %arg11[%c0_133, %c1_134, %c1_135, %c0_136, %c0_137] : memref<4x5x5x8x128xbf16, #tpu.memory_space<vmem>>, vector<1x4x4x8x128xbf16>
    %127 = vector.shape_cast %126 : vector<1x4x4x8x128xbf16> to vector<4x4x8x128xbf16>
    %128 = vector.shape_cast %127 : vector<4x4x8x128xbf16> to vector<128x128xbf16>
    %c10 = arith.constant 10 : index
    %c0_138 = arith.constant 0 : index
    %c0_139 = arith.constant 0 : index
    %129 = vector.load %arg4[%c10, %c0_138, %c0_139] : memref<16x128x128xbf16, #tpu.memory_space<vmem>>, vector<1x128x128xbf16>
    %130 = vector.shape_cast %129 : vector<1x128x128xbf16> to vector<128x128xbf16>
    %cst_140 = arith.constant dense<0.000000e+00> : vector<128x128xf32>
    %131 = tpu.matmul %128, %130, %cst_140 {dimension_numbers = #tpu.dot_dimension_numbers<[1], [0], [0], [1], [0, 0, 1, 1], [], []>} : vector<128x128xbf16>, vector<128x128xbf16>, vector<128x128xf32> -> vector<128x128xf32>
    %132 = arith.addf %125, %131 : vector<128x128xf32>
    %c1_141 = arith.constant 1 : index
    %c1_142 = arith.constant 1 : index
    %c1_143 = arith.constant 1 : index
    %c0_144 = arith.constant 0 : index
    %c0_145 = arith.constant 0 : index
    %133 = vector.load %arg11[%c1_141, %c1_142, %c1_143, %c0_144, %c0_145] : memref<4x5x5x8x128xbf16, #tpu.memory_space<vmem>>, vector<1x4x4x8x128xbf16>
    %134 = vector.shape_cast %133 : vector<1x4x4x8x128xbf16> to vector<4x4x8x128xbf16>
    %135 = vector.shape_cast %134 : vector<4x4x8x128xbf16> to vector<128x128xbf16>
    %c11 = arith.constant 11 : index
    %c0_146 = arith.constant 0 : index
    %c0_147 = arith.constant 0 : index
    %136 = vector.load %arg4[%c11, %c0_146, %c0_147] : memref<16x128x128xbf16, #tpu.memory_space<vmem>>, vector<1x128x128xbf16>
    %137 = vector.shape_cast %136 : vector<1x128x128xbf16> to vector<128x128xbf16>
    %cst_148 = arith.constant dense<0.000000e+00> : vector<128x128xf32>
    %138 = tpu.matmul %135, %137, %cst_148 {dimension_numbers = #tpu.dot_dimension_numbers<[1], [0], [0], [1], [0, 0, 1, 1], [], []>} : vector<128x128xbf16>, vector<128x128xbf16>, vector<128x128xf32> -> vector<128x128xf32>
    %139 = arith.addf %132, %138 : vector<128x128xf32>
    %c2_149 = arith.constant 2 : index
    %c1_150 = arith.constant 1 : index
    %c0_151 = arith.constant 0 : index
    %c0_152 = arith.constant 0 : index
    %c0_153 = arith.constant 0 : index
    %140 = vector.load %arg11[%c2_149, %c1_150, %c0_151, %c0_152, %c0_153] : memref<4x5x5x8x128xbf16, #tpu.memory_space<vmem>>, vector<1x4x4x8x128xbf16>
    %141 = vector.shape_cast %140 : vector<1x4x4x8x128xbf16> to vector<4x4x8x128xbf16>
    %142 = vector.shape_cast %141 : vector<4x4x8x128xbf16> to vector<128x128xbf16>
    %c12 = arith.constant 12 : index
    %c0_154 = arith.constant 0 : index
    %c0_155 = arith.constant 0 : index
    %143 = vector.load %arg4[%c12, %c0_154, %c0_155] : memref<16x128x128xbf16, #tpu.memory_space<vmem>>, vector<1x128x128xbf16>
    %144 = vector.shape_cast %143 : vector<1x128x128xbf16> to vector<128x128xbf16>
    %cst_156 = arith.constant dense<0.000000e+00> : vector<128x128xf32>
    %145 = tpu.matmul %142, %144, %cst_156 {dimension_numbers = #tpu.dot_dimension_numbers<[1], [0], [0], [1], [0, 0, 1, 1], [], []>} : vector<128x128xbf16>, vector<128x128xbf16>, vector<128x128xf32> -> vector<128x128xf32>
    %146 = arith.addf %139, %145 : vector<128x128xf32>
    %c3_157 = arith.constant 3 : index
    %c1_158 = arith.constant 1 : index
    %c0_159 = arith.constant 0 : index
    %c0_160 = arith.constant 0 : index
    %c0_161 = arith.constant 0 : index
    %147 = vector.load %arg11[%c3_157, %c1_158, %c0_159, %c0_160, %c0_161] : memref<4x5x5x8x128xbf16, #tpu.memory_space<vmem>>, vector<1x4x4x8x128xbf16>
    %148 = vector.shape_cast %147 : vector<1x4x4x8x128xbf16> to vector<4x4x8x128xbf16>
    %149 = vector.shape_cast %148 : vector<4x4x8x128xbf16> to vector<128x128xbf16>
    %c13 = arith.constant 13 : index
    %c0_162 = arith.constant 0 : index
    %c0_163 = arith.constant 0 : index
    %150 = vector.load %arg4[%c13, %c0_162, %c0_163] : memref<16x128x128xbf16, #tpu.memory_space<vmem>>, vector<1x128x128xbf16>
    %151 = vector.shape_cast %150 : vector<1x128x128xbf16> to vector<128x128xbf16>
    %cst_164 = arith.constant dense<0.000000e+00> : vector<128x128xf32>
    %152 = tpu.matmul %149, %151, %cst_164 {dimension_numbers = #tpu.dot_dimension_numbers<[1], [0], [0], [1], [0, 0, 1, 1], [], []>} : vector<128x128xbf16>, vector<128x128xbf16>, vector<128x128xf32> -> vector<128x128xf32>
    %153 = arith.addf %146, %152 : vector<128x128xf32>
    %c2_165 = arith.constant 2 : index
    %c1_166 = arith.constant 1 : index
    %c1_167 = arith.constant 1 : index
    %c0_168 = arith.constant 0 : index
    %c0_169 = arith.constant 0 : index
    %154 = vector.load %arg11[%c2_165, %c1_166, %c1_167, %c0_168, %c0_169] : memref<4x5x5x8x128xbf16, #tpu.memory_space<vmem>>, vector<1x4x4x8x128xbf16>
    %155 = vector.shape_cast %154 : vector<1x4x4x8x128xbf16> to vector<4x4x8x128xbf16>
    %156 = vector.shape_cast %155 : vector<4x4x8x128xbf16> to vector<128x128xbf16>
    %c14 = arith.constant 14 : index
    %c0_170 = arith.constant 0 : index
    %c0_171 = arith.constant 0 : index
    %157 = vector.load %arg4[%c14, %c0_170, %c0_171] : memref<16x128x128xbf16, #tpu.memory_space<vmem>>, vector<1x128x128xbf16>
    %158 = vector.shape_cast %157 : vector<1x128x128xbf16> to vector<128x128xbf16>
    %cst_172 = arith.constant dense<0.000000e+00> : vector<128x128xf32>
    %159 = tpu.matmul %156, %158, %cst_172 {dimension_numbers = #tpu.dot_dimension_numbers<[1], [0], [0], [1], [0, 0, 1, 1], [], []>} : vector<128x128xbf16>, vector<128x128xbf16>, vector<128x128xf32> -> vector<128x128xf32>
    %160 = arith.addf %153, %159 : vector<128x128xf32>
    %c3_173 = arith.constant 3 : index
    %c1_174 = arith.constant 1 : index
    %c1_175 = arith.constant 1 : index
    %c0_176 = arith.constant 0 : index
    %c0_177 = arith.constant 0 : index
    %161 = vector.load %arg11[%c3_173, %c1_174, %c1_175, %c0_176, %c0_177] : memref<4x5x5x8x128xbf16, #tpu.memory_space<vmem>>, vector<1x4x4x8x128xbf16>
    %162 = vector.shape_cast %161 : vector<1x4x4x8x128xbf16> to vector<4x4x8x128xbf16>
    %163 = vector.shape_cast %162 : vector<4x4x8x128xbf16> to vector<128x128xbf16>
    %c15 = arith.constant 15 : index
    %c0_178 = arith.constant 0 : index
    %c0_179 = arith.constant 0 : index
    %164 = vector.load %arg4[%c15, %c0_178, %c0_179] : memref<16x128x128xbf16, #tpu.memory_space<vmem>>, vector<1x128x128xbf16>
    %165 = vector.shape_cast %164 : vector<1x128x128xbf16> to vector<128x128xbf16>
    %cst_180 = arith.constant dense<0.000000e+00> : vector<128x128xf32>
    %166 = tpu.matmul %163, %165, %cst_180 {dimension_numbers = #tpu.dot_dimension_numbers<[1], [0], [0], [1], [0, 0, 1, 1], [], []>} : vector<128x128xbf16>, vector<128x128xbf16>, vector<128x128xf32> -> vector<128x128xf32>
    %167 = arith.addf %160, %166 : vector<128x128xf32>
    %c0_181 = arith.constant 0 : index
    %c0_182 = arith.constant 0 : index
    %168 = vector.load %arg5[%c0_181, %c0_182] : memref<1x128xf32, #tpu.memory_space<vmem>>, vector<1x128xf32>
    %169 = vector.broadcast %168 : vector<1x128xf32> to vector<128x128xf32>
    %170 = arith.addf %167, %169 : vector<128x128xf32>
    %cst_183 = arith.constant 0.000000e+00 : f32
    %171 = vector.broadcast %cst_183 : f32 to vector<128x128xf32>
    %172 = arith.maximumf %170, %171 : vector<128x128xf32>
    %173 = arith.truncf %172 : vector<128x128xf32> to vector<128x128xbf16>
    %cst_184 = arith.constant 0.000000e+00 : f32
    %174 = vector.broadcast %cst_184 : f32 to vector<8x128xf32>
    %175 = vector.extract_strided_slice %173 {offsets = [0, 0], sizes = [8, 128], strides = [1, 1]} : vector<128x128xbf16> to vector<8x128xbf16>
    %c0_185 = arith.constant 0 : index
    %c0_186 = arith.constant 0 : index
    %c0_187 = arith.constant 0 : index
    %176 = vector.load %arg6[%c0_185, %c0_186, %c0_187] : memref<16x128x128xbf16, #tpu.memory_space<vmem>>, vector<1x128x128xbf16>
    %177 = vector.shape_cast %176 : vector<1x128x128xbf16> to vector<128x128xbf16>
    %cst_188 = arith.constant dense<0.000000e+00> : vector<8x128xf32>
    %178 = tpu.matmul %175, %177, %cst_188 {dimension_numbers = #tpu.dot_dimension_numbers<[1], [0], [0], [1], [0, 0, 1, 1], [], []>} : vector<8x128xbf16>, vector<128x128xbf16>, vector<8x128xf32> -> vector<8x128xf32>
    %179 = arith.addf %174, %178 : vector<8x128xf32>
    %180 = vector.extract_strided_slice %173 {offsets = [8, 0], sizes = [8, 128], strides = [1, 1]} : vector<128x128xbf16> to vector<8x128xbf16>
    %c1_189 = arith.constant 1 : index
    %c0_190 = arith.constant 0 : index
    %c0_191 = arith.constant 0 : index
    %181 = vector.load %arg6[%c1_189, %c0_190, %c0_191] : memref<16x128x128xbf16, #tpu.memory_space<vmem>>, vector<1x128x128xbf16>
    %182 = vector.shape_cast %181 : vector<1x128x128xbf16> to vector<128x128xbf16>
    %cst_192 = arith.constant dense<0.000000e+00> : vector<8x128xf32>
    %183 = tpu.matmul %180, %182, %cst_192 {dimension_numbers = #tpu.dot_dimension_numbers<[1], [0], [0], [1], [0, 0, 1, 1], [], []>} : vector<8x128xbf16>, vector<128x128xbf16>, vector<8x128xf32> -> vector<8x128xf32>
    %184 = arith.addf %179, %183 : vector<8x128xf32>
    %185 = vector.extract_strided_slice %173 {offsets = [16, 0], sizes = [8, 128], strides = [1, 1]} : vector<128x128xbf16> to vector<8x128xbf16>
    %c2_193 = arith.constant 2 : index
    %c0_194 = arith.constant 0 : index
    %c0_195 = arith.constant 0 : index
    %186 = vector.load %arg6[%c2_193, %c0_194, %c0_195] : memref<16x128x128xbf16, #tpu.memory_space<vmem>>, vector<1x128x128xbf16>
    %187 = vector.shape_cast %186 : vector<1x128x128xbf16> to vector<128x128xbf16>
    %cst_196 = arith.constant dense<0.000000e+00> : vector<8x128xf32>
    %188 = tpu.matmul %185, %187, %cst_196 {dimension_numbers = #tpu.dot_dimension_numbers<[1], [0], [0], [1], [0, 0, 1, 1], [], []>} : vector<8x128xbf16>, vector<128x128xbf16>, vector<8x128xf32> -> vector<8x128xf32>
    %189 = arith.addf %184, %188 : vector<8x128xf32>
    %190 = vector.extract_strided_slice %173 {offsets = [24, 0], sizes = [8, 128], strides = [1, 1]} : vector<128x128xbf16> to vector<8x128xbf16>
    %c3_197 = arith.constant 3 : index
    %c0_198 = arith.constant 0 : index
    %c0_199 = arith.constant 0 : index
    %191 = vector.load %arg6[%c3_197, %c0_198, %c0_199] : memref<16x128x128xbf16, #tpu.memory_space<vmem>>, vector<1x128x128xbf16>
    %192 = vector.shape_cast %191 : vector<1x128x128xbf16> to vector<128x128xbf16>
    %cst_200 = arith.constant dense<0.000000e+00> : vector<8x128xf32>
    %193 = tpu.matmul %190, %192, %cst_200 {dimension_numbers = #tpu.dot_dimension_numbers<[1], [0], [0], [1], [0, 0, 1, 1], [], []>} : vector<8x128xbf16>, vector<128x128xbf16>, vector<8x128xf32> -> vector<8x128xf32>
    %194 = arith.addf %189, %193 : vector<8x128xf32>
    %195 = vector.extract_strided_slice %173 {offsets = [32, 0], sizes = [8, 128], strides = [1, 1]} : vector<128x128xbf16> to vector<8x128xbf16>
    %c4_201 = arith.constant 4 : index
    %c0_202 = arith.constant 0 : index
    %c0_203 = arith.constant 0 : index
    %196 = vector.load %arg6[%c4_201, %c0_202, %c0_203] : memref<16x128x128xbf16, #tpu.memory_space<vmem>>, vector<1x128x128xbf16>
    %197 = vector.shape_cast %196 : vector<1x128x128xbf16> to vector<128x128xbf16>
    %cst_204 = arith.constant dense<0.000000e+00> : vector<8x128xf32>
    %198 = tpu.matmul %195, %197, %cst_204 {dimension_numbers = #tpu.dot_dimension_numbers<[1], [0], [0], [1], [0, 0, 1, 1], [], []>} : vector<8x128xbf16>, vector<128x128xbf16>, vector<8x128xf32> -> vector<8x128xf32>
    %199 = arith.addf %194, %198 : vector<8x128xf32>
    %200 = vector.extract_strided_slice %173 {offsets = [40, 0], sizes = [8, 128], strides = [1, 1]} : vector<128x128xbf16> to vector<8x128xbf16>
    %c5_205 = arith.constant 5 : index
    %c0_206 = arith.constant 0 : index
    %c0_207 = arith.constant 0 : index
    %201 = vector.load %arg6[%c5_205, %c0_206, %c0_207] : memref<16x128x128xbf16, #tpu.memory_space<vmem>>, vector<1x128x128xbf16>
    %202 = vector.shape_cast %201 : vector<1x128x128xbf16> to vector<128x128xbf16>
    %cst_208 = arith.constant dense<0.000000e+00> : vector<8x128xf32>
    %203 = tpu.matmul %200, %202, %cst_208 {dimension_numbers = #tpu.dot_dimension_numbers<[1], [0], [0], [1], [0, 0, 1, 1], [], []>} : vector<8x128xbf16>, vector<128x128xbf16>, vector<8x128xf32> -> vector<8x128xf32>
    %204 = arith.addf %199, %203 : vector<8x128xf32>
    %205 = vector.extract_strided_slice %173 {offsets = [48, 0], sizes = [8, 128], strides = [1, 1]} : vector<128x128xbf16> to vector<8x128xbf16>
    %c6_209 = arith.constant 6 : index
    %c0_210 = arith.constant 0 : index
    %c0_211 = arith.constant 0 : index
    %206 = vector.load %arg6[%c6_209, %c0_210, %c0_211] : memref<16x128x128xbf16, #tpu.memory_space<vmem>>, vector<1x128x128xbf16>
    %207 = vector.shape_cast %206 : vector<1x128x128xbf16> to vector<128x128xbf16>
    %cst_212 = arith.constant dense<0.000000e+00> : vector<8x128xf32>
    %208 = tpu.matmul %205, %207, %cst_212 {dimension_numbers = #tpu.dot_dimension_numbers<[1], [0], [0], [1], [0, 0, 1, 1], [], []>} : vector<8x128xbf16>, vector<128x128xbf16>, vector<8x128xf32> -> vector<8x128xf32>
    %209 = arith.addf %204, %208 : vector<8x128xf32>
    %210 = vector.extract_strided_slice %173 {offsets = [56, 0], sizes = [8, 128], strides = [1, 1]} : vector<128x128xbf16> to vector<8x128xbf16>
    %c7_213 = arith.constant 7 : index
    %c0_214 = arith.constant 0 : index
    %c0_215 = arith.constant 0 : index
    %211 = vector.load %arg6[%c7_213, %c0_214, %c0_215] : memref<16x128x128xbf16, #tpu.memory_space<vmem>>, vector<1x128x128xbf16>
    %212 = vector.shape_cast %211 : vector<1x128x128xbf16> to vector<128x128xbf16>
    %cst_216 = arith.constant dense<0.000000e+00> : vector<8x128xf32>
    %213 = tpu.matmul %210, %212, %cst_216 {dimension_numbers = #tpu.dot_dimension_numbers<[1], [0], [0], [1], [0, 0, 1, 1], [], []>} : vector<8x128xbf16>, vector<128x128xbf16>, vector<8x128xf32> -> vector<8x128xf32>
    %214 = arith.addf %209, %213 : vector<8x128xf32>
    %215 = vector.extract_strided_slice %173 {offsets = [64, 0], sizes = [8, 128], strides = [1, 1]} : vector<128x128xbf16> to vector<8x128xbf16>
    %c8_217 = arith.constant 8 : index
    %c0_218 = arith.constant 0 : index
    %c0_219 = arith.constant 0 : index
    %216 = vector.load %arg6[%c8_217, %c0_218, %c0_219] : memref<16x128x128xbf16, #tpu.memory_space<vmem>>, vector<1x128x128xbf16>
    %217 = vector.shape_cast %216 : vector<1x128x128xbf16> to vector<128x128xbf16>
    %cst_220 = arith.constant dense<0.000000e+00> : vector<8x128xf32>
    %218 = tpu.matmul %215, %217, %cst_220 {dimension_numbers = #tpu.dot_dimension_numbers<[1], [0], [0], [1], [0, 0, 1, 1], [], []>} : vector<8x128xbf16>, vector<128x128xbf16>, vector<8x128xf32> -> vector<8x128xf32>
    %219 = arith.addf %214, %218 : vector<8x128xf32>
    %220 = vector.extract_strided_slice %173 {offsets = [72, 0], sizes = [8, 128], strides = [1, 1]} : vector<128x128xbf16> to vector<8x128xbf16>
    %c9_221 = arith.constant 9 : index
    %c0_222 = arith.constant 0 : index
    %c0_223 = arith.constant 0 : index
    %221 = vector.load %arg6[%c9_221, %c0_222, %c0_223] : memref<16x128x128xbf16, #tpu.memory_space<vmem>>, vector<1x128x128xbf16>
    %222 = vector.shape_cast %221 : vector<1x128x128xbf16> to vector<128x128xbf16>
    %cst_224 = arith.constant dense<0.000000e+00> : vector<8x128xf32>
    %223 = tpu.matmul %220, %222, %cst_224 {dimension_numbers = #tpu.dot_dimension_numbers<[1], [0], [0], [1], [0, 0, 1, 1], [], []>} : vector<8x128xbf16>, vector<128x128xbf16>, vector<8x128xf32> -> vector<8x128xf32>
    %224 = arith.addf %219, %223 : vector<8x128xf32>
    %225 = vector.extract_strided_slice %173 {offsets = [80, 0], sizes = [8, 128], strides = [1, 1]} : vector<128x128xbf16> to vector<8x128xbf16>
    %c10_225 = arith.constant 10 : index
    %c0_226 = arith.constant 0 : index
    %c0_227 = arith.constant 0 : index
    %226 = vector.load %arg6[%c10_225, %c0_226, %c0_227] : memref<16x128x128xbf16, #tpu.memory_space<vmem>>, vector<1x128x128xbf16>
    %227 = vector.shape_cast %226 : vector<1x128x128xbf16> to vector<128x128xbf16>
    %cst_228 = arith.constant dense<0.000000e+00> : vector<8x128xf32>
    %228 = tpu.matmul %225, %227, %cst_228 {dimension_numbers = #tpu.dot_dimension_numbers<[1], [0], [0], [1], [0, 0, 1, 1], [], []>} : vector<8x128xbf16>, vector<128x128xbf16>, vector<8x128xf32> -> vector<8x128xf32>
    %229 = arith.addf %224, %228 : vector<8x128xf32>
    %230 = vector.extract_strided_slice %173 {offsets = [88, 0], sizes = [8, 128], strides = [1, 1]} : vector<128x128xbf16> to vector<8x128xbf16>
    %c11_229 = arith.constant 11 : index
    %c0_230 = arith.constant 0 : index
    %c0_231 = arith.constant 0 : index
    %231 = vector.load %arg6[%c11_229, %c0_230, %c0_231] : memref<16x128x128xbf16, #tpu.memory_space<vmem>>, vector<1x128x128xbf16>
    %232 = vector.shape_cast %231 : vector<1x128x128xbf16> to vector<128x128xbf16>
    %cst_232 = arith.constant dense<0.000000e+00> : vector<8x128xf32>
    %233 = tpu.matmul %230, %232, %cst_232 {dimension_numbers = #tpu.dot_dimension_numbers<[1], [0], [0], [1], [0, 0, 1, 1], [], []>} : vector<8x128xbf16>, vector<128x128xbf16>, vector<8x128xf32> -> vector<8x128xf32>
    %234 = arith.addf %229, %233 : vector<8x128xf32>
    %235 = vector.extract_strided_slice %173 {offsets = [96, 0], sizes = [8, 128], strides = [1, 1]} : vector<128x128xbf16> to vector<8x128xbf16>
    %c12_233 = arith.constant 12 : index
    %c0_234 = arith.constant 0 : index
    %c0_235 = arith.constant 0 : index
    %236 = vector.load %arg6[%c12_233, %c0_234, %c0_235] : memref<16x128x128xbf16, #tpu.memory_space<vmem>>, vector<1x128x128xbf16>
    %237 = vector.shape_cast %236 : vector<1x128x128xbf16> to vector<128x128xbf16>
    %cst_236 = arith.constant dense<0.000000e+00> : vector<8x128xf32>
    %238 = tpu.matmul %235, %237, %cst_236 {dimension_numbers = #tpu.dot_dimension_numbers<[1], [0], [0], [1], [0, 0, 1, 1], [], []>} : vector<8x128xbf16>, vector<128x128xbf16>, vector<8x128xf32> -> vector<8x128xf32>
    %239 = arith.addf %234, %238 : vector<8x128xf32>
    %240 = vector.extract_strided_slice %173 {offsets = [104, 0], sizes = [8, 128], strides = [1, 1]} : vector<128x128xbf16> to vector<8x128xbf16>
    %c13_237 = arith.constant 13 : index
    %c0_238 = arith.constant 0 : index
    %c0_239 = arith.constant 0 : index
    %241 = vector.load %arg6[%c13_237, %c0_238, %c0_239] : memref<16x128x128xbf16, #tpu.memory_space<vmem>>, vector<1x128x128xbf16>
    %242 = vector.shape_cast %241 : vector<1x128x128xbf16> to vector<128x128xbf16>
    %cst_240 = arith.constant dense<0.000000e+00> : vector<8x128xf32>
    %243 = tpu.matmul %240, %242, %cst_240 {dimension_numbers = #tpu.dot_dimension_numbers<[1], [0], [0], [1], [0, 0, 1, 1], [], []>} : vector<8x128xbf16>, vector<128x128xbf16>, vector<8x128xf32> -> vector<8x128xf32>
    %244 = arith.addf %239, %243 : vector<8x128xf32>
    %245 = vector.extract_strided_slice %173 {offsets = [112, 0], sizes = [8, 128], strides = [1, 1]} : vector<128x128xbf16> to vector<8x128xbf16>
    %c14_241 = arith.constant 14 : index
    %c0_242 = arith.constant 0 : index
    %c0_243 = arith.constant 0 : index
    %246 = vector.load %arg6[%c14_241, %c0_242, %c0_243] : memref<16x128x128xbf16, #tpu.memory_space<vmem>>, vector<1x128x128xbf16>
    %247 = vector.shape_cast %246 : vector<1x128x128xbf16> to vector<128x128xbf16>
    %cst_244 = arith.constant dense<0.000000e+00> : vector<8x128xf32>
    %248 = tpu.matmul %245, %247, %cst_244 {dimension_numbers = #tpu.dot_dimension_numbers<[1], [0], [0], [1], [0, 0, 1, 1], [], []>} : vector<8x128xbf16>, vector<128x128xbf16>, vector<8x128xf32> -> vector<8x128xf32>
    %249 = arith.addf %244, %248 : vector<8x128xf32>
    %250 = vector.extract_strided_slice %173 {offsets = [120, 0], sizes = [8, 128], strides = [1, 1]} : vector<128x128xbf16> to vector<8x128xbf16>
    %c15_245 = arith.constant 15 : index
    %c0_246 = arith.constant 0 : index
    %c0_247 = arith.constant 0 : index
    %251 = vector.load %arg6[%c15_245, %c0_246, %c0_247] : memref<16x128x128xbf16, #tpu.memory_space<vmem>>, vector<1x128x128xbf16>
    %252 = vector.shape_cast %251 : vector<1x128x128xbf16> to vector<128x128xbf16>
    %cst_248 = arith.constant dense<0.000000e+00> : vector<8x128xf32>
    %253 = tpu.matmul %250, %252, %cst_248 {dimension_numbers = #tpu.dot_dimension_numbers<[1], [0], [0], [1], [0, 0, 1, 1], [], []>} : vector<8x128xbf16>, vector<128x128xbf16>, vector<8x128xf32> -> vector<8x128xf32>
    %254 = arith.addf %249, %253 : vector<8x128xf32>
    %c0_249 = arith.constant 0 : index
    %c0_250 = arith.constant 0 : index
    %255 = vector.load %arg7[%c0_249, %c0_250] : memref<1x128xf32, #tpu.memory_space<vmem>>, vector<1x128xf32>
    %256 = vector.broadcast %255 : vector<1x128xf32> to vector<8x128xf32>
    %257 = arith.addf %254, %256 : vector<8x128xf32>
    %cst_251 = arith.constant 0.000000e+00 : f32
    %258 = vector.broadcast %cst_251 : f32 to vector<8x128xf32>
    %259 = arith.maximumf %257, %258 : vector<8x128xf32>
    %260 = arith.truncf %259 : vector<8x128xf32> to vector<8x128xbf16>
    %c0_252 = arith.constant 0 : index
    %c0_253 = arith.constant 0 : index
    %261 = vector.load %arg8[%c0_252, %c0_253] : memref<128x128xbf16, #tpu.memory_space<vmem>>, vector<128x128xbf16>
    %cst_254 = arith.constant dense<0.000000e+00> : vector<8x128xf32>
    %262 = tpu.matmul %260, %261, %cst_254 {dimension_numbers = #tpu.dot_dimension_numbers<[1], [0], [0], [1], [0, 0, 1, 1], [], []>} : vector<8x128xbf16>, vector<128x128xbf16>, vector<8x128xf32> -> vector<8x128xf32>
    %c0_255 = arith.constant 0 : index
    %c0_256 = arith.constant 0 : index
    %263 = vector.load %arg9[%c0_255, %c0_256] : memref<1x128xf32, #tpu.memory_space<vmem>>, vector<1x128xf32>
    %264 = vector.broadcast %263 : vector<1x128xf32> to vector<8x128xf32>
    %265 = arith.addf %262, %264 : vector<8x128xf32>
    %c0_257 = arith.constant 0 : index
    %c0_258 = arith.constant 0 : index
    %266 = vector.load %arg10[%c0_257, %c0_258] : memref<8x128xf32, #tpu.memory_space<vmem>>, vector<8x128xf32>
    tpu.vector_store %arg10[%c0_257, %c0_258], %265 {strides = array<i32>} : memref<8x128xf32, #tpu.memory_space<vmem>>, vector<8x128xf32>,
    return
  }
  func.func @transform_0(%arg0: i32) -> (i32, i32, i32) {
    %c0_i32 = arith.constant 0 : i32
    %c0_i32_0 = arith.constant 0 : i32
    %c0_i32_1 = arith.constant 0 : i32
    return %c0_i32, %arg0, %c0_i32_0 : i32, i32, i32
  }
  func.func @transform_1(%arg0: i32) -> (i32, i32) {
    %c0_i32 = arith.constant 0 : i32
    %c0_i32_0 = arith.constant 0 : i32
    %c0_i32_1 = arith.constant 0 : i32
    return %c0_i32, %c0_i32_0 : i32, i32
  }
  func.func @transform_2(%arg0: i32) -> (i32, i32) {
    %c0_i32 = arith.constant 0 : i32
    %c0_i32_0 = arith.constant 0 : i32
    %c0_i32_1 = arith.constant 0 : i32
    return %c0_i32, %c0_i32_0 : i32, i32
  }
  func.func @transform_3(%arg0: i32) -> (i32, i32, i32) {
    %c0_i32 = arith.constant 0 : i32
    %c0_i32_0 = arith.constant 0 : i32
    %c0_i32_1 = arith.constant 0 : i32
    %c0_i32_2 = arith.constant 0 : i32
    return %c0_i32, %c0_i32_0, %c0_i32_1 : i32, i32, i32
  }
  func.func @transform_4(%arg0: i32) -> (i32, i32) {
    %c0_i32 = arith.constant 0 : i32
    %c0_i32_0 = arith.constant 0 : i32
    %c0_i32_1 = arith.constant 0 : i32
    return %c0_i32, %c0_i32_0 : i32, i32
  }
  func.func @transform_5(%arg0: i32) -> (i32, i32, i32) {
    %c0_i32 = arith.constant 0 : i32
    %c0_i32_0 = arith.constant 0 : i32
    %c0_i32_1 = arith.constant 0 : i32
    %c0_i32_2 = arith.constant 0 : i32
    return %c0_i32, %c0_i32_0, %c0_i32_1 : i32, i32, i32
  }
  func.func @transform_6(%arg0: i32) -> (i32, i32) {
    %c0_i32 = arith.constant 0 : i32
    %c0_i32_0 = arith.constant 0 : i32
    %c0_i32_1 = arith.constant 0 : i32
    return %c0_i32, %c0_i32_0 : i32, i32
  }
  func.func @transform_7(%arg0: i32) -> (i32, i32) {
    %c0_i32 = arith.constant 0 : i32
    %c0_i32_0 = arith.constant 0 : i32
    %c0_i32_1 = arith.constant 0 : i32
    return %c0_i32, %c0_i32_0 : i32, i32
  }
  func.func @transform_8(%arg0: i32) -> (i32, i32) {
    %c0_i32 = arith.constant 0 : i32
    %c0_i32_0 = arith.constant 0 : i32
    %c0_i32_1 = arith.constant 0 : i32
    return %c0_i32, %c0_i32_0 : i32, i32
  }
  func.func @transform_9(%arg0: i32) -> (i32, i32) {
    %c0_i32 = arith.constant 0 : i32
    %c0_i32_0 = arith.constant 0 : i32
    return %arg0, %c0_i32 : i32, i32
  }
}

</mosaic_0001>

<bundles_post_ra>
// kernel: cnn4_forward.1
= control target key start
LH: loop header
LB: loop body
LE: loop exit
PB: predicated region body
PF: predicated region fallthrough
CT: control target
= control target key end

     0   :  { %s11001_s30 = smov 0   ;;  %s11003_s10 = smov 0   ;;  %s12803_s0 = inlined_call_operand.vmem [shape: bf16[64,16,64], index: 0, kind: input, shape index: {}]   ;;  %s12804_s1 = inlined_call_operand.vmem [shape: bf16[64,128], index: 1, kind: input, shape index: {}]   ;;  %s12805_s2 = inlined_call_operand.vmem [shape: f32[1,128], index: 2, kind: input, shape index: {}]   ;;  %s12806_s3 = inlined_call_operand.vmem [shape: bf16[16,128,128], index: 3, kind: input, shape index: {}]   ;;  %s12807_s4 = inlined_call_operand.vmem [shape: f32[1,128], index: 4, kind: input, shape index: {}]   ;;  %s12808_s5 = inlined_call_operand.vmem [shape: bf16[16,128,128], index: 5, kind: input, shape index: {}]   ;;  %s12809_s6 = inlined_call_operand.vmem [shape: f32[1,128], index: 6, kind: input, shape index: {}]   ;;  %s12810_s7 = inlined_call_operand.vmem [shape: bf16[128,128], index: 7, kind: input, shape index: {}]   ;;  %s12811_s8 = inlined_call_operand.vmem [shape: f32[1,128], index: 8, kind: input, shape index: {}]   ;;  %s12812_s9 = inlined_call_operand.vmem [shape: f32[16,128], index: 9, kind: output, shape index: {}]  }
   0x1   :  { %s11005_s11 = smov 0  }
   0x2 LB: > { %s7757_s12 = sadd.s32 4294967295, %s10946_s11   ;;  %s11018_s13 = sadd.s32 1, %s10946_s11   ;;  %s10946_s11 = sphi %s11005_s11, %s12815_s11   ;;  %s10942_s10 = sphi %s11003_s10, %s12814_s10   ;;  %s10938_s30 = sphi %s11001_s30, %s12813_s30  }
   0x3   : > { %s23_s14 = ssub.s32 %s10946_s11, %s11018_s13  ;;  %s26_s15 = sadd.s32 1, %s10942_s10 }
   0x4   : > { %p24_p0 = scmp.eq.s32.totalorder %s23_s14, 0  ;;  %p33_p1 = scmp.ne.s32.totalorder %s10942_s10, %s10938_s30 }
   0x5   : > { %p34_p2 = scmp.eq.s32.totalorder %s10946_s11, 0  ;;  %p7760_p4 = scmp.ge.s32.totalorder %s10946_s11, 2 }
   0x6   : > { %s11027_s16 = scalar_select %p24_p0, %s10942_s10, %s26_s15  }
   0x7   : > { %p35_p3 = por %p34_p2, %p33_p1  ;;  %277 = sbr.rel (%p7760_p4) target bundleno = 58 (0x3a), region = 48 }
   0xc   : > { %280 = sbr.rel (!%p35_p3) target bundleno = 58 (0x3a), region = 52  ;;  %s282_s17 = sand.u32 (%p35_p3), 1, %s10942_s10  }
   0xd   : > { %s7762_s18 = sshll.u32 (%p35_p3), %s10946_s11, 2  ;;  %s7761_s19 = sshll.u32 (%p35_p3), %s282_s17, 8 }
   0xe   : > { %s11035_s22 = scalar_lea.vmem (%p35_p3), %s12803_s0, %s7762_s18  ;;  %s11039_s23 = scalar_lea.vmem (%p35_p3), [#allocation3], %s7761_s19 }
   0xf   : > { %v303_v0 = vld [vmem:[%s11035_s22] sm:$0xf] (%p35_p3)  ;;  %v305_v1 = vld [vmem:[%s11035_s22 + $0x8] sm:$0xf] (%p35_p3)  ;;  %v307_v2 = vld [vmem:[%s11035_s22 + $0x10] sm:$0xf] (%p35_p3) }
  0x10   : > { %304 = vst [vmem:[%s11039_s23] sm:$0xf] (%p35_p3), %v303_v0  ;;  %306 = vst [vmem:[%s11039_s23 + $0x4] sm:$0xf] (%p35_p3), %v305_v1  ;;  %v309_v3 = vld [vmem:[%s11035_s22 + $0x18] sm:$0xf] (%p35_p3) }
  0x11   : > { %v311_v4 = vld [vmem:[%s11035_s22 + $0x20] sm:$0xf]  ;;  %308 = vst [vmem:[%s11039_s23 + $0x8] sm:$0xf] %v307_v2  ;;  %310 = vst [vmem:[%s11039_s23 + $0xc] sm:$0xf] %v309_v3 }
  0x12   : > { %312 = vst [vmem:[%s11039_s23 + $0x10] sm:$0xf] %v311_v4  ;;  %v313_v5 = vld [vmem:[%s11035_s22 + $0x28] sm:$0xf]  ;;  %v315_v6 = vld [vmem:[%s11035_s22 + $0x30] sm:$0xf] }
  0x13   : > { %v317_v7 = vld [vmem:[%s11035_s22 + $0x38] sm:$0xf]  ;;  %314 = vst [vmem:[%s11039_s23 + $0x14] sm:$0xf] %v313_v5  ;;  %316 = vst [vmem:[%s11039_s23 + $0x18] sm:$0xf] %v315_v6 }
  0x14   : > { %318 = vst [vmem:[%s11039_s23 + $0x1c] sm:$0xf] %v317_v7  ;;  %v319_v8 = vld [vmem:[%s11035_s22 + $0x40] sm:$0xf]  ;;  %v321_v9 = vld [vmem:[%s11035_s22 + $0x48] sm:$0xf] }
  0x15   : > { %v323_v10 = vld [vmem:[%s11035_s22 + $0x50] sm:$0xf]  ;;  %320 = vst [vmem:[%s11039_s23 + $0x20] sm:$0xf] %v319_v8  ;;  %322 = vst [vmem:[%s11039_s23 + $0x24] sm:$0xf] %v321_v9 }
  0x16   : > { %324 = vst [vmem:[%s11039_s23 + $0x28] sm:$0xf] %v323_v10  ;;  %v325_v11 = vld [vmem:[%s11035_s22 + $0x58] sm:$0xf]  ;;  %v327_v12 = vld [vmem:[%s11035_s22 + $0x60] sm:$0xf] }
  0x17   : > { %v329_v13 = vld [vmem:[%s11035_s22 + $0x68] sm:$0xf]  ;;  %326 = vst [vmem:[%s11039_s23 + $0x2c] sm:$0xf] %v325_v11  ;;  %328 = vst [vmem:[%s11039_s23 + $0x30] sm:$0xf] %v327_v12 }
  0x18   : > { %330 = vst [vmem:[%s11039_s23 + $0x34] sm:$0xf] %v329_v13  ;;  %v331_v14 = vld [vmem:[%s11035_s22 + $0x70] sm:$0xf]  ;;  %v333_v15 = vld [vmem:[%s11035_s22 + $0x78] sm:$0xf] }
  0x19   : > { %v335_v16 = vld [vmem:[%s11035_s22 + $0x80] sm:$0xf]  ;;  %332 = vst [vmem:[%s11039_s23 + $0x38] sm:$0xf] %v331_v14  ;;  %334 = vst [vmem:[%s11039_s23 + $0x3c] sm:$0xf] %v333_v15 }
  0x1a   : > { %336 = vst [vmem:[%s11039_s23 + $0x40] sm:$0xf] %v335_v16  ;;  %v337_v17 = vld [vmem:[%s11035_s22 + $0x88] sm:$0xf]  ;;  %v339_v18 = vld [vmem:[%s11035_s22 + $0x90] sm:$0xf] }
  0x1b   : > { %v341_v19 = vld [vmem:[%s11035_s22 + $0x98] sm:$0xf]  ;;  %338 = vst [vmem:[%s11039_s23 + $0x44] sm:$0xf] %v337_v17  ;;  %340 = vst [vmem:[%s11039_s23 + $0x48] sm:$0xf] %v339_v18 }
  0x1c   : > { %342 = vst [vmem:[%s11039_s23 + $0x4c] sm:$0xf] %v341_v19  ;;  %v343_v20 = vld [vmem:[%s11035_s22 + $0xa0] sm:$0xf]  ;;  %v345_v21 = vld [vmem:[%s11035_s22 + $0xa8] sm:$0xf] }
  0x1d   : > { %v347_v22 = vld [vmem:[%s11035_s22 + $0xb0] sm:$0xf]  ;;  %344 = vst [vmem:[%s11039_s23 + $0x50] sm:$0xf] %v343_v20  ;;  %346 = vst [vmem:[%s11039_s23 + $0x54] sm:$0xf] %v345_v21 }
  0x1e   : > { %348 = vst [vmem:[%s11039_s23 + $0x58] sm:$0xf] %v347_v22  ;;  %v349_v23 = vld [vmem:[%s11035_s22 + $0xb8] sm:$0xf]  ;;  %v351_v24 = vld [vmem:[%s11035_s22 + $0xc0] sm:$0xf] }
  0x1f   : > { %v353_v25 = vld [vmem:[%s11035_s22 + $0xc8] sm:$0xf]  ;;  %350 = vst [vmem:[%s11039_s23 + $0x5c] sm:$0xf] %v349_v23  ;;  %352 = vst [vmem:[%s11039_s23 + $0x60] sm:$0xf] %v351_v24 }
  0x20   : > { %354 = vst [vmem:[%s11039_s23 + $0x64] sm:$0xf] %v353_v25  ;;  %v355_v26 = vld [vmem:[%s11035_s22 + $0xd0] sm:$0xf]  ;;  %v357_v27 = vld [vmem:[%s11035_s22 + $0xd8] sm:$0xf] }
  0x21   : > { %v359_v28 = vld [vmem:[%s11035_s22 + $0xe0] sm:$0xf]  ;;  %356 = vst [vmem:[%s11039_s23 + $0x68] sm:$0xf] %v355_v26  ;;  %358 = vst [vmem:[%s11039_s23 + $0x6c] sm:$0xf] %v357_v27 }
  0x22   : > { %360 = vst [vmem:[%s11039_s23 + $0x70] sm:$0xf] %v359_v28  ;;  %v361_v29 = vld [vmem:[%s11035_s22 + $0xe8] sm:$0xf]  ;;  %v363_v30 = vld [vmem:[%s11035_s22 + $0xf0] sm:$0xf] }
  0x23   : > { %v365_v31 = vld [vmem:[%s11035_s22 + $0xf8] sm:$0xf]  ;;  %362 = vst [vmem:[%s11039_s23 + $0x74] sm:$0xf] %v361_v29  ;;  %364 = vst [vmem:[%s11039_s23 + $0x78] sm:$0xf] %v363_v30 }
  0x24   : > { %366 = vst [vmem:[%s11039_s23 + $0x7c] sm:$0xf] %v365_v31  ;;  %v367_v32 = vld [vmem:[%s11035_s22 + $0x100] sm:$0xf]  ;;  %v369_v33 = vld [vmem:[%s11035_s22 + $0x108] sm:$0xf] }
  0x25   : > { %v371_v34 = vld [vmem:[%s11035_s22 + $0x110] sm:$0xf]  ;;  %368 = vst [vmem:[%s11039_s23 + $0x80] sm:$0xf] %v367_v32  ;;  %370 = vst [vmem:[%s11039_s23 + $0x84] sm:$0xf] %v369_v33 }
  0x26   : > { %372 = vst [vmem:[%s11039_s23 + $0x88] sm:$0xf] %v371_v34  ;;  %v373_v35 = vld [vmem:[%s11035_s22 + $0x118] sm:$0xf]  ;;  %v375_v36 = vld [vmem:[%s11035_s22 + $0x120] sm:$0xf] }
  0x27   : > { %v377_v37 = vld [vmem:[%s11035_s22 + $0x128] sm:$0xf]  ;;  %374 = vst [vmem:[%s11039_s23 + $0x8c] sm:$0xf] %v373_v35  ;;  %376 = vst [vmem:[%s11039_s23 + $0x90] sm:$0xf] %v375_v36 }
  0x28   : > { %378 = vst [vmem:[%s11039_s23 + $0x94] sm:$0xf] %v377_v37  ;;  %v379_v38 = vld [vmem:[%s11035_s22 + $0x130] sm:$0xf]  ;;  %v381_v39 = vld [vmem:[%s11035_s22 + $0x138] sm:$0xf] }
  0x29   : > { %v383_v40 = vld [vmem:[%s11035_s22 + $0x140] sm:$0xf]  ;;  %380 = vst [vmem:[%s11039_s23 + $0x98] sm:$0xf] %v379_v38  ;;  %382 = vst [vmem:[%s11039_s23 + $0x9c] sm:$0xf] %v381_v39 }
  0x2a   : > { %384 = vst [vmem:[%s11039_s23 + $0xa0] sm:$0xf] %v383_v40  ;;  %v385_v41 = vld [vmem:[%s11035_s22 + $0x148] sm:$0xf]  ;;  %v387_v42 = vld [vmem:[%s11035_s22 + $0x150] sm:$0xf] }
  0x2b   : > { %v389_v43 = vld [vmem:[%s11035_s22 + $0x158] sm:$0xf]  ;;  %386 = vst [vmem:[%s11039_s23 + $0xa4] sm:$0xf] %v385_v41  ;;  %388 = vst [vmem:[%s11039_s23 + $0xa8] sm:$0xf] %v387_v42 }
  0x2c   : > { %390 = vst [vmem:[%s11039_s23 + $0xac] sm:$0xf] %v389_v43  ;;  %v391_v44 = vld [vmem:[%s11035_s22 + $0x160] sm:$0xf]  ;;  %v393_v45 = vld [vmem:[%s11035_s22 + $0x168] sm:$0xf] }
  0x2d   : > { %v395_v46 = vld [vmem:[%s11035_s22 + $0x170] sm:$0xf]  ;;  %392 = vst [vmem:[%s11039_s23 + $0xb0] sm:$0xf] %v391_v44  ;;  %394 = vst [vmem:[%s11039_s23 + $0xb4] sm:$0xf] %v393_v45 }
  0x2e   : > { %396 = vst [vmem:[%s11039_s23 + $0xb8] sm:$0xf] %v395_v46  ;;  %v397_v47 = vld [vmem:[%s11035_s22 + $0x178] sm:$0xf]  ;;  %v399_v48 = vld [vmem:[%s11035_s22 + $0x180] sm:$0xf] }
  0x2f   : > { %v401_v49 = vld [vmem:[%s11035_s22 + $0x188] sm:$0xf]  ;;  %398 = vst [vmem:[%s11039_s23 + $0xbc] sm:$0xf] %v397_v47  ;;  %400 = vst [vmem:[%s11039_s23 + $0xc0] sm:$0xf] %v399_v48 }
  0x30   : > { %402 = vst [vmem:[%s11039_s23 + $0xc4] sm:$0xf] %v401_v49  ;;  %v403_v50 = vld [vmem:[%s11035_s22 + $0x190] sm:$0xf]  ;;  %v405_v51 = vld [vmem:[%s11035_s22 + $0x198] sm:$0xf] }
  0x31   : > { %v407_v52 = vld [vmem:[%s11035_s22 + $0x1a0] sm:$0xf]  ;;  %404 = vst [vmem:[%s11039_s23 + $0xc8] sm:$0xf] %v403_v50  ;;  %406 = vst [vmem:[%s11039_s23 + $0xcc] sm:$0xf] %v405_v51 }
  0x32   : > { %408 = vst [vmem:[%s11039_s23 + $0xd0] sm:$0xf] %v407_v52  ;;  %v409_v53 = vld [vmem:[%s11035_s22 + $0x1a8] sm:$0xf]  ;;  %v411_v54 = vld [vmem:[%s11035_s22 + $0x1b0] sm:$0xf] }
  0x33   : > { %v413_v55 = vld [vmem:[%s11035_s22 + $0x1b8] sm:$0xf]  ;;  %410 = vst [vmem:[%s11039_s23 + $0xd4] sm:$0xf] %v409_v53  ;;  %412 = vst [vmem:[%s11039_s23 + $0xd8] sm:$0xf] %v411_v54 }
  0x34   : > { %414 = vst [vmem:[%s11039_s23 + $0xdc] sm:$0xf] %v413_v55  ;;  %v415_v56 = vld [vmem:[%s11035_s22 + $0x1c0] sm:$0xf]  ;;  %v417_v57 = vld [vmem:[%s11035_s22 + $0x1c8] sm:$0xf] }
  0x35   : > { %v419_v58 = vld [vmem:[%s11035_s22 + $0x1d0] sm:$0xf]  ;;  %416 = vst [vmem:[%s11039_s23 + $0xe0] sm:$0xf] %v415_v56  ;;  %418 = vst [vmem:[%s11039_s23 + $0xe4] sm:$0xf] %v417_v57 }
  0x36   : > { %420 = vst [vmem:[%s11039_s23 + $0xe8] sm:$0xf] %v419_v58  ;;  %v421_v59 = vld [vmem:[%s11035_s22 + $0x1d8] sm:$0xf]  ;;  %v423_v60 = vld [vmem:[%s11035_s22 + $0x1e0] sm:$0xf] }
  0x37   : > { %v425_v61 = vld [vmem:[%s11035_s22 + $0x1e8] sm:$0xf]  ;;  %422 = vst [vmem:[%s11039_s23 + $0xec] sm:$0xf] %v421_v59  ;;  %424 = vst [vmem:[%s11039_s23 + $0xf0] sm:$0xf] %v423_v60 }
  0x38   : > { %426 = vst [vmem:[%s11039_s23 + $0xf4] sm:$0xf] %v425_v61  ;;  %v427_v62 = vld [vmem:[%s11035_s22 + $0x1f0] sm:$0xf]  ;;  %v429_v63 = vld [vmem:[%s11035_s22 + $0x1f8] sm:$0xf] }
  0x39   : > { %428 = vst [vmem:[%s11039_s23 + $0xf8] sm:$0xf] %v427_v62  ;;  %430 = vst [vmem:[%s11039_s23 + $0xfc] sm:$0xf] %v429_v63 }
  0x3a PF: > { %p7763_p5 = scmp.ge.s32.totalorder %s10946_s11, 1  ;;  %p581_p6 = scmp.lt.s32.totalorder %s10946_s11, 3 }
  0x3c   : > { %p582_p7 = pnand %p7763_p5, %p581_p6 }
  0x3d   : > { %s588_s26 = sand.u32 (!%p582_p7), 1, %s10938_s30   ;;  %p622_p8 = scmp.lt.s32.totalorder (!%p582_p7), %s7757_s12, 1 }
  0x3e   : > { %585 = sbr.rel (%p582_p7) target bundleno = 1403 (0x57b), region = 93  ;;  %s7764_s29 = sshll.u32 (!%p582_p7), %s588_s26, 8 }
  0x3f   : > { %s11179_s17 = scalar_lea.vmem (!%p582_p7), [#allocation3], %s7764_s29 }
  0x43   : > { %v10482_v0 = vld [vmem:[%s12804_s1 + $0x18] sm:$0xff]   ;;  %v10483_v1 = vld [vmem:[%s12804_s1 + $0x10] sm:$0xff]   ;;  %v10484_v2 = vld [vmem:[%s12804_s1 + $0x8] sm:$0xff]   ;;  %vm822_vm0 = vcmask 523264   ;;  %v10948_v50 = vmov 0   ;;  %vm10950_vm1 = vmmov 0  }
  0x44   : > { %9499 = vmatprep.subr.bf16.mxu0 %v10482_v0  ;;  %10447 = vmatprep.subr.bf16.mxu1 %v10482_v0  ;;  %v10486_v3 = vld [vmem:[%s11179_s17] sm:$0xff]   ;;  %v10485_v5 = vld [vmem:[%s12804_s1] sm:$0xff]   ;;  %v10490_v6 = vld [vmem:[%s12804_s1 + $0x18] sm:$0xff]   ;;  %702 = vst [vmem:[#allocation2 + $0x12c] sm:$0xf] %v10948_v50  ;;  %s12817_s12 = smov (!%p622_p8, %s7757_s12), 1 }
  0x45   : > { %9500 = vmatpush3.bf16.msra.mxu0 %v10482_v0  ;;  %10451 = vmatpush3.bf16.msra.mxu1 %v10482_v0  ;;  %v10487_v4 = vld [vmem:[%s11179_s17 + $0x20] sm:$0xff]   ;;  %v10488_v7 = vld [vmem:[%s11179_s17 + $0x8] sm:$0xff]   ;;  %v10494_v12 = vld [vmem:[%s11179_s17 + $0x10] sm:$0xff]   ;;  %627 = vst [vmem:[#allocation2] sm:$0xf] %v10948_v50  ;;  %s7765_s22 = sshll.u32 %s12817_s12, 3 }
  0x46   : > { %9501 = vmatprep.subr.bf16.mxu0 %v10483_v1  ;;  %10448 = vmatprep.subr.bf16.mxu1 %v10483_v1  ;;  %v10491_v8 = vld [vmem:[%s12804_s1 + $0x18] sm:$0xff]   ;;  %v10492_v10 = vld [vmem:[%s12804_s1 + $0x10] sm:$0xff]   ;;  %v10495_v13 = vld [vmem:[%s11179_s17 + $0x30] sm:$0xff]   ;;  %628 = vst [vmem:[#allocation2 + $0x4] sm:$0xf] %v10948_v50  ;;  %s625_s27 = scalar_lea.vmem %s12812_s9, %s7765_s22 }
  0x47   : > { %9507 = vmatprep.mubr.msk.bf16.mxu0 %vm822_vm0, %v10486_v3  ;;  %9515 = vmatprep.mubr.msk.bf16.mxu1 %vm822_vm0, %v10487_v4  ;;  %v10489_v9 = vld [vmem:[%s11179_s17 + $0x28] sm:$0xff]   ;;  %v10493_v11 = vld [vmem:[%s12804_s1 + $0x10] sm:$0xff]   ;;  %v10498_v14 = vld [vmem:[%s12804_s1 + $0x8] sm:$0xff]   ;;  %629 = vst [vmem:[#allocation2 + $0x8] sm:$0xf] %v10948_v50 }
  0x48   : > { %v10496_v15 = vld [vmem:[%s11179_s17 + $0x18] sm:$0xff]   ;;  %v10500_v18 = vld [vmem:[%s12804_s1] sm:$0xff]   ;;  %v10502_v20 = vld [vmem:[%s11179_s17 + $0x40] sm:$0xff]   ;;  %630 = vst [vmem:[#allocation2 + $0xc] sm:$0xf] %v10948_v50 }
  0x49   : > { %9502 = vmatpush3.bf16.msra.mxu0 %v10483_v1  ;;  %10452 = vmatpush3.bf16.msra.mxu1 %v10483_v1  ;;  %v10499_v16 = vld [vmem:[%s12804_s1 + $0x8] sm:$0xff]   ;;  %v10501_v19 = vld [vmem:[%s12804_s1] sm:$0xff]   ;;  %v10503_v21 = vld [vmem:[%s11179_s17 + $0x80] sm:$0xff]   ;;  %631 = vst [vmem:[#allocation2 + $0x10] sm:$0xf] %v10948_v50 }
  0x4a   : > { %9503 = vmatprep.subr.bf16.mxu0 %v10484_v2  ;;  %10449 = vmatprep.subr.bf16.mxu1 %v10484_v2  ;;  %v10497_v17 = vld [vmem:[%s11179_s17 + $0x38] sm:$0xff]   ;;  %v10504_v22 = vld [vmem:[%s11179_s17 + $0x48] sm:$0xff]   ;;  %v10507_v25 = vld [vmem:[%s11179_s17 + $0x50] sm:$0xff]   ;;  %632 = vst [vmem:[#allocation2 + $0x14] sm:$0xf] %v10948_v50 }
  0x4b   : > { %v10506_v23 = vld [vmem:[%s12804_s1 + $0x18] sm:$0xff]   ;;  %v10508_v26 = vld [vmem:[%s11179_s17 + $0x90] sm:$0xff]   ;;  %v10511_v27 = vld [vmem:[%s12804_s1 + $0x10] sm:$0xff]   ;;  %633 = vst [vmem:[#allocation2 + $0x18] sm:$0xf] %v10948_v50 }
  0x4c   : > { %v10505_v24 = vld [vmem:[%s11179_s17 + $0x88] sm:$0xff]   ;;  %v10509_v28 = vld [vmem:[%s11179_s17 + $0x58] sm:$0xff]   ;;  %v10512_v31 = vld [vmem:[%s11179_s17 + $0x60] sm:$0xff]   ;;  %634 = vst [vmem:[#allocation2 + $0x1c] sm:$0xf] %v10948_v50 }
  0x4d   : > { %9504 = vmatpush3.bf16.msra.mxu0 %v10484_v2  ;;  %10453 = vmatpush3.bf16.msra.mxu1 %v10484_v2  ;;  %v10516_v29 = vld [vmem:[%s12804_s1 + $0x8] sm:$0xff]   ;;  %v10513_v32 = vld [vmem:[%s11179_s17 + $0xa0] sm:$0xff]   ;;  %v10519_v33 = vld [vmem:[%s12804_s1] sm:$0xff]   ;;  %635 = vst [vmem:[#allocation2 + $0x20] sm:$0xf] %v10948_v50 }
  0x4e   : > { %9505 = vmatprep.subr.bf16.mxu0 %v10485_v5  ;;  %10450 = vmatprep.subr.bf16.mxu1 %v10485_v5  ;;  %v10510_v30 = vld [vmem:[%s11179_s17 + $0x98] sm:$0xff]   ;;  %v10514_v34 = vld [vmem:[%s11179_s17 + $0x68] sm:$0xff]   ;;  %v10517_v36 = vld [vmem:[%s11179_s17 + $0x70] sm:$0xff]   ;;  %636 = vst [vmem:[#allocation2 + $0x24] sm:$0xf] %v10948_v50 }
  0x4f   : > { %v10515_v35 = vld [vmem:[%s11179_s17 + $0xa8] sm:$0xff]   ;;  %v10528_v37 = vld [vmem:[%s11179_s17 + $0xb0] sm:$0xff]   ;;  %v10518_v38 = vld [vmem:[%s11179_s17 + $0x78] sm:$0xff]   ;;  %637 = vst [vmem:[#allocation2 + $0x28] sm:$0xf] %v10948_v50 }
  0x50   : > { %v10529_v39 = vld [vmem:[%s11179_s17 + $0xb8] sm:$0xff]   ;;  %v10520_v40 = vld [vmem:[%s11179_s17 + $0xc0] sm:$0xff]   ;;  %v10521_v41 = vld [vmem:[%s11179_s17 + $0xc8] sm:$0xff]   ;;  %638 = vst [vmem:[#allocation2 + $0x2c] sm:$0xf] %v10948_v50 }
  0x51   : > { %9506 = vmatpush3.bf16.msra.mxu0 %v10485_v5  ;;  %10454 = vmatpush3.bf16.msra.mxu1 %v10485_v5  ;;  %v10522_v42 = vld [vmem:[%s11179_s17 + $0xd0] sm:$0xff]   ;;  %v10523_v43 = vld [vmem:[%s11179_s17 + $0xd8] sm:$0xff]   ;;  %v10524_v44 = vld [vmem:[%s11179_s17 + $0xe0] sm:$0xff]   ;;  %639 = vst [vmem:[#allocation2 + $0x30] sm:$0xf] %v10948_v50 }
  0x52   : > { %9523 = vmatprep.subr.bf16.mxu1 %v10490_v6  ;;  %9547 = vmatprep.subr.bf16.mxu0 %v10491_v8  ;;  %v10525_v45 = vld [vmem:[%s11179_s17 + $0xe8] sm:$0xff]   ;;  %v10526_v46 = vld [vmem:[%s11179_s17 + $0xf0] sm:$0xff]   ;;  %v11288_v48 = vld [vmem:[%s12806_s3 + $0x70] sm:$0xff]   ;;  %640 = vst [vmem:[#allocation2 + $0x34] sm:$0xf] %v10948_v50 }
  0x53   : > { %v10530_v47 = vld [vmem:[%s12806_s3 + $0x78] sm:$0xff]   ;;  %v11291_v49 = vld [vmem:[%s11179_s17 + $0xf8] sm:$0xff]   ;;  %641 = vst [vmem:[#allocation2 + $0x38] sm:$0xf] %v10948_v50  ;;  %642 = vst [vmem:[#allocation2 + $0x3c] sm:$0xf] %v10948_v50 }
  0x54   : > { %9508 = vmatmul.mubr.msk.bf16.vlgmr.msra.gmra.mxu0 %vm822_vm0, %v10488_v7  ;;  %9516 = vmatmul.mubr.msk.bf16.vlgmr.msra.gmra.mxu1 %vm822_vm0, %v10489_v9  ;;  %643 = vst [vmem:[#allocation2 + $0x40] sm:$0xf] %v10948_v50  ;;  %644 = vst [vmem:[#allocation2 + $0x44] sm:$0xf] %v10948_v50  ;;  %v10532_v51 = vld [vmem:[%s12806_s3 + $0x68] sm:$0xff]   ;;  %v10533_v52 = vld [vmem:[%s12806_s3 + $0x60] sm:$0xff]  }
  0x55   : > { %9524 = vmatpush3.bf16.msra.mxu1 %v10490_v6  ;;  %9548 = vmatpush3.bf16.msra.mxu0 %v10491_v8  ;;  %645 = vst [vmem:[#allocation2 + $0x48] sm:$0xf] %v10948_v50  ;;  %646 = vst [vmem:[#allocation2 + $0x4c] sm:$0xf] %v10948_v50  ;;  %v10534_v53 = vld [vmem:[%s12806_s3 + $0x58] sm:$0xff]   ;;  %v10535_v54 = vld [vmem:[%s12806_s3 + $0x50] sm:$0xff]  }
  0x56   : > { %9525 = vmatprep.subr.bf16.mxu1 %v10492_v10  ;;  %9549 = vmatprep.subr.bf16.mxu0 %v10493_v11  ;;  %647 = vst [vmem:[#allocation2 + $0x50] sm:$0xf] %v10948_v50  ;;  %648 = vst [vmem:[#allocation2 + $0x54] sm:$0xf] %v10948_v50  ;;  %v10536_v55 = vld [vmem:[%s12806_s3 + $0x48] sm:$0xff]   ;;  %v10537_v56 = vld [vmem:[%s12806_s3 + $0x38] sm:$0xff]  }
  0x57   : > { %9511 = vmatprep.mubr.msk.bf16.mxu0 %vm822_vm0, %v10494_v12  ;;  %9519 = vmatprep.mubr.msk.bf16.mxu1 %vm822_vm0, %v10495_v13  ;;  %649 = vst [vmem:[#allocation2 + $0x58] sm:$0xf] %v10948_v50  ;;  %650 = vst [vmem:[#allocation2 + $0x5c] sm:$0xf] %v10948_v50  ;;  %v10538_v57 = vld [vmem:[%s12806_s3 + $0x40] sm:$0xff]   ;;  %v10539_v58 = vld [vmem:[%s12806_s3 + $0x30] sm:$0xff]  }
  0x58   : > { %651 = vst [vmem:[#allocation2 + $0x60] sm:$0xf] %v10948_v50  ;;  %652 = vst [vmem:[#allocation2 + $0x64] sm:$0xf] %v10948_v50  ;;  %v10542_v61 = vld [vmem:[%s12806_s3 + $0xb8] sm:$0xff]   ;;  %v10543_v62 = vld [vmem:[%s12806_s3 + $0x28] sm:$0xff]  }
  0x59   : > { %9526 = vmatpush3.bf16.msra.mxu1 %v10492_v10  ;;  %9550 = vmatpush3.bf16.msra.mxu0 %v10493_v11  ;;  %653 = vst [vmem:[#allocation2 + $0x68] sm:$0xf] %v10948_v50  ;;  %654 = vst [vmem:[#allocation2 + $0x6c] sm:$0xf] %v10948_v50  ;;  %v10544_v63 = vld [vmem:[%s12806_s3 + $0xb0] sm:$0xff]   ;;  %v10545_v0 = vld [vmem:[%s12806_s3 + $0x20] sm:$0xff]  }
  0x5a   : > { %9527 = vmatprep.subr.bf16.mxu1 %v10498_v14  ;;  %9551 = vmatprep.subr.bf16.mxu0 %v10499_v16  ;;  %655 = vst [vmem:[#allocation2 + $0x70] sm:$0xf] %v10948_v50  ;;  %656 = vst [vmem:[#allocation2 + $0x74] sm:$0xf] %v10948_v50  ;;  %v10548_v1 = vld [vmem:[%s12806_s3 + $0xa8] sm:$0xff]   ;;  %v10549_v2 = vld [vmem:[%s12806_s3 + $0x18] sm:$0xff]  }
  0x5b   : > { %657 = vst [vmem:[#allocation2 + $0x78] sm:$0xf] %v10948_v50  ;;  %658 = vst [vmem:[#allocation2 + $0x7c] sm:$0xf] %v10948_v50  ;;  %v10550_v3 = vld [vmem:[%s12806_s3 + $0xa0] sm:$0xff]   ;;  %v10551_v4 = vld [vmem:[%s12806_s3 + $0x10] sm:$0xff]  }
  0x5c   : > { %9512 = vmatmul.mubr.msk.bf16.gmra.mxu0 %vm822_vm0, %v10496_v15  ;;  %9520 = vmatmul.mubr.msk.bf16.gmra.mxu1 %vm822_vm0, %v10497_v17  ;;  %659 = vst [vmem:[#allocation2 + $0x80] sm:$0xf] %v10948_v50  ;;  %660 = vst [vmem:[#allocation2 + $0x84] sm:$0xf] %v10948_v50  ;;  %v10554_v5 = vld [vmem:[%s12806_s3 + $0x98] sm:$0xff]   ;;  %v10555_v6 = vld [vmem:[%s12806_s3 + $0x8] sm:$0xff]  }
  0x5d   : > { %9528 = vmatpush3.bf16.msra.mxu1 %v10498_v14  ;;  %9552 = vmatpush3.bf16.msra.mxu0 %v10499_v16  ;;  %661 = vst [vmem:[#allocation2 + $0x88] sm:$0xf] %v10948_v50  ;;  %662 = vst [vmem:[#allocation2 + $0x8c] sm:$0xf] %v10948_v50  ;;  %v10556_v7 = vld [vmem:[%s12806_s3 + $0x90] sm:$0xff]   ;;  %v10557_v8 = vld [vmem:[%s12806_s3] sm:$0xff]  }
  0x5e   : > { %9529 = vmatprep.subr.bf16.mxu1 %v10500_v18  ;;  %9553 = vmatprep.subr.bf16.mxu0 %v10501_v19  ;;  %663 = vst [vmem:[#allocation2 + $0x90] sm:$0xf] %v10948_v50  ;;  %664 = vst [vmem:[#allocation2 + $0x94] sm:$0xf] %v10948_v50  ;;  %v10560_v9 = vld [vmem:[#allocation2] sm:$0xff]   ;;  %v10561_v10 = vld [vmem:[%s12806_s3 + $0x88] sm:$0xff]  }
  0x5f   : > { %9531 = vmatprep.mubr.msk.bf16.mxu1 %vm822_vm0, %v10502_v20  ;;  %9555 = vmatprep.mubr.msk.bf16.mxu0 %vm822_vm0, %v10503_v21  ;;  %665 = vst [vmem:[#allocation2 + $0x98] sm:$0xf] %v10948_v50  ;;  %666 = vst [vmem:[#allocation2 + $0x9c] sm:$0xf] %v10948_v50  ;;  %v10562_v11 = vld [vmem:[#allocation2 + $0x8] sm:$0xff]   ;;  %v10563_v12 = vld [vmem:[%s12806_s3 + $0x80] sm:$0xff]  }
  0x60   : > { %667 = vst [vmem:[#allocation2 + $0xa0] sm:$0xf] %v10948_v50  ;;  %668 = vst [vmem:[#allocation2 + $0xa4] sm:$0xf] %v10948_v50  ;;  %v10540_v59 = vld [vmem:[#allocation2 + $0x64] sm:$0xff]   ;;  %v10566_v13 = vld [vmem:[%s12806_s3 + $0xf8] sm:$0xff]  }
  0x61   : > { %9530 = vmatpush3.bf16.msra.mxu1 %v10500_v18  ;;  %9554 = vmatpush3.bf16.msra.mxu0 %v10501_v19  ;;  %669 = vst [vmem:[#allocation2 + $0xa8] sm:$0xf] %v10948_v50  ;;  %670 = vst [vmem:[#allocation2 + $0xac] sm:$0xf] %v10948_v50  ;;  %v10541_v60 = vld [vmem:[#allocation2 + $0x6c] sm:$0xff]   ;;  %v10567_v14 = vld [vmem:[%s12806_s3 + $0x138] sm:$0xff]  }
  0x62   : > { %9571 = vmatprep.subr.bf16.mxu1 %v10506_v23  ;;  %9595 = vmatprep.subr.bf16.mxu0 %v10530_v47  ;;  %671 = vst [vmem:[#allocation2 + $0xb0] sm:$0xf] %v10948_v50  ;;  %672 = vst [vmem:[#allocation2 + $0xb4] sm:$0xf] %v10948_v50  ;;  %v10568_v15 = vld [vmem:[%s12806_s3 + $0xf0] sm:$0xff]   ;;  %v10574_v16 = vld [vmem:[%s12806_s3 + $0xe8] sm:$0xff]  }
  0x63   : > { %673 = vst [vmem:[#allocation2 + $0xb8] sm:$0xf] %v10948_v50  ;;  %674 = vst [vmem:[#allocation2 + $0xbc] sm:$0xf] %v10948_v50  ;;  %v10577_v17 = vld [vmem:[%s12806_s3 + $0xe0] sm:$0xff]   ;;  %v10582_v18 = vld [vmem:[%s12806_s3 + $0xd8] sm:$0xff]  }
  0x64   : > { %9532 = vmatmul.mubr.msk.bf16.vlgmr.msra.gmra.mxu1 %vm822_vm0, %v10504_v22  ;;  %9556 = vmatmul.mubr.msk.bf16.vlgmr.msra.gmra.mxu0 %vm822_vm0, %v10505_v24  ;;  %675 = vst [vmem:[#allocation2 + $0xc0] sm:$0xf] %v10948_v50  ;;  %676 = vst [vmem:[#allocation2 + $0xc4] sm:$0xf] %v10948_v50  ;;  %v10584_v19 = vld [vmem:[%s12806_s3 + $0xd0] sm:$0xff]   ;;  %v10590_v20 = vld [vmem:[%s12806_s3 + $0xc8] sm:$0xff]  }
  0x65   : > { %9572 = vmatpush3.bf16.msra.mxu1 %v10506_v23  ;;  %9535 = vmatprep.mubr.msk.bf16.mxu1 %vm822_vm0, %v10507_v25  ;;  %677 = vst [vmem:[#allocation2 + $0xc8] sm:$0xf] %v10948_v50  ;;  %678 = vst [vmem:[#allocation2 + $0xcc] sm:$0xf] %v10948_v50  ;;  %v10593_v21 = vld [vmem:[%s12806_s3 + $0xc0] sm:$0xff]   ;;  %v10598_v22 = vld [vmem:[%s12806_s3 + $0x178] sm:$0xff]  }
  0x66   : > { %9559 = vmatprep.mubr.msk.bf16.mxu0 %vm822_vm0, %v10508_v26  ;;  %9573 = vmatprep.subr.bf16.mxu1 %v10511_v27  ;;  %679 = vst [vmem:[#allocation2 + $0xd0] sm:$0xf] %v10948_v50  ;;  %680 = vst [vmem:[#allocation2 + $0xd4] sm:$0xf] %v10948_v50  ;;  %v11496_v23 = vld [vmem:[%s12805_s2] ss:$0 sm:$0xff] }
  0x67   : > { %9596 = vmatpush3.bf16.msra.mxu0 %v10530_v47  ;;  %681 = vst [vmem:[#allocation2 + $0xd8] sm:$0xf] %v10948_v50  ;;  %682 = vst [vmem:[#allocation2 + $0xdc] sm:$0xf] %v10948_v50 }
  0x68   : > { %9597 = vmatprep.subr.bf16.mxu0 %v11288_v48  ;;  %683 = vst [vmem:[#allocation2 + $0xe0] sm:$0xf] %v10948_v50  ;;  %684 = vst [vmem:[#allocation2 + $0xe4] sm:$0xf] %v10948_v50 }
  0x69   : > { %9574 = vmatpush3.bf16.msra.mxu1 %v10511_v27  ;;  %685 = vst [vmem:[#allocation2 + $0xe8] sm:$0xf] %v10948_v50  ;;  %686 = vst [vmem:[#allocation2 + $0xec] sm:$0xf] %v10948_v50 }
  0x6a   : > { %9575 = vmatprep.subr.bf16.mxu1 %v10516_v29  ;;  %687 = vst [vmem:[#allocation2 + $0xf0] sm:$0xf] %v10948_v50  ;;  %688 = vst [vmem:[#allocation2 + $0xf4] sm:$0xf] %v10948_v50 }
  0x6b   : > { %689 = vst [vmem:[#allocation2 + $0xf8] sm:$0xf] %v10948_v50  ;;  %690 = vst [vmem:[#allocation2 + $0xfc] sm:$0xf] %v10948_v50  ;;  %9598 = vmatpush3.bf16.msra.mxu0 %v11288_v48 }
  0x6c   : > { %9536 = vmatmul.mubr.msk.bf16.gmra.mxu1 %vm822_vm0, %v10509_v28  ;;  %9560 = vmatmul.mubr.msk.bf16.gmra.mxu0 %vm822_vm0, %v10510_v30  ;;  %691 = vst [vmem:[#allocation2 + $0x100] sm:$0xf] %v10948_v50  ;;  %692 = vst [vmem:[#allocation2 + $0x104] sm:$0xf] %v10948_v50 }
  0x6d   : > { %9539 = vmatprep.mubr.msk.bf16.mxu1 %vm822_vm0, %v10512_v31  ;;  %9563 = vmatprep.mubr.msk.bf16.mxu0 %vm822_vm0, %v10513_v32  ;;  %693 = vst [vmem:[#allocation2 + $0x108] sm:$0xf] %v10948_v50  ;;  %694 = vst [vmem:[#allocation2 + $0x10c] sm:$0xf] %v10948_v50 }
  0x6e   : > { %9576 = vmatpush3.bf16.msra.mxu1 %v10516_v29  ;;  %695 = vst [vmem:[#allocation2 + $0x110] sm:$0xf] %v10948_v50  ;;  %696 = vst [vmem:[#allocation2 + $0x114] sm:$0xf] %v10948_v50  ;;  %9599 = vmatprep.subr.bf16.mxu0 %v10532_v51 }
  0x6f   : > { %9577 = vmatprep.subr.bf16.mxu1 %v10519_v33  ;;  %697 = vst [vmem:[#allocation2 + $0x118] sm:$0xf] %v10948_v50  ;;  %698 = vst [vmem:[#allocation2 + $0x11c] sm:$0xf] %v10948_v50  ;;  %9600 = vmatpush3.bf16.msra.mxu0 %v10532_v51 }
  0x70   : > { %699 = vst [vmem:[#allocation2 + $0x120] sm:$0xf] %v10948_v50  ;;  %700 = vst [vmem:[#allocation2 + $0x124] sm:$0xf] %v10948_v50  ;;  %9601 = vmatprep.subr.bf16.mxu0 %v10533_v52 }
  0x71   : > { %701 = vst [vmem:[#allocation2 + $0x128] sm:$0xf] %v10948_v50  ;;  %703 = vst [vmem:[#allocation2 + $0x130] sm:$0xf] %v10948_v50 }
  0x72   : > { %9578 = vmatpush3.bf16.msra.mxu1 %v10519_v33  ;;  %704 = vst [vmem:[#allocation2 + $0x134] sm:$0xf] %v10948_v50  ;;  %705 = vst [vmem:[#allocation2 + $0x138] sm:$0xf] %v10948_v50 }
  0x73   : > { %706 = vst [vmem:[#allocation2 + $0x13c] sm:$0xf] %v10948_v50  ;;  %707 = vst [vmem:[#allocation2 + $0x140] sm:$0xf] %v10948_v50  ;;  %9602 = vmatpush3.bf16.msra.mxu0 %v10533_v52  ;;  %9627 = vmatprep.subr.bf16.mxu1 %v10537_v56 }
  0x74   : > { %9540 = vmatmul.mubr.msk.bf16.gmra.mxu1 %vm822_vm0, %v10514_v34  ;;  %9564 = vmatmul.mubr.msk.bf16.gmra.mxu0 %vm822_vm0, %v10515_v35  ;;  %708 = vst [vmem:[#allocation2 + $0x144] sm:$0xf] %v10948_v50  ;;  %709 = vst [vmem:[#allocation2 + $0x148] sm:$0xf] %v10948_v50 }
  0x75   : > { %9543 = vmatprep.mubr.msk.bf16.mxu1 %vm822_vm0, %v10517_v36  ;;  %9567 = vmatprep.mubr.msk.bf16.mxu0 %vm822_vm0, %v10528_v37  ;;  %710 = vst [vmem:[#allocation2 + $0x14c] sm:$0xf] %v10948_v50  ;;  %711 = vst [vmem:[#allocation2 + $0x150] sm:$0xf] %v10948_v50 }
  0x76   : > { %712 = vst [vmem:[#allocation2 + $0x154] sm:$0xf] %v10948_v50  ;;  %713 = vst [vmem:[#allocation2 + $0x158] sm:$0xf] %v10948_v50  ;;  %9603 = vmatprep.subr.bf16.mxu0 %v10534_v53 }
  0x77   : > { %714 = vst [vmem:[#allocation2 + $0x15c] sm:$0xf] %v10948_v50  ;;  %715 = vst [vmem:[#allocation2 + $0x160] sm:$0xf] %v10948_v50  ;;  %9604 = vmatpush3.bf16.msra.mxu0 %v10534_v53 }
  0x78   : > { %716 = vst [vmem:[#allocation2 + $0x164] sm:$0xf] %v10948_v50  ;;  %717 = vst [vmem:[#allocation2 + $0x168] sm:$0xf] %v10948_v50  ;;  %9605 = vmatprep.subr.bf16.mxu0 %v10535_v54 }
  0x79   : > { %718 = vst [vmem:[#allocation2 + $0x16c] sm:$0xf] %v10948_v50  ;;  %719 = vst [vmem:[#allocation2 + $0x170] sm:$0xf] %v10948_v50 }
  0x7a   : > { %720 = vst [vmem:[#allocation2 + $0x174] sm:$0xf] %v10948_v50  ;;  %721 = vst [vmem:[#allocation2 + $0x178] sm:$0xf] %v10948_v50 }
  0x7b   : > { %722 = vst [vmem:[#allocation2 + $0x17c] sm:$0xf] %v10948_v50  ;;  %723 = vst [vmem:[#allocation2 + $0x180] sm:$0xf] %v10948_v50  ;;  %9606 = vmatpush3.bf16.msra.mxu0 %v10535_v54 }
  0x7c   : > { %9544 = vmatmul.mubr.msk.bf16.gmra.mxu1 %vm822_vm0, %v10518_v38  ;;  %9568 = vmatmul.mubr.msk.bf16.gmra.mxu0 %vm822_vm0, %v10529_v39  ;;  %724 = vst [vmem:[#allocation2 + $0x184] sm:$0xf] %v10948_v50  ;;  %725 = vst [vmem:[#allocation2 + $0x188] sm:$0xf] %v10948_v50 }
  0x7d   : > { %9579 = vmatprep.mubr.msk.bf16.mxu1 %vm822_vm0, %v10520_v40  ;;  %726 = vst [vmem:[#allocation2 + $0x18c] sm:$0xf] %v10948_v50  ;;  %9607 = vmatprep.subr.bf16.mxu0 %v10536_v55 }
  0x7e   : > { %9611 = vmatprep.mubr.bf16.mxu0 %v10540_v59 }
  0x7f   : > { %9608 = vmatpush3.bf16.msra.mxu0 %v10536_v55 }
  0x80   : > { %9609 = vmatprep.subr.bf16.mxu0 %v10538_v57 }
  0x83   : > { %9610 = vmatpush3.bf16.msra.mxu0 %v10538_v57 }
  0x84   : > { %9580 = vmatmul.mubr.msk.bf16.vlgmr.msra.gmra.mxu1 %vm822_vm0, %v10521_v41  ;;  %9659 = vmatprep.subr.bf16.mxu0 %v10542_v61 }
  0x85   : > { %9583 = vmatprep.mubr.msk.bf16.mxu1 %vm822_vm0, %v10522_v42  ;;  %9628 = vmatpush3.bf16.msra.mxu1 %v10537_v56 }
  0x86   : > { %9629 = vmatprep.subr.bf16.mxu1 %v10539_v58  ;;  %9612 = vmatmul.mubr.bf16.vlgmr.msra.gmra.mxu0 %v10541_v60 }
  0x87   : > { %9660 = vmatpush3.bf16.msra.mxu0 %v10542_v61 }
  0x88   : > { %9661 = vmatprep.subr.bf16.mxu0 %v10544_v63 }
  0x89   : > { %9630 = vmatpush3.bf16.msra.mxu1 %v10539_v58 }
  0x8a   : > { %9631 = vmatprep.subr.bf16.mxu1 %v10543_v62 }
  0x8b   : > { %9662 = vmatpush3.bf16.msra.mxu0 %v10544_v63 }
  0x8c   : > { %9584 = vmatmul.mubr.msk.bf16.gmra.mxu1 %vm822_vm0, %v10523_v43  ;;  %9663 = vmatprep.subr.bf16.mxu0 %v10548_v1 }
  0x8d   : > { %9587 = vmatprep.mubr.msk.bf16.mxu1 %vm822_vm0, %v10524_v44  ;;  %9632 = vmatpush3.bf16.msra.mxu1 %v10543_v62 }
  0x8e   : > { %9633 = vmatprep.subr.bf16.mxu1 %v10545_v0 }
  0x8f   : > { %9664 = vmatpush3.bf16.msra.mxu0 %v10548_v1 }
  0x90   : > { %9665 = vmatprep.subr.bf16.mxu0 %v10550_v3 }
  0x91   : > { %9634 = vmatpush3.bf16.msra.mxu1 %v10545_v0 }
  0x92   : > { %9635 = vmatprep.subr.bf16.mxu1 %v10549_v2 }
  0x93   : > { %9666 = vmatpush3.bf16.msra.mxu0 %v10550_v3 }
  0x94   : > { %9588 = vmatmul.mubr.msk.bf16.gmra.mxu1 %vm822_vm0, %v10525_v45  ;;  %9667 = vmatprep.subr.bf16.mxu0 %v10554_v5 }
  0x95   : > { %9591 = vmatprep.mubr.msk.bf16.mxu1 %vm822_vm0, %v10526_v46  ;;  %9636 = vmatpush3.bf16.msra.mxu1 %v10549_v2 }
  0x96   : > { %9637 = vmatprep.subr.bf16.mxu1 %v10551_v4 }
  0x97   : > { %9668 = vmatpush3.bf16.msra.mxu0 %v10554_v5 }
  0x98   : > { %9669 = vmatprep.subr.bf16.mxu0 %v10556_v7 }
  0x99   : > { %9638 = vmatpush3.bf16.msra.mxu1 %v10551_v4 }
  0x9a   : > { %9639 = vmatprep.subr.bf16.mxu1 %v10555_v6 }
  0x9b   : > { %9670 = vmatpush3.bf16.msra.mxu0 %v10556_v7 }
  0x9c   : > { %9592 = vmatmul.mubr.msk.bf16.gmra.mxu1 %vm822_vm0, %v11291_v49  ;;  %9671 = vmatprep.subr.bf16.mxu0 %v10561_v10 }
  0x9d   : > { %9640 = vmatpush3.bf16.msra.mxu1 %v10555_v6  ;;  %9643 = vmatprep.mubr.bf16.mxu1 %v10560_v9 }
  0x9e   : > { %9641 = vmatprep.subr.bf16.mxu1 %v10557_v8 }
  0x9f   : > { %9672 = vmatpush3.bf16.msra.mxu0 %v10561_v10 }
  0xa0   : > { %9673 = vmatprep.subr.bf16.mxu0 %v10563_v12 }
  0xa1   : > { %9642 = vmatpush3.bf16.msra.mxu1 %v10557_v8 }
  0xa2   : > { %9691 = vmatprep.subr.bf16.mxu1 %v10566_v13 }
  0xa3   : > { %9674 = vmatpush3.bf16.msra.mxu0 %v10563_v12 }
  0xa4   : > { %9644 = vmatmul.mubr.bf16.vlgmr.msra.gmra.mxu1 %v10562_v11  ;;  %9723 = vmatprep.subr.bf16.mxu0 %v10567_v14 }
  0xa5   : > { %9692 = vmatpush3.bf16.msra.mxu1 %v10566_v13 }
  0xa6   : > { %9693 = vmatprep.subr.bf16.mxu1 %v10568_v15 }
  0xa9   : > { %9694 = vmatpush3.bf16.msra.mxu1 %v10568_v15 }
  0xaa   : > { %9695 = vmatprep.subr.bf16.mxu1 %v10574_v16 }
  0xad   : > { %9696 = vmatpush3.bf16.msra.mxu1 %v10574_v16 }
  0xae   : > { %9697 = vmatprep.subr.bf16.mxu1 %v10577_v17 }
  0xb1   : > { %9698 = vmatpush3.bf16.msra.mxu1 %v10577_v17 }
  0xb2   : > { %9699 = vmatprep.subr.bf16.mxu1 %v10582_v18 }
  0xb5   : > { %9700 = vmatpush3.bf16.msra.mxu1 %v10582_v18 }
  0xb6   : > { %9701 = vmatprep.subr.bf16.mxu1 %v10584_v19 }
  0xb9   : > { %9702 = vmatpush3.bf16.msra.mxu1 %v10584_v19 }
  0xba   : > { %9703 = vmatprep.subr.bf16.mxu1 %v10590_v20 }
  0xbd   : > { %9704 = vmatpush3.bf16.msra.mxu1 %v10590_v20 }
  0xbe   : > { %9705 = vmatprep.subr.bf16.mxu1 %v10593_v21 }
  0xc1   : > { %9706 = vmatpush3.bf16.msra.mxu1 %v10593_v21 }
  0xc2   : > { %9755 = vmatprep.subr.bf16.mxu1 %v10598_v22 }
 0x114   : > { %v9509_v24 = vpop.f32.mrf.mxu0  ;;  %v9517_v25 = vpop.f32.mrf.mxu1 }
 0x115   : > { %v890_v26 = vadd.f32 %v9509_v24, %v11496_v23  ;;  %v922_v38 = vadd.f32 %v9517_v25, %v11496_v23 }
 0x116   : > { %v881_v27 = vpop.f32.mrf.mxu0  ;;  %v913_v28 = vpop.f32.mrf.mxu1 }
 0x117   : > { %v882_v29 = vadd.f32 %v11496_v23, %v881_v27  ;;  %v914_v30 = vadd.f32 %v11496_v23, %v913_v28  ;;  %v946_v31 = vmax.f32 %v890_v26, 0.0  ;;  %v954_v53 = vmax.f32 %v922_v38, 0.0 }
 0x118   : > { %v9510_v32 = vpop.f32.mrf.mxu0  ;;  %v9518_v33 = vpop.f32.mrf.mxu1 }
 0x119   : > { %v944_v34 = vmax.f32 %v882_v29, 0.0  ;;  %v952_v35 = vmax.f32 %v914_v30, 0.0  ;;  %v893_v36 = vadd.f32 %v9510_v32, %v11496_v23  ;;  %v925_v37 = vadd.f32 %v9518_v33, %v11496_v23 }
 0x11a   : > { %v884_v39 = vpop.f32.mrf.mxu0  ;;  %v916_v40 = vpop.f32.mrf.mxu1 }
 0x11b   : > { %v8836_v41 = vpack.c.bf16 %v944_v34, %v944_v34  ;;  %v8844_v42 = vpack.c.bf16 %v952_v35, %v952_v35  ;;  %v947_v43 = vmax.f32 %v893_v36, 0.0  ;;  %v955_v44 = vmax.f32 %v925_v37, 0.0 }
 0x11c   : > { %v885_v45 = vadd.f32 %v11496_v23, %v884_v39  ;;  %v917_v46 = vadd.f32 %v11496_v23, %v916_v40  ;;  %v9513_v47 = vpop.f32.mrf.mxu0  ;;  %v9521_v48 = vpop.f32.mrf.mxu1 }
 0x11d   : > { %1025 = vst [vmem:[#allocation2 + $0x12c] sm:$0xf] %v8836_v41  ;;  %1033 = vst [vmem:[#allocation2 + $0x154] sm:$0xf] %v8844_v42  ;;  %v8839_v49 = vpack.c.bf16 %v947_v43, %v947_v43  ;;  %v8847_v50 = vpack.c.bf16 %v955_v44, %v955_v44  ;;  %v906_v51 = vadd.f32 %v9513_v47, %v11496_v23 }
 0x11e   : > { %v938_v52 = vadd.f32 %v9521_v48, %v11496_v23  ;;  %v945_v54 = vmax.f32 %v885_v45, 0.0  ;;  %v953_v55 = vmax.f32 %v917_v46, 0.0  ;;  %v897_v56 = vpop.f32.mrf.mxu0  ;;  %v929_v57 = vpop.f32.mrf.mxu1 }
 0x11f   : > { %1028 = vst [vmem:[#allocation2 + $0x138] sm:$0xf] %v8839_v49  ;;  %1036 = vst [vmem:[#allocation2 + $0x160] sm:$0xf] %v8847_v50  ;;  %v898_v58 = vadd.f32 %v11496_v23, %v897_v56  ;;  %v930_v59 = vadd.f32 %v11496_v23, %v929_v57  ;;  %v950_v62 = vmax.f32 %v906_v51, 0.0 }
 0x120   : > { %v8903_v60 = vpack.c.bf16 %v946_v31, %v945_v54  ;;  %v8918_v61 = vpack.c.bf16 %v954_v53, %v953_v55  ;;  %v958_v63 = vmax.f32 %v938_v52, 0.0  ;;  %v9514_v0 = vpop.f32.mrf.mxu0  ;;  %v9522_v1 = vpop.f32.mrf.mxu1 }
 0x121   : > { %v948_v2 = vmax.f32 %v898_v58, 0.0  ;;  %v956_v3 = vmax.f32 %v930_v59, 0.0  ;;  %v909_v4 = vadd.f32 %v9514_v0, %v11496_v23  ;;  %v941_v5 = vadd.f32 %v9522_v1, %v11496_v23 }
 0x122   : > { %9020 = vst [vmem:[#allocation2 + $0x130] sm:$0xff] %v8903_v60   ;;  %9023 = vst [vmem:[#allocation2 + $0x158] sm:$0xff] %v8918_v61   ;;  %v900_v6 = vpop.f32.mrf.mxu0  ;;  %v932_v7 = vpop.f32.mrf.mxu1 }
 0x123   : > { %v951_v8 = vmax.f32 %v909_v4, 0.0  ;;  %v959_v9 = vmax.f32 %v941_v5, 0.0  ;;  %v901_v10 = vadd.f32 %v11496_v23, %v900_v6  ;;  %v933_v11 = vadd.f32 %v11496_v23, %v932_v7 }
 0x124   : > { %v9533_v12 = vpop.f32.mrf.mxu1  ;;  %v9557_v13 = vpop.f32.mrf.mxu0 }
 0x125   : > { %v8913_v14 = vpack.c.bf16 %v951_v8, %v950_v62  ;;  %v8928_v15 = vpack.c.bf16 %v959_v9, %v958_v63  ;;  %v949_v16 = vmax.f32 %v901_v10, 0.0  ;;  %v957_v17 = vmax.f32 %v933_v11, 0.0 }
 0x126   : > { %v1504_v18 = vadd.f32 %v9557_v13, %v11496_v23  ;;  %v1188_v19 = vpop.f32.mrf.mxu1  ;;  %v1495_v20 = vpop.f32.mrf.mxu0  ;;  %v1197_v26 = vadd.f32 %v9533_v12, %v11496_v23 }
 0x127   : > { %9022 = vst [vmem:[#allocation2 + $0x148] sm:$0xff] %v8913_v14   ;;  %9025 = vst [vmem:[#allocation2 + $0x170] sm:$0xff] %v8928_v15   ;;  %v8908_v21 = vpack.c.bf16 %v949_v16, %v948_v2  ;;  %v8923_v22 = vpack.c.bf16 %v957_v17, %v956_v3  ;;  %v1189_v24 = vadd.f32 %v11496_v23, %v1188_v19 }
 0x128   : > { %v1496_v25 = vadd.f32 %v11496_v23, %v1495_v20  ;;  %v9534_v27 = vpop.f32.mrf.mxu1  ;;  %v9558_v28 = vpop.f32.mrf.mxu0  ;;  %v1560_v29 = vmax.f32 %v1504_v18, 0.0  ;;  %v1253_v43 = vmax.f32 %v1197_v26, 0.0 }
 0x129   : > { %9021 = vst [vmem:[#allocation2 + $0x140] sm:$0xff] %v8908_v21   ;;  %9024 = vst [vmem:[#allocation2 + $0x168] sm:$0xff] %v8923_v22   ;;  %v1251_v30 = vmax.f32 %v1189_v24, 0.0  ;;  %v1200_v31 = vadd.f32 %v9534_v27, %v11496_v23  ;;  %v1507_v32 = vadd.f32 %v9558_v28, %v11496_v23 }
 0x12a   : > { %v1558_v33 = vmax.f32 %v1496_v25, 0.0  ;;  %v1191_v34 = vpop.f32.mrf.mxu1  ;;  %v1498_v35 = vpop.f32.mrf.mxu0 }
 0x12b   : > { %v8852_v36 = vpack.c.bf16 %v1251_v30, %v1251_v30  ;;  %v1254_v37 = vmax.f32 %v1200_v31, 0.0  ;;  %v1561_v38 = vmax.f32 %v1507_v32, 0.0  ;;  %v1192_v39 = vadd.f32 %v11496_v23, %v1191_v34 }
 0x12c   : > { %v1499_v40 = vadd.f32 %v11496_v23, %v1498_v35  ;;  %v9537_v41 = vpop.f32.mrf.mxu1  ;;  %v9561_v42 = vpop.f32.mrf.mxu0 }
 0x12d   : > { %1332 = vst [vmem:[#allocation2 + $0xcc] sm:$0xf] %v8852_v36  ;;  %v8855_v44 = vpack.c.bf16 %v1254_v37, %v1254_v37  ;;  %v8968_v45 = vpack.c.bf16 %v1561_v38, %v1560_v29  ;;  %v1252_v46 = vmax.f32 %v1192_v39, 0.0  ;;  %v1213_v48 = vadd.f32 %v9537_v41, %v11496_v23 }
 0x12e   : > { %v1559_v47 = vmax.f32 %v1499_v40, 0.0  ;;  %v1204_v49 = vpop.f32.mrf.mxu1  ;;  %v1511_v50 = vpop.f32.mrf.mxu0  ;;  %v1520_v54 = vadd.f32 %v9561_v42, %v11496_v23 }
 0x12f   : > { %1335 = vst [vmem:[#allocation2 + $0xd8] sm:$0xf] %v8855_v44  ;;  %9032 = vst [vmem:[#allocation2 + $0x80] sm:$0xff] %v8968_v45   ;;  %v8933_v51 = vpack.c.bf16 %v1253_v43, %v1252_v46  ;;  %v1512_v52 = vadd.f32 %v11496_v23, %v1511_v50  ;;  %v1205_v57 = vadd.f32 %v11496_v23, %v1204_v49  ;;  %v1257_v61 = vmax.f32 %v1213_v48, 0.0 }
 0x130   : > { %v8963_v53 = vpack.c.bf16 %v1559_v47, %v1558_v33  ;;  %v9538_v55 = vpop.f32.mrf.mxu1  ;;  %v9562_v56 = vpop.f32.mrf.mxu0  ;;  %v1564_v4 = vmax.f32 %v1520_v54, 0.0 }
 0x131   : > { %9026 = vst [vmem:[#allocation2 + $0xd0] sm:$0xff] %v8933_v51   ;;  %v1562_v58 = vmax.f32 %v1512_v52, 0.0  ;;  %v1216_v59 = vadd.f32 %v9538_v55, %v11496_v23  ;;  %v1523_v60 = vadd.f32 %v9562_v56, %v11496_v23  ;;  %v1255_v8 = vmax.f32 %v1205_v57, 0.0 }
 0x132   : > { %8964 = vst [vmem:[#allocation2 + $0x78] sm:$0xff] %v8963_v53   ;;  %v1207_v62 = vpop.f32.mrf.mxu1  ;;  %v1514_v63 = vpop.f32.mrf.mxu0 }
 0x133   : > { %v8872_v0 = vpack.c.bf16 %v1562_v58, %v1562_v58  ;;  %v1258_v1 = vmax.f32 %v1216_v59, 0.0  ;;  %v1565_v2 = vmax.f32 %v1523_v60, 0.0  ;;  %v1208_v3 = vadd.f32 %v11496_v23, %v1207_v62 }
 0x134   : > { %v1515_v5 = vadd.f32 %v11496_v23, %v1514_v63  ;;  %v9541_v6 = vpop.f32.mrf.mxu1  ;;  %v9565_v7 = vpop.f32.mrf.mxu0 }
 0x135   : > { %1643 = vst [vmem:[#allocation2 + $0x8c] sm:$0xf] %v8872_v0  ;;  %v8943_v9 = vpack.c.bf16 %v1258_v1, %v1257_v61  ;;  %v8875_v10 = vpack.c.bf16 %v1565_v2, %v1565_v2  ;;  %v1256_v11 = vmax.f32 %v1208_v3, 0.0  ;;  %v1536_v13 = vadd.f32 %v9565_v7, %v11496_v23 }
 0x136   : > { %v1563_v12 = vmax.f32 %v1515_v5, 0.0  ;;  %v1220_v14 = vpop.f32.mrf.mxu1  ;;  %v1527_v15 = vpop.f32.mrf.mxu0  ;;  %v1229_v20 = vadd.f32 %v9541_v6, %v11496_v23  ;;  %v10547_v24 = vld [vmem:[#allocation2 + $0x80] sm:$0xff]  }
 0x137   : > { %9028 = vst [vmem:[#allocation2 + $0xe8] sm:$0xff] %v8943_v9   ;;  %1646 = vst [vmem:[#allocation2 + $0x98] sm:$0xf] %v8875_v10  ;;  %v8938_v16 = vpack.c.bf16 %v1256_v11, %v1255_v8  ;;  %v1221_v17 = vadd.f32 %v11496_v23, %v1220_v14  ;;  %v1528_v18 = vadd.f32 %v11496_v23, %v1527_v15  ;;  %v1568_v25 = vmax.f32 %v1536_v13, 0.0  ;;  %v10564_v6 = vld [vmem:[#allocation2 + $0x4] sm:$0xff]  }
 0x138   : > { %v8973_v19 = vpack.c.bf16 %v1564_v4, %v1563_v12  ;;  %v9542_v21 = vpop.f32.mrf.mxu1  ;;  %v9566_v22 = vpop.f32.mrf.mxu0  ;;  %v1261_v39 = vmax.f32 %v1229_v20, 0.0 }
 0x139   : > { %9027 = vst [vmem:[#allocation2 + $0xe0] sm:$0xff] %v8938_v16   ;;  %v1259_v26 = vmax.f32 %v1221_v17, 0.0  ;;  %v1232_v27 = vadd.f32 %v9542_v21, %v11496_v23  ;;  %v1539_v28 = vadd.f32 %v9566_v22, %v11496_v23  ;;  %v1566_v29 = vmax.f32 %v1528_v18, 0.0  ;;  %v10546_v32 = vld [vmem:[#allocation2 + $0x78] sm:$0xff]   ;;  %v10565_v21 = vld [vmem:[#allocation2 + $0xc] sm:$0xff]  }
 0x13a   : > { %9033 = vst [vmem:[#allocation2 + $0x90] sm:$0xff] %v8973_v19   ;;  %v1223_v30 = vpop.f32.mrf.mxu1  ;;  %v1530_v31 = vpop.f32.mrf.mxu0  ;;  %9615 = vmatprep.mubr.bf16.mxu0 %v10546_v32 }
 0x13b   : > { %v8860_v33 = vpack.c.bf16 %v1259_v26, %v1259_v26  ;;  %v1262_v34 = vmax.f32 %v1232_v27, 0.0  ;;  %v1569_v35 = vmax.f32 %v1539_v28, 0.0  ;;  %v1224_v36 = vadd.f32 %v11496_v23, %v1223_v30  ;;  %9616 = vmatmul.mubr.bf16.gmra.mxu0 %v10547_v24  ;;  %v10569_v28 = vld [vmem:[%s12806_s3 + $0x130] sm:$0xff]  }
 0x13c   : > { %v1531_v37 = vadd.f32 %v11496_v23, %v1530_v31  ;;  %v9545_v38 = vpop.f32.mrf.mxu1  ;;  %v9569_v22 = vpop.f32.mrf.mxu0 }
 0x13d   : > { %1340 = vst [vmem:[#allocation2 + $0xf4] sm:$0xf] %v8860_v33  ;;  %v8863_v40 = vpack.c.bf16 %v1262_v34, %v1262_v34  ;;  %v8983_v41 = vpack.c.bf16 %v1569_v35, %v1568_v25  ;;  %v1260_v42 = vmax.f32 %v1224_v36, 0.0  ;;  %v1245_v46 = vadd.f32 %v9545_v38, %v11496_v23 }
 0x13e   : > { %v1567_v43 = vmax.f32 %v1531_v37, 0.0  ;;  %v1236_v44 = vpop.f32.mrf.mxu1  ;;  %v1552_v35 = vadd.f32 %v9569_v22, %v11496_v23  ;;  %v10922_v37 = vld [vmem:[%s12806_s3 + $0x138] sm:$0xff]   ;;  %v10591_v22 = vld [vmem:[%s12806_s3 + $0x108] sm:$0xff]  }
 0x13f   : > { %1343 = vst [vmem:[#allocation2 + $0x100] sm:$0xf] %v8863_v40  ;;  %9035 = vst [vmem:[#allocation2 + $0xa8] sm:$0xff] %v8983_v41   ;;  %v8948_v45 = vpack.c.bf16 %v1261_v39, %v1260_v42  ;;  %v1237_v49 = vadd.f32 %v11496_v23, %v1236_v44  ;;  %v1265_v54 = vmax.f32 %v1245_v46, 0.0  ;;  %v10575_v42 = vld [vmem:[%s12806_s3 + $0x128] sm:$0xff]  }
 0x140   : > { %v8978_v47 = vpack.c.bf16 %v1567_v43, %v1566_v29  ;;  %v9546_v48 = vpop.f32.mrf.mxu1  ;;  %v1543_v29 = vpop.f32.mrf.mxu0 }
 0x141   : > { %9029 = vst [vmem:[#allocation2 + $0xf8] sm:$0xff] %v8948_v45   ;;  %v1248_v50 = vadd.f32 %v9546_v48, %v11496_v23  ;;  %v10552_v51 = vld [vmem:[#allocation2 + $0x8c] sm:$0xff]   ;;  %v10553_v53 = vld [vmem:[#allocation2 + $0x94] sm:$0xff]   ;;  %v1263_v58 = vmax.f32 %v1237_v49, 0.0  ;;  %v1544_v31 = vadd.f32 %v11496_v23, %v1543_v29 }
 0x142   : > { %9034 = vst [vmem:[#allocation2 + $0xa0] sm:$0xff] %v8978_v47   ;;  %v1239_v52 = vpop.f32.mrf.mxu1  ;;  %9619 = vmatprep.mubr.bf16.mxu0 %v10552_v51  ;;  %v9570_v36 = vpop.f32.mrf.mxu0 }
 0x143   : > { %v1266_v55 = vmax.f32 %v1248_v50, 0.0  ;;  %v1240_v56 = vadd.f32 %v11496_v23, %v1239_v52  ;;  %9620 = vmatmul.mubr.bf16.gmra.mxu0 %v10553_v53  ;;  %v1555_v39 = vadd.f32 %v9570_v36, %v11496_v23  ;;  %v1570_v45 = vmax.f32 %v1544_v31, 0.0  ;;  %v10594_v31 = vld [vmem:[%s12806_s3 + $0x100] sm:$0xff]   ;;  %v10597_v36 = vld [vmem:[#allocation2 + $0xd0] sm:$0xff]  }
 0x144   : > { %v9581_v57 = vpop.f32.mrf.mxu1  ;;  %v1546_v46 = vpop.f32.mrf.mxu0  ;;  %v1572_v50 = vmax.f32 %v1552_v35, 0.0  ;;  %v10602_v35 = vld [vmem:[%s12806_s3 + $0x170] sm:$0xff]  }
 0x145   : > { %v8958_v59 = vpack.c.bf16 %v1266_v55, %v1265_v54  ;;  %v1264_v60 = vmax.f32 %v1240_v56, 0.0  ;;  %v1811_v63 = vadd.f32 %v9581_v57, %v11496_v23  ;;  %v1547_v51 = vadd.f32 %v11496_v23, %v1546_v46  ;;  %v10578_v54 = vld [vmem:[%s12806_s3 + $0x120] sm:$0xff]   ;;  %v10608_v46 = vld [vmem:[#allocation2 + $0x90] sm:$0xff]  }
 0x146   : > { %v1802_v61 = vpop.f32.mrf.mxu1  ;;  %v10559_v1 = vld [vmem:[#allocation2 + $0xa8] sm:$0xff]   ;;  %v8880_v55 = vpack.c.bf16 %v1570_v45, %v1570_v45  ;;  %v1573_v56 = vmax.f32 %v1555_v39, 0.0  ;;  %v10603_v39 = vld [vmem:[%s12806_s3 + $0x1b0] sm:$0xff]  }
 0x147   : > { %9031 = vst [vmem:[#allocation2 + $0x110] sm:$0xff] %v8958_v59   ;;  %v8953_v62 = vpack.c.bf16 %v1264_v60, %v1263_v58  ;;  %v1803_v2 = vadd.f32 %v11496_v23, %v1802_v61  ;;  %v1867_v7 = vmax.f32 %v1811_v63, 0.0  ;;  %v1571_v61 = vmax.f32 %v1547_v51, 0.0  ;;  %v10605_v45 = vld [vmem:[#allocation2 + $0xe4] sm:$0xff]   ;;  %v10618_v51 = vld [vmem:[%s12806_s3 + $0x150] sm:$0xff]  }
 0x148   : > { %v9582_v0 = vpop.f32.mrf.mxu1  ;;  %1651 = vst [vmem:[#allocation2 + $0xb4] sm:$0xf] %v8880_v55 }
 0x149   : > { %9030 = vst [vmem:[#allocation2 + $0x108] sm:$0xff] %v8953_v62   ;;  %v1814_v3 = vadd.f32 %v9582_v0, %v11496_v23  ;;  %v10558_v4 = vld [vmem:[#allocation2 + $0xa0] sm:$0xff]   ;;  %v1865_v11 = vmax.f32 %v1803_v2, 0.0  ;;  %v8883_v0 = vpack.c.bf16 %v1573_v56, %v1573_v56 }
 0x14a   : > { %v1805_v5 = vpop.f32.mrf.mxu1  ;;  %9623 = vmatprep.mubr.bf16.mxu0 %v10558_v4  ;;  %v8988_v4 = vpack.c.bf16 %v1572_v50, %v1571_v61  ;;  %v10615_v50 = vld [vmem:[%s12806_s3 + $0x198] sm:$0xff]   ;;  %v10616_v55 = vld [vmem:[#allocation2 + $0xa4] sm:$0xff]  }
 0x14b   : > { %v1868_v8 = vmax.f32 %v1814_v3, 0.0  ;;  %v1806_v9 = vadd.f32 %v11496_v23, %v1805_v5  ;;  %9624 = vmatmul.mubr.bf16.gmra.mxu0 %v10559_v1  ;;  %1654 = vst [vmem:[#allocation2 + $0xc0] sm:$0xf] %v8883_v0  ;;  %v10627_v61 = vld [vmem:[%s12806_s3 + $0x180] sm:$0xff]   ;;  %v10625_v0 = vld [vmem:[#allocation2 + $0xcc] sm:$0xff]  }
 0x14c   : > { %v9585_v10 = vpop.f32.mrf.mxu1  ;;  %9675 = vmatprep.mubr.bf16.mxu0 %v10564_v6  ;;  %9036 = vst [vmem:[#allocation2 + $0xb8] sm:$0xff] %v8988_v4  }
 0x14d   : > { %v8998_v12 = vpack.c.bf16 %v1868_v8, %v1867_v7  ;;  %v1866_v13 = vmax.f32 %v1806_v9, 0.0  ;;  %v1827_v18 = vadd.f32 %v9585_v10, %v11496_v23  ;;  %v10583_v7 = vld [vmem:[%s12806_s3 + $0x118] sm:$0xff]  }
 0x14e   : > { %v1818_v14 = vpop.f32.mrf.mxu1 }
 0x14f   : > { %9037 = vst [vmem:[#allocation2 + $0x20] sm:$0xff] %v8998_v12   ;;  %v8993_v15 = vpack.c.bf16 %v1866_v13, %v1865_v11  ;;  %v1819_v16 = vadd.f32 %v11496_v23, %v1818_v14  ;;  %v1871_v32 = vmax.f32 %v1827_v18, 0.0 }
 0x150   : > { %v9586_v17 = vpop.f32.mrf.mxu1  ;;  %v10617_v56 = vld [vmem:[#allocation2 + $0x104] sm:$0xff]  }
 0x151   : > { %8994 = vst [vmem:[#allocation2 + $0x18] sm:$0xff] %v8993_v15   ;;  %v1869_v19 = vmax.f32 %v1819_v16, 0.0  ;;  %v1830_v20 = vadd.f32 %v9586_v17, %v11496_v23  ;;  %v10585_v17 = vld [vmem:[%s12806_s3 + $0x110] sm:$0xff]  }
 0x152   : > { %v1821_v24 = vpop.f32.mrf.mxu1 }
 0x153   : > { %v8888_v25 = vpack.c.bf16 %v1869_v19, %v1869_v19  ;;  %v1872_v26 = vmax.f32 %v1830_v20, 0.0  ;;  %v1822_v27 = vadd.f32 %v11496_v23, %v1821_v24  ;;  %9676 = vmatmul.mubr.bf16.vlgmr.msra.gmra.mxu0 %v10565_v21 }
 0x154   : > { %v9589_v30 = vpop.f32.mrf.mxu1  ;;  %9724 = vmatpush3.bf16.msra.mxu0 %v10922_v37  ;;  %v10600_v37 = vld [vmem:[#allocation2 + $0x7c] sm:$0xff]  }
 0x155   : > { %1950 = vst [vmem:[#allocation2 + $0x2c] sm:$0xf] %v8888_v25  ;;  %v8891_v33 = vpack.c.bf16 %v1872_v26, %v1872_v26  ;;  %v1870_v34 = vmax.f32 %v1822_v27, 0.0  ;;  %v1843_v41 = vadd.f32 %v9589_v30, %v11496_v23  ;;  %9725 = vmatprep.subr.bf16.mxu0 %v10569_v28  ;;  %v10595_v26 = vld [vmem:[#allocation2 + $0x68] sm:$0xff]  }
 0x156   : > { %v1834_v38 = vpop.f32.mrf.mxu1  ;;  %v10573_v60 = vld [vmem:[#allocation2 + $0x20] sm:$0xff]  }
 0x157   : > { %1953 = vst [vmem:[#allocation2 + $0x38] sm:$0xf] %v8891_v33  ;;  %v9003_v40 = vpack.c.bf16 %v1871_v32, %v1870_v34  ;;  %v1835_v47 = vadd.f32 %v11496_v23, %v1834_v38  ;;  %v1875_v57 = vmax.f32 %v1843_v41, 0.0  ;;  %v10592_v32 = vld [vmem:[#allocation2 + $0xc8] sm:$0xff]   ;;  %v10599_v33 = vld [vmem:[%s12806_s3 + $0x1b8] sm:$0xff]   ;;  %v10596_v34 = vld [vmem:[#allocation2 + $0x70] sm:$0xff]  }
 0x158   : > { %v9590_v43 = vpop.f32.mrf.mxu1  ;;  %v10570_v44 = vld [vmem:[#allocation2 + $0x14] sm:$0xff]   ;;  %9726 = vmatpush3.bf16.msra.mxu0 %v10569_v28  ;;  %v10572_v53 = vld [vmem:[#allocation2 + $0x1c] sm:$0xff]   ;;  %v10606_v41 = vld [vmem:[%s12806_s3 + $0x168] sm:$0xff]  }
 0x159   : > { %9038 = vst [vmem:[#allocation2 + $0x30] sm:$0xff] %v9003_v40   ;;  %v1846_v48 = vadd.f32 %v9590_v43, %v11496_v23  ;;  %v10571_v49 = vld [vmem:[#allocation2 + $0x18] sm:$0xff]   ;;  %9647 = vmatprep.mubr.bf16.mxu1 %v10570_v44  ;;  %9727 = vmatprep.subr.bf16.mxu0 %v10575_v42  ;;  %v1873_v1 = vmax.f32 %v1835_v47, 0.0  ;;  %v10604_v43 = vld [vmem:[#allocation2 + $0x84] sm:$0xff]   ;;  %v10609_v47 = vld [vmem:[#allocation2 + $0xf0] sm:$0xff]  }
 0x15a   : > { %v1837_v52 = vpop.f32.mrf.mxu1  ;;  %9679 = vmatprep.mubr.bf16.mxu0 %v10571_v49  ;;  %9648 = vmatmul.mubr.bf16.gmra.mxu1 %v10572_v53  ;;  %v10601_v38 = vld [vmem:[#allocation2 + $0xdc] sm:$0xff]   ;;  %v10619_v53 = vld [vmem:[%s12806_s3 + $0x190] sm:$0xff]  }
 0x15b   : > { %v1876_v58 = vmax.f32 %v1846_v48, 0.0  ;;  %v1838_v59 = vadd.f32 %v11496_v23, %v1837_v52  ;;  %9680 = vmatmul.mubr.bf16.gmra.mxu0 %v10573_v60  ;;  %v10923_v40 = vld [vmem:[%s12806_s3 + $0x178] sm:$0xff]   ;;  %v10610_v44 = vld [vmem:[%s12806_s3 + $0x160] sm:$0xff]   ;;  %v10620_v60 = vld [vmem:[#allocation2 + $0xac] sm:$0xff]  }
 0x15c   : > { %v10576_v62 = vld [vmem:[#allocation2 + $0x28] sm:$0xff]   ;;  %v9593_v63 = vpop.f32.mrf.mxu1  ;;  %9728 = vmatpush3.bf16.msra.mxu0 %v10575_v42  ;;  %v10611_v48 = vld [vmem:[%s12806_s3 + $0x1a0] sm:$0xff]   ;;  %v10614_v49 = vld [vmem:[%s12806_s3 + $0x158] sm:$0xff]  }
 0x15d   : > { %v9013_v2 = vpack.c.bf16 %v1876_v58, %v1875_v57  ;;  %v1874_v3 = vmax.f32 %v1838_v59, 0.0  ;;  %9651 = vmatprep.mubr.bf16.mxu1 %v10576_v62  ;;  %9729 = vmatprep.subr.bf16.mxu0 %v10578_v54  ;;  %v1859_v8 = vadd.f32 %v9593_v63, %v11496_v23  ;;  %v10607_v42 = vld [vmem:[%s12806_s3 + $0x1a8] sm:$0xff]   ;;  %v10612_v52 = vld [vmem:[#allocation2 + $0x98] sm:$0xff]   ;;  %v10626_v59 = vld [vmem:[%s12806_s3 + $0x140] sm:$0xff]  }
 0x15e   : > { %v1850_v5 = vpop.f32.mrf.mxu1  ;;  %v10622_v57 = vld [vmem:[%s12806_s3 + $0x148] sm:$0xff]  }
 0x15f   : > { %9040 = vst [vmem:[#allocation2 + $0x48] sm:$0xff] %v9013_v2   ;;  %v9008_v6 = vpack.c.bf16 %v1874_v3, %v1873_v1  ;;  %v1851_v9 = vadd.f32 %v11496_v23, %v1850_v5  ;;  %v1879_v18 = vmax.f32 %v1859_v8, 0.0  ;;  %v10623_v58 = vld [vmem:[%s12806_s3 + $0x188] sm:$0xff]   ;;  %v9613_v1 = vpop.f32.mrf.mxu0  ;;  %v10630_v2 = vld [vmem:[%s12806_s3 + $0x1f8] sm:$0xff]  }
 0x160   : > { %v10579_v10 = vld [vmem:[#allocation2 + $0x2c] sm:$0xff]   ;;  %v9594_v11 = vpop.f32.mrf.mxu1  ;;  %9730 = vmatpush3.bf16.msra.mxu0 %v10578_v54  ;;  %v10581_v15 = vld [vmem:[#allocation2 + $0x34] sm:$0xff]  }
 0x161   : > { %9039 = vst [vmem:[#allocation2 + $0x40] sm:$0xff] %v9008_v6   ;;  %v10580_v12 = vld [vmem:[#allocation2 + $0x30] sm:$0xff]   ;;  %v1877_v13 = vmax.f32 %v1851_v9, 0.0  ;;  %v1862_v14 = vadd.f32 %v9594_v11, %v11496_v23  ;;  %9683 = vmatprep.mubr.bf16.mxu0 %v10579_v10  ;;  %9731 = vmatprep.subr.bf16.mxu0 %v10583_v7  ;;  %v10613_v54 = vld [vmem:[#allocation2 + $0xf8] sm:$0xff]   ;;  %v2158_v4 = vpop.f32.mrf.mxu0  ;;  %v10632_v9 = vld [vmem:[#allocation2 + $0x140] sm:$0xff]  }
 0x162   : > { %v1853_v16 = vpop.f32.mrf.mxu1  ;;  %9652 = vmatmul.mubr.bf16.gmra.mxu1 %v10580_v12  ;;  %v10621_v62 = vld [vmem:[#allocation2 + $0x10c] sm:$0xff]   ;;  %v10631_v3 = vld [vmem:[%s12806_s3 + $0x238] sm:$0xff]  }
 0x163   : > { %v8896_v19 = vpack.c.bf16 %v1877_v13, %v1877_v13  ;;  %v1880_v20 = vmax.f32 %v1862_v14, 0.0  ;;  %v1854_v21 = vadd.f32 %v11496_v23, %v1853_v16  ;;  %9684 = vmatmul.mubr.bf16.gmra.mxu0 %v10581_v15  ;;  %v10624_v63 = vld [vmem:[#allocation2 + $0x12c] sm:$0xff]   ;;  %v10628_v8 = vld [vmem:[#allocation2 + $0x134] sm:$0xff]   ;;  %v10633_v14 = vld [vmem:[#allocation2 + $0xe0] sm:$0xff]   ;;  %v9614_v15 = vpop.f32.mrf.mxu0 }
 0x164   : > { %9732 = vmatpush3.bf16.msra.mxu0 %v10583_v7  ;;  %v9645_v5 = vpop.f32.mrf.mxu1  ;;  %v10634_v6 = vld [vmem:[%s12806_s3 + $0x1f0] sm:$0xff]  }
 0x165   : > { %1958 = vst [vmem:[#allocation2 + $0x54] sm:$0xf] %v8896_v19  ;;  %v8899_v24 = vpack.c.bf16 %v1880_v20, %v1880_v20  ;;  %v1878_v25 = vmax.f32 %v1854_v21, 0.0  ;;  %9733 = vmatprep.subr.bf16.mxu0 %v10585_v17  ;;  %v11643_v7 = vadd.f32 %v9645_v5, %v9613_v1  ;;  %v10635_v10 = vld [vmem:[%s12806_s3 + $0x230] sm:$0xff]   ;;  %v10639_v19 = vld [vmem:[%s12806_s3 + $0x228] sm:$0xff]   ;;  %v10642_v20 = vld [vmem:[%s12806_s3 + $0x1e0] sm:$0xff]  }
 0x166   : > { %v10589_v30 = vld [vmem:[#allocation2 + $0x48] sm:$0xff]   ;;  %v2351_v11 = vpop.f32.mrf.mxu1  ;;  %v10629_v12 = vld [vmem:[#allocation2 + $0xd4] sm:$0xff]  }
 0x167   : > { %1961 = vst [vmem:[#allocation2 + $0x60] sm:$0xf] %v8899_v24  ;;  %v9018_v27 = vpack.c.bf16 %v1879_v18, %v1878_v25  ;;  %v11648_v13 = vadd.f32 %v2351_v11, %v2158_v4  ;;  %v10638_v18 = vld [vmem:[%s12806_s3 + $0x1e8] sm:$0xff]   ;;  %v10640_v25 = vld [vmem:[#allocation2 + $0x154] sm:$0xff]  }
 0x168   : > { %v10586_v28 = vld [vmem:[#allocation2 + $0x3c] sm:$0xff]   ;;  %9734 = vmatpush3.bf16.msra.mxu0 %v10585_v17  ;;  %v10588_v23 = vld [vmem:[#allocation2 + $0x44] sm:$0xff]   ;;  %v9646_v16 = vpop.f32.mrf.mxu1  ;;  %v10682_v1 = vld [vmem:[%s12806_s3 + $0x290] sm:$0xff]  }
 0x169   : > { %v10587_v29 = vld [vmem:[#allocation2 + $0x40] sm:$0xff]   ;;  %9041 = vst [vmem:[#allocation2 + $0x58] sm:$0xff] %v9018_v27   ;;  %9655 = vmatprep.mubr.bf16.mxu1 %v10586_v28  ;;  %9735 = vmatprep.subr.bf16.mxu0 %v10591_v22  ;;  %v11650_v17 = vadd.f32 %v9646_v16, %v9614_v15  ;;  %v10636_v21 = vld [vmem:[#allocation2 + $0x148] sm:$0xff]   ;;  %v10646_v27 = vld [vmem:[%s12806_s3 + $0x1d8] sm:$0xff]  }
 0x16a   : > { %9687 = vmatprep.mubr.bf16.mxu0 %v10587_v29  ;;  %9656 = vmatmul.mubr.bf16.gmra.mxu1 %v10588_v23  ;;  %v10637_v24 = vld [vmem:[#allocation2 + $0xe8] sm:$0xff]   ;;  %v10647_v28 = vld [vmem:[%s12806_s3 + $0x218] sm:$0xff]   ;;  %v10693_v15 = vld [vmem:[#allocation2 + $0x20] sm:$0xff]  }
 0x16b   : > { %9688 = vmatmul.mubr.bf16.gmra.mxu0 %v10589_v30  ;;  %9707 = vmatprep.mubr.bf16.mxu1 %v10595_v26  ;;  %v10641_v26 = vld [vmem:[#allocation2 + $0xf4] sm:$0xff]   ;;  %v10644_v29 = vld [vmem:[#allocation2 + $0x15c] sm:$0xff]   ;;  %v10648_v30 = vld [vmem:[#allocation2 + $0x168] sm:$0xff]  }
 0x16c   : > { %9736 = vmatpush3.bf16.msra.mxu0 %v10591_v22  ;;  %9739 = vmatprep.mubr.bf16.mxu0 %v10592_v32  ;;  %v10643_v22 = vld [vmem:[%s12806_s3 + $0x220] sm:$0xff]   ;;  %v10649_v32 = vld [vmem:[#allocation2 + $0x108] sm:$0xff]   ;;  %v10684_v5 = vld [vmem:[#allocation2 + $0x174] sm:$0xff]  }
 0x16d   : > { %9737 = vmatprep.subr.bf16.mxu0 %v10594_v31  ;;  %v10645_v23 = vld [vmem:[#allocation2 + $0xfc] sm:$0xff]   ;;  %v10696_v16 = vld [vmem:[#allocation2 + $0x8c] sm:$0xff]  }
 0x16e   : > { %v10694_v11 = vld [vmem:[%s12806_s3 + $0x2f8] sm:$0xff]  }
 0x170   : > { %9738 = vmatpush3.bf16.msra.mxu0 %v10594_v31  ;;  %v10650_v31 = vld [vmem:[%s12806_s3 + $0x1d0] sm:$0xff]   ;;  %v10685_v4 = vld [vmem:[#allocation2 + $0x58] sm:$0xff]  }
 0x171   : > { %9787 = vmatprep.subr.bf16.mxu0 %v10599_v33 }
 0x172   : > { %9708 = vmatmul.mubr.bf16.vlgmr.msra.gmra.mxu1 %v10596_v34  ;;  %v10654_v34 = vld [vmem:[%s12806_s3 + $0x1c8] sm:$0xff]  }
 0x173   : > { %9740 = vmatmul.mubr.bf16.vlgmr.msra.gmra.mxu0 %v10597_v36  ;;  %9711 = vmatprep.mubr.bf16.mxu1 %v10600_v37  ;;  %v10652_v36 = vld [vmem:[#allocation2 + $0x170] sm:$0xff]  }
 0x174   : > { %9743 = vmatprep.mubr.bf16.mxu0 %v10601_v38  ;;  %9756 = vmatpush3.bf16.msra.mxu1 %v10923_v40  ;;  %v10653_v37 = vld [vmem:[#allocation2 + $0x110] sm:$0xff]  }
 0x175   : > { %9788 = vmatpush3.bf16.msra.mxu0 %v10599_v33  ;;  %9757 = vmatprep.subr.bf16.mxu1 %v10602_v35  ;;  %v10651_v33 = vld [vmem:[%s12806_s3 + $0x210] sm:$0xff]  }
 0x176   : > { %9789 = vmatprep.subr.bf16.mxu0 %v10603_v39  ;;  %v10656_v38 = vld [vmem:[#allocation2 + $0x130] sm:$0xff]  }
 0x177   : > { %v10657_v40 = vld [vmem:[#allocation2 + $0x14] sm:$0xff]  }
 0x178   : > { %9758 = vmatpush3.bf16.msra.mxu1 %v10602_v35  ;;  %v10655_v35 = vld [vmem:[%s12806_s3 + $0x208] sm:$0xff]  }
 0x179   : > { %9790 = vmatpush3.bf16.msra.mxu0 %v10603_v39  ;;  %9759 = vmatprep.subr.bf16.mxu1 %v10606_v41  ;;  %v10658_v39 = vld [vmem:[%s12806_s3 + $0x1c0] sm:$0xff]  }
 0x17a   : > { %9712 = vmatmul.mubr.bf16.gmra.mxu1 %v10604_v43  ;;  %9791 = vmatprep.subr.bf16.mxu0 %v10607_v42  ;;  %v10663_v43 = vld [vmem:[%s12806_s3 + $0x2b8] sm:$0xff]  }
 0x17b   : > { %9744 = vmatmul.mubr.bf16.gmra.mxu0 %v10605_v45  ;;  %9715 = vmatprep.mubr.bf16.mxu1 %v10608_v46  ;;  %v10661_v45 = vld [vmem:[#allocation2 + $0x1c] sm:$0xff]   ;;  %v10664_v46 = vld [vmem:[#allocation2 + $0x144] sm:$0xff]  }
 0x17c   : > { %9747 = vmatprep.mubr.bf16.mxu0 %v10609_v47  ;;  %9760 = vmatpush3.bf16.msra.mxu1 %v10606_v41  ;;  %v10659_v41 = vld [vmem:[%s12806_s3 + $0x200] sm:$0xff]   ;;  %v10666_v47 = vld [vmem:[%s12806_s3 + $0x270] sm:$0xff]  }
 0x17d   : > { %9792 = vmatpush3.bf16.msra.mxu0 %v10607_v42  ;;  %9761 = vmatprep.subr.bf16.mxu1 %v10610_v44  ;;  %v10662_v42 = vld [vmem:[%s12806_s3 + $0x278] sm:$0xff]  }
 0x17e   : > { %9793 = vmatprep.subr.bf16.mxu0 %v10611_v48 }
 0x180   : > { %9762 = vmatpush3.bf16.msra.mxu1 %v10610_v44  ;;  %v10660_v44 = vld [vmem:[#allocation2 + $0x138] sm:$0xff]  }
 0x181   : > { %9794 = vmatpush3.bf16.msra.mxu0 %v10611_v48  ;;  %9763 = vmatprep.subr.bf16.mxu1 %v10614_v49  ;;  %v10665_v48 = vld [vmem:[#allocation2 + $0x28] sm:$0xff]  }
 0x182   : > { %9716 = vmatmul.mubr.bf16.gmra.mxu1 %v10612_v52  ;;  %9795 = vmatprep.subr.bf16.mxu0 %v10615_v50  ;;  %v10668_v52 = vld [vmem:[#allocation2 + $0x14c] sm:$0xff]  }
 0x183   : > { %9748 = vmatmul.mubr.bf16.gmra.mxu0 %v10613_v54  ;;  %9719 = vmatprep.mubr.bf16.mxu1 %v10616_v55  ;;  %v10672_v54 = vld [vmem:[#allocation2 + $0x158] sm:$0xff]   ;;  %v10674_v55 = vld [vmem:[%s12806_s3 + $0x260] sm:$0xff]  }
 0x184   : > { %9751 = vmatprep.mubr.bf16.mxu0 %v10617_v56  ;;  %9764 = vmatpush3.bf16.msra.mxu1 %v10614_v49  ;;  %v10667_v49 = vld [vmem:[%s12806_s3 + $0x2b0] sm:$0xff]   ;;  %v10673_v56 = vld [vmem:[#allocation2 + $0x3c] sm:$0xff]  }
 0x185   : > { %9796 = vmatpush3.bf16.msra.mxu0 %v10615_v50  ;;  %9765 = vmatprep.subr.bf16.mxu1 %v10618_v51  ;;  %v10670_v50 = vld [vmem:[%s12806_s3 + $0x268] sm:$0xff]  }
 0x186   : > { %9797 = vmatprep.subr.bf16.mxu0 %v10619_v53 }
 0x188   : > { %9766 = vmatpush3.bf16.msra.mxu1 %v10618_v51  ;;  %v10671_v51 = vld [vmem:[%s12806_s3 + $0x2a8] sm:$0xff]  }
 0x189   : > { %9798 = vmatpush3.bf16.msra.mxu0 %v10619_v53  ;;  %9767 = vmatprep.subr.bf16.mxu1 %v10622_v57  ;;  %v10669_v53 = vld [vmem:[#allocation2 + $0x30] sm:$0xff]  }
 0x18a   : > { %9720 = vmatmul.mubr.bf16.gmra.mxu1 %v10620_v60  ;;  %9799 = vmatprep.subr.bf16.mxu0 %v10623_v58  ;;  %v10676_v60 = vld [vmem:[#allocation2 + $0x160] sm:$0xff]  }
 0x18b   : > { %9752 = vmatmul.mubr.bf16.gmra.mxu0 %v10621_v62  ;;  %9771 = vmatprep.mubr.bf16.mxu1 %v10624_v63  ;;  %v10677_v62 = vld [vmem:[#allocation2 + $0x44] sm:$0xff]   ;;  %v10680_v63 = vld [vmem:[#allocation2 + $0x16c] sm:$0xff]  }
 0x18c   : > { %9768 = vmatpush3.bf16.msra.mxu1 %v10622_v57  ;;  %9803 = vmatprep.mubr.bf16.mxu0 %v10625_v0  ;;  %v10675_v57 = vld [vmem:[%s12806_s3 + $0x2a0] sm:$0xff]   ;;  %v10681_v0 = vld [vmem:[%s12806_s3 + $0x250] sm:$0xff]  }
 0x18d   : > { %9800 = vmatpush3.bf16.msra.mxu0 %v10623_v58  ;;  %9769 = vmatprep.subr.bf16.mxu1 %v10626_v59  ;;  %v10678_v58 = vld [vmem:[%s12806_s3 + $0x258] sm:$0xff]  }
 0x18e   : > { %9801 = vmatprep.subr.bf16.mxu0 %v10627_v61 }
 0x190   : > { %9770 = vmatpush3.bf16.msra.mxu1 %v10626_v59  ;;  %v10679_v59 = vld [vmem:[%s12806_s3 + $0x298] sm:$0xff]  }
 0x191   : > { %9802 = vmatpush3.bf16.msra.mxu0 %v10627_v61  ;;  %9819 = vmatprep.subr.bf16.mxu1 %v10630_v2  ;;  %v10683_v61 = vld [vmem:[#allocation2 + $0x50] sm:$0xff]  }
 0x192   : > { %9851 = vmatprep.subr.bf16.mxu0 %v10631_v3 }
 0x193   : > { %9772 = vmatmul.mubr.bf16.vlgmr.msra.gmra.mxu1 %v10628_v8  ;;  %v10690_v8 = vld [vmem:[%s12806_s3 + $0x240] sm:$0xff]  }
 0x194   : > { %9804 = vmatmul.mubr.bf16.vlgmr.msra.gmra.mxu0 %v10629_v12  ;;  %9775 = vmatprep.mubr.bf16.mxu1 %v10632_v9  ;;  %v10689_v9 = vld [vmem:[#allocation2 + $0x18] sm:$0xff]  }
 0x195   : > { %9807 = vmatprep.mubr.bf16.mxu0 %v10633_v14  ;;  %9820 = vmatpush3.bf16.msra.mxu1 %v10630_v2  ;;  %v10686_v2 = vld [vmem:[%s12806_s3 + $0x248] sm:$0xff]   ;;  %v10695_v12 = vld [vmem:[%s12806_s3 + $0x338] sm:$0xff]   ;;  %v10692_v14 = vld [vmem:[#allocation2 + $0x80] sm:$0xff]  }
 0x196   : > { %9852 = vmatpush3.bf16.msra.mxu0 %v10631_v3  ;;  %9821 = vmatprep.subr.bf16.mxu1 %v10634_v6  ;;  %v10687_v3 = vld [vmem:[%s12806_s3 + $0x288] sm:$0xff]  }
 0x197   : > { %9853 = vmatprep.subr.bf16.mxu0 %v10635_v10 }
 0x199   : > { %9822 = vmatpush3.bf16.msra.mxu1 %v10634_v6  ;;  %v10688_v6 = vld [vmem:[#allocation2 + $0x78] sm:$0xff]  }
 0x19a   : > { %9854 = vmatpush3.bf16.msra.mxu0 %v10635_v10  ;;  %9823 = vmatprep.subr.bf16.mxu1 %v10638_v18  ;;  %v10691_v10 = vld [vmem:[%s12806_s3 + $0x280] sm:$0xff]  }
 0x19b   : > { %9776 = vmatmul.mubr.bf16.gmra.mxu1 %v10636_v21  ;;  %9855 = vmatprep.subr.bf16.mxu0 %v10639_v19  ;;  %v10702_v21 = vld [vmem:[%s12806_s3 + $0x2e8] sm:$0xff]  }
 0x19c   : > { %9808 = vmatmul.mubr.bf16.gmra.mxu0 %v10637_v24  ;;  %9779 = vmatprep.mubr.bf16.mxu1 %v10640_v25  ;;  %v10700_v24 = vld [vmem:[#allocation2 + $0x94] sm:$0xff]  }
 0x19d   : > { %9811 = vmatprep.mubr.bf16.mxu0 %v10641_v26  ;;  %9824 = vmatpush3.bf16.msra.mxu1 %v10638_v18  ;;  %v10698_v18 = vld [vmem:[%s12806_s3 + $0x2f0] sm:$0xff]   ;;  %v10704_v26 = vld [vmem:[#allocation2 + $0xa0] sm:$0xff]  }
 0x19e   : > { %9856 = vmatpush3.bf16.msra.mxu0 %v10639_v19  ;;  %9825 = vmatprep.subr.bf16.mxu1 %v10642_v20  ;;  %v10697_v19 = vld [vmem:[#allocation2 + $0x2c] sm:$0xff]   ;;  %v10701_v25 = vld [vmem:[#allocation2 + $0x34] sm:$0xff]  }
 0x19f   : > { %9857 = vmatprep.subr.bf16.mxu0 %v10643_v22 }
 0x1a1   : > { %9826 = vmatpush3.bf16.msra.mxu1 %v10642_v20  ;;  %v10699_v20 = vld [vmem:[%s12806_s3 + $0x330] sm:$0xff]  }
 0x1a2   : > { %9858 = vmatpush3.bf16.msra.mxu0 %v10643_v22  ;;  %9827 = vmatprep.subr.bf16.mxu1 %v10646_v27  ;;  %v10703_v22 = vld [vmem:[%s12806_s3 + $0x328] sm:$0xff]  }
 0x1a3   : > { %9780 = vmatmul.mubr.bf16.gmra.mxu1 %v10644_v29  ;;  %9859 = vmatprep.subr.bf16.mxu0 %v10647_v28  ;;  %v10707_v29 = vld [vmem:[%s12806_s3 + $0x320] sm:$0xff]  }
 0x1a4   : > { %9812 = vmatmul.mubr.bf16.gmra.mxu0 %v10645_v23  ;;  %9783 = vmatprep.mubr.bf16.mxu1 %v10648_v30  ;;  %v10710_v23 = vld [vmem:[%s12806_s3 + $0x2d8] sm:$0xff]  }
 0x1a5   : > { %9815 = vmatprep.mubr.bf16.mxu0 %v10649_v32  ;;  %9828 = vmatpush3.bf16.msra.mxu1 %v10646_v27  ;;  %v10706_v27 = vld [vmem:[%s12806_s3 + $0x2e0] sm:$0xff]   ;;  %v10711_v30 = vld [vmem:[%s12806_s3 + $0x318] sm:$0xff]   ;;  %v10708_v32 = vld [vmem:[#allocation2 + $0xa8] sm:$0xff]  }
 0x1a6   : > { %9860 = vmatpush3.bf16.msra.mxu0 %v10647_v28  ;;  %9829 = vmatprep.subr.bf16.mxu1 %v10650_v31  ;;  %v10705_v28 = vld [vmem:[#allocation2 + $0x40] sm:$0xff]  }
 0x1a7   : > { %9861 = vmatprep.subr.bf16.mxu0 %v10651_v33 }
 0x1a9   : > { %9830 = vmatpush3.bf16.msra.mxu1 %v10650_v31  ;;  %v10713_v31 = vld [vmem:[#allocation2 + $0xb4] sm:$0xff]  }
 0x1aa   : > { %9862 = vmatpush3.bf16.msra.mxu0 %v10651_v33  ;;  %9831 = vmatprep.subr.bf16.mxu1 %v10654_v34  ;;  %v10712_v33 = vld [vmem:[#allocation2 + $0x54] sm:$0xff]  }
 0x1ab   : > { %9784 = vmatmul.mubr.bf16.gmra.mxu1 %v10652_v36  ;;  %9863 = vmatprep.subr.bf16.mxu0 %v10655_v35  ;;  %v10715_v36 = vld [vmem:[%s12806_s3 + $0x310] sm:$0xff]  }
 0x1ac   : > { %9816 = vmatmul.mubr.bf16.gmra.mxu0 %v10653_v37  ;;  %9835 = vmatprep.mubr.bf16.mxu1 %v10656_v38  ;;  %v10718_v37 = vld [vmem:[%s12806_s3 + $0x2c8] sm:$0xff]  }
 0x1ad   : > { %9832 = vmatpush3.bf16.msra.mxu1 %v10654_v34  ;;  %9867 = vmatprep.mubr.bf16.mxu0 %v10657_v40  ;;  %v10709_v34 = vld [vmem:[#allocation2 + $0x48] sm:$0xff]   ;;  %v10717_v40 = vld [vmem:[#allocation2 + $0x5c] sm:$0xff]  }
 0x1ae   : > { %9864 = vmatpush3.bf16.msra.mxu0 %v10655_v35  ;;  %9833 = vmatprep.subr.bf16.mxu1 %v10658_v39  ;;  %v10714_v35 = vld [vmem:[%s12806_s3 + $0x2d0] sm:$0xff]   ;;  %v10719_v38 = vld [vmem:[%s12806_s3 + $0x308] sm:$0xff]  }
 0x1af   : > { %9865 = vmatprep.subr.bf16.mxu0 %v10659_v41 }
 0x1b1   : > { %9834 = vmatpush3.bf16.msra.mxu1 %v10658_v39  ;;  %v10716_v39 = vld [vmem:[#allocation2 + $0xbc] sm:$0xff]  }
 0x1b2   : > { %9866 = vmatpush3.bf16.msra.mxu0 %v10659_v41  ;;  %9883 = vmatprep.subr.bf16.mxu1 %v10662_v42  ;;  %v10720_v41 = vld [vmem:[#allocation2 + $0x7c] sm:$0xff]  }
 0x1b3   : > { %9915 = vmatprep.subr.bf16.mxu0 %v10663_v43 }
 0x1b4   : > { %9836 = vmatmul.mubr.bf16.vlgmr.msra.gmra.mxu1 %v10660_v44  ;;  %v10723_v44 = vld [vmem:[%s12806_s3 + $0x300] sm:$0xff]  }
 0x1b5   : > { %9868 = vmatmul.mubr.bf16.vlgmr.msra.gmra.mxu0 %v10661_v45  ;;  %9839 = vmatprep.mubr.bf16.mxu1 %v10664_v46  ;;  %v10726_v45 = vld [vmem:[%s12806_s3 + $0x378] sm:$0xff]  }
 0x1b6   : > { %9871 = vmatprep.mubr.bf16.mxu0 %v10665_v48  ;;  %9884 = vmatpush3.bf16.msra.mxu1 %v10662_v42  ;;  %v10722_v42 = vld [vmem:[%s12806_s3 + $0x2c0] sm:$0xff]   ;;  %v10727_v46 = vld [vmem:[%s12806_s3 + $0x3b8] sm:$0xff]  }
 0x1b7   : > { %9916 = vmatpush3.bf16.msra.mxu0 %v10663_v43  ;;  %9885 = vmatprep.subr.bf16.mxu1 %v10666_v47  ;;  %v10721_v43 = vld [vmem:[#allocation2 + $0xdc] sm:$0xff]   ;;  %v10725_v48 = vld [vmem:[#allocation2 + $0xe4] sm:$0xff]  }
 0x1b8   : > { %9917 = vmatprep.subr.bf16.mxu0 %v10667_v49 }
 0x1ba   : > { %9886 = vmatpush3.bf16.msra.mxu1 %v10666_v47  ;;  %v10724_v47 = vld [vmem:[#allocation2 + $0x84] sm:$0xff]  }
 0x1bb   : > { %9918 = vmatpush3.bf16.msra.mxu0 %v10667_v49  ;;  %9887 = vmatprep.subr.bf16.mxu1 %v10670_v50  ;;  %v10728_v49 = vld [vmem:[#allocation2 + $0x90] sm:$0xff]  }
 0x1bc   : > { %9840 = vmatmul.mubr.bf16.gmra.mxu1 %v10668_v52  ;;  %9919 = vmatprep.subr.bf16.mxu0 %v10671_v51  ;;  %v10731_v52 = vld [vmem:[%s12806_s3 + $0x3b0] sm:$0xff]  }
 0x1bd   : > { %9872 = vmatmul.mubr.bf16.gmra.mxu0 %v10669_v53  ;;  %9843 = vmatprep.mubr.bf16.mxu1 %v10672_v54  ;;  %v11796_v53 = vpop.f32.mrf.mxu0  ;;  %v10734_v54 = vld [vmem:[%s12806_s3 + $0x368] sm:$0xff]  }
 0x1be   : > { %9875 = vmatprep.mubr.bf16.mxu0 %v10673_v56  ;;  %9888 = vmatpush3.bf16.msra.mxu1 %v10670_v50  ;;  %v10730_v50 = vld [vmem:[%s12806_s3 + $0x370] sm:$0xff]  }
 0x1bf   : > { %9920 = vmatpush3.bf16.msra.mxu0 %v10671_v51  ;;  %9889 = vmatprep.subr.bf16.mxu1 %v10674_v55  ;;  %v10729_v51 = vld [vmem:[#allocation2 + $0xf0] sm:$0xff]  }
 0x1c0   : > { %9921 = vmatprep.subr.bf16.mxu0 %v10675_v57 }
 0x1c2   : > { %9890 = vmatpush3.bf16.msra.mxu1 %v10674_v55  ;;  %v10735_v55 = vld [vmem:[%s12806_s3 + $0x3a8] sm:$0xff]  }
 0x1c3   : > { %9922 = vmatpush3.bf16.msra.mxu0 %v10675_v57  ;;  %9891 = vmatprep.subr.bf16.mxu1 %v10678_v58  ;;  %v10732_v57 = vld [vmem:[#allocation2 + $0x98] sm:$0xff]  }
 0x1c4   : > { %9844 = vmatmul.mubr.bf16.gmra.mxu1 %v10676_v60  ;;  %9923 = vmatprep.subr.bf16.mxu0 %v10679_v59 }
 0x1c5   : > { %9876 = vmatmul.mubr.bf16.gmra.mxu0 %v10677_v62  ;;  %9847 = vmatprep.mubr.bf16.mxu1 %v10680_v63  ;;  %v10737_v62 = vld [vmem:[#allocation2 + $0x104] sm:$0xff]  }
 0x1c6   : > { %9892 = vmatpush3.bf16.msra.mxu1 %v10678_v58  ;;  %9879 = vmatprep.mubr.bf16.mxu0 %v10683_v61  ;;  %v10733_v58 = vld [vmem:[#allocation2 + $0xf8] sm:$0xff]   ;;  %v10738_v61 = vld [vmem:[%s12806_s3 + $0x360] sm:$0xff]  }
 0x1c7   : > { %9924 = vmatpush3.bf16.msra.mxu0 %v10679_v59  ;;  %9893 = vmatprep.subr.bf16.mxu1 %v10681_v0  ;;  %v10736_v59 = vld [vmem:[#allocation2 + $0xa4] sm:$0xff]  }
 0x1c8   : > { %9925 = vmatprep.subr.bf16.mxu0 %v10682_v1  ;;  %v10739_v63 = vld [vmem:[%s12806_s3 + $0x3a0] sm:$0xff]  }
 0x1ca   : > { %9894 = vmatpush3.bf16.msra.mxu1 %v10681_v0 }
 0x1cb   : > { %9926 = vmatpush3.bf16.msra.mxu0 %v10682_v1  ;;  %9895 = vmatprep.subr.bf16.mxu1 %v10686_v2 }
 0x1cc   : > { %9848 = vmatmul.mubr.bf16.gmra.mxu1 %v10684_v5  ;;  %9927 = vmatprep.subr.bf16.mxu0 %v10687_v3  ;;  %v10740_v5 = vld [vmem:[#allocation2 + $0xac] sm:$0xff]  }
 0x1cd   : > { %9880 = vmatmul.mubr.bf16.gmra.mxu0 %v10685_v4  ;;  %9899 = vmatprep.mubr.bf16.mxu1 %v10688_v6  ;;  %v10747_v6 = vld [vmem:[#allocation2 + $0x118] sm:$0xff]  }
 0x1ce   : > { %9896 = vmatpush3.bf16.msra.mxu1 %v10686_v2  ;;  %9931 = vmatprep.mubr.bf16.mxu0 %v10689_v9  ;;  %v10742_v2 = vld [vmem:[%s12806_s3 + $0x358] sm:$0xff]  }
 0x1cf   : > { %9928 = vmatpush3.bf16.msra.mxu0 %v10687_v3  ;;  %9897 = vmatprep.subr.bf16.mxu1 %v10690_v8  ;;  %v10743_v3 = vld [vmem:[%s12806_s3 + $0x398] sm:$0xff]  }
 0x1d0   : > { %9929 = vmatprep.subr.bf16.mxu0 %v10691_v10  ;;  %v10744_v9 = vld [vmem:[#allocation2 + $0xb8] sm:$0xff]  }
 0x1d2   : > { %9898 = vmatpush3.bf16.msra.mxu1 %v10690_v8  ;;  %v10741_v8 = vld [vmem:[#allocation2 + $0x10c] sm:$0xff]  }
 0x1d3   : > { %9930 = vmatpush3.bf16.msra.mxu0 %v10691_v10  ;;  %9947 = vmatprep.subr.bf16.mxu1 %v10694_v11 }
 0x1d4   : > { %9979 = vmatprep.subr.bf16.mxu0 %v10695_v12 }
 0x1d5   : > { %9900 = vmatmul.mubr.bf16.vlgmr.msra.gmra.mxu1 %v10692_v14 }
 0x1d6   : > { %9932 = vmatmul.mubr.bf16.vlgmr.msra.gmra.mxu0 %v10693_v15  ;;  %9903 = vmatprep.mubr.bf16.mxu1 %v10696_v16  ;;  %v10750_v16 = vld [vmem:[%s12806_s3 + $0x348] sm:$0xff]  }
 0x1d7   : > { %9935 = vmatprep.mubr.bf16.mxu0 %v10697_v19  ;;  %9948 = vmatpush3.bf16.msra.mxu1 %v10694_v11  ;;  %v10745_v11 = vld [vmem:[%s12806_s3 + $0x350] sm:$0xff]  }
 0x1d8   : > { %9980 = vmatpush3.bf16.msra.mxu0 %v10695_v12  ;;  %9949 = vmatprep.subr.bf16.mxu1 %v10698_v18  ;;  %v10746_v12 = vld [vmem:[%s12806_s3 + $0x390] sm:$0xff]  }
 0x1d9   : > { %9981 = vmatprep.subr.bf16.mxu0 %v10699_v20 }
 0x1db   : > { %9950 = vmatpush3.bf16.msra.mxu1 %v10698_v18  ;;  %v10751_v18 = vld [vmem:[%s12806_s3 + $0x388] sm:$0xff]  }
 0x1dc   : > { %9982 = vmatpush3.bf16.msra.mxu0 %v10699_v20  ;;  %9951 = vmatprep.subr.bf16.mxu1 %v10702_v21  ;;  %v10749_v20 = vld [vmem:[#allocation2 + $0x120] sm:$0xff]  }
 0x1dd   : > { %9904 = vmatmul.mubr.bf16.gmra.mxu1 %v10700_v24  ;;  %9983 = vmatprep.subr.bf16.mxu0 %v10703_v22 }
 0x1de   : > { %9936 = vmatmul.mubr.bf16.gmra.mxu0 %v10701_v25  ;;  %9907 = vmatprep.mubr.bf16.mxu1 %v10704_v26  ;;  %v10754_v25 = vld [vmem:[%s12806_s3 + $0x340] sm:$0xff]  }
 0x1df   : > { %9939 = vmatprep.mubr.bf16.mxu0 %v10705_v28  ;;  %9952 = vmatpush3.bf16.msra.mxu1 %v10702_v21  ;;  %v10748_v21 = vld [vmem:[#allocation2 + $0xc0] sm:$0xff]  }
 0x1e0   : > { %9984 = vmatpush3.bf16.msra.mxu0 %v10703_v22  ;;  %9953 = vmatprep.subr.bf16.mxu1 %v10706_v27  ;;  %v10752_v22 = vld [vmem:[#allocation2 + $0x140] sm:$0xff]  }
 0x1e1   : > { %9985 = vmatprep.subr.bf16.mxu0 %v10707_v29  ;;  %v10753_v26 = vld [vmem:[#allocation2 + $0xe0] sm:$0xff]  }
 0x1e3   : > { %9954 = vmatpush3.bf16.msra.mxu1 %v10706_v27  ;;  %v10755_v27 = vld [vmem:[%s12806_s3 + $0x380] sm:$0xff]  }
 0x1e4   : > { %9986 = vmatpush3.bf16.msra.mxu0 %v10707_v29  ;;  %9955 = vmatprep.subr.bf16.mxu1 %v10710_v23 }
 0x1e5   : > { %9908 = vmatmul.mubr.bf16.gmra.mxu1 %v10708_v32  ;;  %9987 = vmatprep.subr.bf16.mxu0 %v10711_v30  ;;  %v10756_v32 = vld [vmem:[#allocation2 + $0x148] sm:$0xff]  }
 0x1e6   : > { %9940 = vmatmul.mubr.bf16.gmra.mxu0 %v10709_v34  ;;  %9911 = vmatprep.mubr.bf16.mxu1 %v10713_v31  ;;  %v10757_v34 = vld [vmem:[#allocation2 + $0xe8] sm:$0xff]  }
 0x1e7   : > { %9943 = vmatprep.mubr.bf16.mxu0 %v10712_v33  ;;  %9956 = vmatpush3.bf16.msra.mxu1 %v10710_v23  ;;  %v10758_v23 = vld [vmem:[%s12806_s3 + $0x3f8] sm:$0xff]  }
 0x1e8   : > { %9988 = vmatpush3.bf16.msra.mxu0 %v10711_v30  ;;  %9957 = vmatprep.subr.bf16.mxu1 %v10714_v35 }
 0x1e9   : > { %9989 = vmatprep.subr.bf16.mxu0 %v10715_v36 }
 0x1eb   : > { %9958 = vmatpush3.bf16.msra.mxu1 %v10714_v35  ;;  %v10759_v35 = vld [vmem:[#allocation2 + $0x154] sm:$0xff]  }
 0x1ec   : > { %9990 = vmatpush3.bf16.msra.mxu0 %v10715_v36  ;;  %9959 = vmatprep.subr.bf16.mxu1 %v10718_v37 }
 0x1ed   : > { %9912 = vmatmul.mubr.bf16.gmra.mxu1 %v10716_v39  ;;  %9991 = vmatprep.subr.bf16.mxu0 %v10719_v38 }
 0x1ee   : > { %9944 = vmatmul.mubr.bf16.gmra.mxu0 %v10717_v40  ;;  %9963 = vmatprep.mubr.bf16.mxu1 %v10720_v41  ;;  %v11870_v40 = vpop.f32.mrf.mxu1 }
 0x1ef   : > { %9960 = vmatpush3.bf16.msra.mxu1 %v10718_v37  ;;  %9995 = vmatprep.mubr.bf16.mxu0 %v10721_v43  ;;  %v10761_v37 = vld [vmem:[%s12806_s3 + $0x3f0] sm:$0xff]  }
 0x1f0   : > { %9992 = vmatpush3.bf16.msra.mxu0 %v10719_v38  ;;  %9961 = vmatprep.subr.bf16.mxu1 %v10722_v42  ;;  %v10760_v38 = vld [vmem:[#allocation2 + $0xf4] sm:$0xff]  }
 0x1f1   : > { %9993 = vmatprep.subr.bf16.mxu0 %v10723_v44 }
 0x1f3   : > { %9962 = vmatpush3.bf16.msra.mxu1 %v10722_v42  ;;  %v10764_v42 = vld [vmem:[%s12806_s3 + $0x3e8] sm:$0xff]  }
 0x1f4   : > { %9994 = vmatpush3.bf16.msra.mxu0 %v10723_v44  ;;  %10011 = vmatprep.subr.bf16.mxu1 %v10726_v45 }
 0x1f5   : > { %10043 = vmatprep.subr.bf16.mxu0 %v10727_v46 }
 0x1f6   : > { %9964 = vmatmul.mubr.bf16.vlgmr.msra.gmra.mxu1 %v10724_v47  ;;  %v10762_v47 = vld [vmem:[#allocation2 + $0x15c] sm:$0xff]  }
 0x1f7   : > { %9996 = vmatmul.mubr.bf16.vlgmr.msra.gmra.mxu0 %v10725_v48  ;;  %9967 = vmatprep.mubr.bf16.mxu1 %v10728_v49  ;;  %v10763_v49 = vld [vmem:[#allocation2 + $0xfc] sm:$0xff]  }
 0x1f8   : > { %9999 = vmatprep.mubr.bf16.mxu0 %v10729_v51  ;;  %10012 = vmatpush3.bf16.msra.mxu1 %v10726_v45 }
 0x1f9   : > { %10044 = vmatpush3.bf16.msra.mxu0 %v10727_v46  ;;  %10013 = vmatprep.subr.bf16.mxu1 %v10730_v50 }
 0x1fa   : > { %10045 = vmatprep.subr.bf16.mxu0 %v10731_v52 }
 0x1fb   : > { %v11804_v56 = vpop.f32.mrf.mxu0 }
 0x1fc   : > { %10014 = vmatpush3.bf16.msra.mxu1 %v10730_v50  ;;  %v10765_v50 = vld [vmem:[#allocation2 + $0x168] sm:$0xff]  }
 0x1fd   : > { %10046 = vmatpush3.bf16.msra.mxu0 %v10731_v52  ;;  %10015 = vmatprep.subr.bf16.mxu1 %v10734_v54  ;;  %v11806_v60 = vpop.f32.mrf.mxu0  ;;  %v10767_v52 = vld [vmem:[%s12806_s3 + $0x3e0] sm:$0xff]  }
 0x1fe   : > { %9968 = vmatmul.mubr.bf16.gmra.mxu1 %v10732_v57  ;;  %10047 = vmatprep.subr.bf16.mxu0 %v10735_v55 }
 0x1ff   : > { %10000 = vmatmul.mubr.bf16.gmra.mxu0 %v10733_v58  ;;  %9971 = vmatprep.mubr.bf16.mxu1 %v10736_v59  ;;  %v11814_v0 = vpop.f32.mrf.mxu0 }
 0x200   : > { %10003 = vmatprep.mubr.bf16.mxu0 %v10737_v62  ;;  %10016 = vmatpush3.bf16.msra.mxu1 %v10734_v54  ;;  %v10766_v54 = vld [vmem:[#allocation2 + $0x108] sm:$0xff]  }
 0x201   : > { %10048 = vmatpush3.bf16.msra.mxu0 %v10735_v55  ;;  %10017 = vmatprep.subr.bf16.mxu1 %v10738_v61  ;;  %v11816_v1 = vpop.f32.mrf.mxu0 }
 0x202   : > { %10049 = vmatprep.subr.bf16.mxu0 %v10739_v63 }
 0x203   : > { %v11824_v4 = vpop.f32.mrf.mxu0 }
 0x204   : > { %10018 = vmatpush3.bf16.msra.mxu1 %v10738_v61 }
 0x205   : > { %10050 = vmatpush3.bf16.msra.mxu0 %v10739_v63  ;;  %10019 = vmatprep.subr.bf16.mxu1 %v10742_v2  ;;  %v11826_v10 = vpop.f32.mrf.mxu0  ;;  %v10770_v63 = vld [vmem:[%s12806_s3 + $0x3d8] sm:$0xff]  }
 0x206   : > { %9972 = vmatmul.mubr.bf16.gmra.mxu1 %v10740_v5  ;;  %10051 = vmatprep.subr.bf16.mxu0 %v10743_v3  ;;  %v10772_v5 = vld [vmem:[#allocation2 + $0x17c] sm:$0xff]  }
 0x207   : > { %10004 = vmatmul.mubr.bf16.gmra.mxu0 %v10741_v8  ;;  %9975 = vmatprep.mubr.bf16.mxu1 %v10744_v9  ;;  %v11834_v14 = vpop.f32.mrf.mxu0  ;;  %v10768_v8 = vld [vmem:[#allocation2 + $0x170] sm:$0xff]  }
 0x208   : > { %10020 = vmatpush3.bf16.msra.mxu1 %v10742_v2  ;;  %10007 = vmatprep.mubr.bf16.mxu0 %v10747_v6 }
 0x209   : > { %10052 = vmatpush3.bf16.msra.mxu0 %v10743_v3  ;;  %10021 = vmatprep.subr.bf16.mxu1 %v10745_v11  ;;  %v11836_v15 = vpop.f32.mrf.mxu0 }
 0x20a   : > { %10053 = vmatprep.subr.bf16.mxu0 %v10746_v12 }
 0x20b   : > { %v11844_v19 = vpop.f32.mrf.mxu0 }
 0x20c   : > { %10022 = vmatpush3.bf16.msra.mxu1 %v10745_v11  ;;  %v10775_v11 = vld [vmem:[#allocation2 + $0x11c] sm:$0xff]  }
 0x20d   : > { %10054 = vmatpush3.bf16.msra.mxu0 %v10746_v12  ;;  %10023 = vmatprep.subr.bf16.mxu1 %v10750_v16  ;;  %v11846_v24 = vpop.f32.mrf.mxu0  ;;  %v10769_v12 = vld [vmem:[#allocation2 + $0x110] sm:$0xff]  }
 0x20e   : > { %9976 = vmatmul.mubr.bf16.gmra.mxu1 %v10748_v21  ;;  %10055 = vmatprep.subr.bf16.mxu0 %v10751_v18 }
 0x20f   : > { %10008 = vmatmul.mubr.bf16.gmra.mxu0 %v10749_v20  ;;  %10027 = vmatprep.mubr.bf16.mxu1 %v10752_v22  ;;  %v11854_v28 = vpop.f32.mrf.mxu0 }
 0x210   : > { %10024 = vmatpush3.bf16.msra.mxu1 %v10750_v16  ;;  %10059 = vmatprep.mubr.bf16.mxu0 %v10753_v26 }
 0x211   : > { %10056 = vmatpush3.bf16.msra.mxu0 %v10751_v18  ;;  %10025 = vmatprep.subr.bf16.mxu1 %v10754_v25  ;;  %v11856_v29 = vpop.f32.mrf.mxu0  ;;  %v10771_v18 = vld [vmem:[%s12806_s3 + $0x3d0] sm:$0xff]  }
 0x212   : > { %10057 = vmatprep.subr.bf16.mxu0 %v10755_v27 }
 0x213   : > { %v9677_v30 = vpop.f32.mrf.mxu0 }
 0x214   : > { %10026 = vmatpush3.bf16.msra.mxu1 %v10754_v25  ;;  %v11862_v31 = vadd.f32 %v9677_v30, %v11643_v7 }
 0x215   : > { %10058 = vmatpush3.bf16.msra.mxu0 %v10755_v27  ;;  %10075 = vmatprep.subr.bf16.mxu1 %v10758_v23  ;;  %v2578_v33 = vpop.f32.mrf.mxu0 }
 0x216   : > { %v11865_v36 = vadd.f32 %v2578_v33, %v11648_v13 }
 0x217   : > { %10028 = vmatmul.mubr.bf16.vlgmr.msra.gmra.mxu1 %v10756_v32  ;;  %v9678_v39 = vpop.f32.mrf.mxu0  ;;  %v10773_v32 = vld [vmem:[#allocation2 + $0x184] sm:$0xff]  }
 0x218   : > { %10060 = vmatmul.mubr.bf16.vlgmr.msra.gmra.mxu0 %v10757_v34  ;;  %10031 = vmatprep.mubr.bf16.mxu1 %v10759_v35  ;;  %v11873_v7 = vadd.f32 %v9678_v39, %v11650_v17  ;;  %v10777_v34 = vld [vmem:[#allocation2 + $0x124] sm:$0xff]  }
 0x219   : > { %10063 = vmatprep.mubr.bf16.mxu0 %v10760_v38  ;;  %10076 = vmatpush3.bf16.msra.mxu1 %v10758_v23  ;;  %v11875_v41 = vpop.f32.mrf.mxu0  ;;  %v10774_v23 = vld [vmem:[%s12806_s3 + $0x3c8] sm:$0xff]  }
 0x21a   : > { %10077 = vmatprep.subr.bf16.mxu1 %v10761_v37  ;;  %v9649_v13 = vpop.f32.mrf.mxu1  ;;  %v10776_v38 = vld [vmem:[#allocation2 + $0x144] sm:$0xff]  }
 0x21b   : > { %v2376_v43 = vadd.f32 %v9649_v13, %v11804_v56  ;;  %v9681_v44 = vpop.f32.mrf.mxu0  ;;  %v10778_v13 = vld [vmem:[%s12806_s3 + $0x3c0] sm:$0xff]  }
 0x21c   : > { %v2367_v45 = vpop.f32.mrf.mxu1 }
 0x21d   : > { %10078 = vmatpush3.bf16.msra.mxu1 %v10761_v37  ;;  %v11881_v46 = vadd.f32 %v9681_v44, %v2376_v43  ;;  %v2368_v17 = vadd.f32 %v2367_v45, %v11806_v60  ;;  %v2594_v48 = vpop.f32.mrf.mxu0 }
 0x21e   : > { %10079 = vmatprep.subr.bf16.mxu1 %v10764_v42  ;;  %v9650_v51 = vpop.f32.mrf.mxu1 }
 0x21f   : > { %10032 = vmatmul.mubr.bf16.gmra.mxu1 %v10762_v47  ;;  %v11887_v55 = vadd.f32 %v2594_v48, %v2368_v17  ;;  %v2379_v56 = vadd.f32 %v9650_v51, %v11814_v0  ;;  %v9682_v57 = vpop.f32.mrf.mxu0 }
 0x220   : > { %10064 = vmatmul.mubr.bf16.gmra.mxu0 %v10763_v49  ;;  %10035 = vmatprep.mubr.bf16.mxu1 %v10765_v50  ;;  %v2370_v58 = vpop.f32.mrf.mxu1 }
 0x221   : > { %10067 = vmatprep.mubr.bf16.mxu0 %v10766_v54  ;;  %10080 = vmatpush3.bf16.msra.mxu1 %v10764_v42  ;;  %v11890_v59 = vadd.f32 %v9682_v57, %v2379_v56  ;;  %v11893_v60 = vadd.f32 %v2370_v58, %v11816_v1  ;;  %v11895_v61 = vpop.f32.mrf.mxu0  ;;  %v10779_v54 = vld [vmem:[#allocation2 + $0x14c] sm:$0xff]   ;;  %v10780_v57 = vld [vmem:[#allocation2 + $0x158] sm:$0xff]  }
 0x222   : > { %10081 = vmatprep.subr.bf16.mxu1 %v10767_v52  ;;  %v9653_v62 = vpop.f32.mrf.mxu1 }
 0x223   : > { %v2392_v0 = vadd.f32 %v9653_v62, %v11824_v4  ;;  %v9685_v2 = vpop.f32.mrf.mxu0 }
 0x224   : > { %v2383_v3 = vpop.f32.mrf.mxu1 }
 0x225   : > { %10082 = vmatpush3.bf16.msra.mxu1 %v10767_v52  ;;  %v11901_v6 = vadd.f32 %v9685_v2, %v2392_v0  ;;  %v2384_v1 = vadd.f32 %v2383_v3, %v11826_v10  ;;  %v2610_v9 = vpop.f32.mrf.mxu0 }
 0x226   : > { %10083 = vmatprep.subr.bf16.mxu1 %v10770_v63  ;;  %v9654_v16 = vpop.f32.mrf.mxu1 }
 0x227   : > { %10036 = vmatmul.mubr.bf16.gmra.mxu1 %v10768_v8  ;;  %v11907_v4 = vadd.f32 %v2610_v9, %v2384_v1  ;;  %v2395_v20 = vadd.f32 %v9654_v16, %v11834_v14  ;;  %v9686_v21 = vpop.f32.mrf.mxu0 }
 0x228   : > { %10068 = vmatmul.mubr.bf16.gmra.mxu0 %v10769_v12  ;;  %v2386_v22 = vpop.f32.mrf.mxu1  ;;  %10039 = vmatprep.mubr.bf16.mxu1 %v10772_v5  ;;  %v10782_v12 = vld [vmem:[#allocation2 + $0x16c] sm:$0xff]  }
 0x229   : > { %10084 = vmatpush3.bf16.msra.mxu1 %v10770_v63  ;;  %v11910_v10 = vadd.f32 %v9686_v21, %v2395_v20  ;;  %v11913_v25 = vadd.f32 %v2386_v22, %v11836_v15  ;;  %v11915_v26 = vpop.f32.mrf.mxu0  ;;  %10071 = vmatprep.mubr.bf16.mxu0 %v10775_v11 }
 0x22a   : > { %10085 = vmatprep.subr.bf16.mxu1 %v10771_v18  ;;  %v9657_v27 = vpop.f32.mrf.mxu1 }
 0x22b   : > { %v2408_v14 = vadd.f32 %v9657_v27, %v11844_v19  ;;  %v9689_v30 = vpop.f32.mrf.mxu0 }
 0x22c   : > { %v2399_v33 = vpop.f32.mrf.mxu1 }
 0x22d   : > { %10086 = vmatpush3.bf16.msra.mxu1 %v10771_v18  ;;  %v11921_v35 = vadd.f32 %v9689_v30, %v2408_v14  ;;  %v2400_v15 = vadd.f32 %v2399_v33, %v11846_v24  ;;  %v2626_v37 = vpop.f32.mrf.mxu0 }
 0x22e   : > { %10087 = vmatprep.subr.bf16.mxu1 %v10774_v23  ;;  %v9658_v39 = vpop.f32.mrf.mxu1 }
 0x22f   : > { %10040 = vmatmul.mubr.bf16.gmra.mxu1 %v10773_v32  ;;  %v11927_v42 = vadd.f32 %v2626_v37, %v2400_v15  ;;  %v2411_v19 = vadd.f32 %v9658_v39, %v11854_v28  ;;  %v9690_v43 = vpop.f32.mrf.mxu0  ;;  %v10783_v15 = vld [vmem:[#allocation2 + $0x174] sm:$0xff]  }
 0x230   : > { %10091 = vmatprep.mubr.bf16.mxu1 %v10776_v38  ;;  %10072 = vmatmul.mubr.bf16.gmra.mxu0 %v10777_v34  ;;  %v2402_v44 = vpop.f32.mrf.mxu1  ;;  %v10784_v34 = vld [vmem:[#allocation2 + $0x180] sm:$0xff]  }
 0x231   : > { %10088 = vmatpush3.bf16.msra.mxu1 %v10774_v23  ;;  %v11930_v45 = vadd.f32 %v9690_v43, %v2411_v19  ;;  %v11933_v24 = vadd.f32 %v2402_v44, %v11856_v29  ;;  %v11935_v47 = vpop.f32.mrf.mxu0 }
 0x232   : > { %10089 = vmatprep.subr.bf16.mxu1 %v10778_v13  ;;  %v9709_v17 = vpop.f32.mrf.mxu1 }
 0x233   : > { %v2886_v48 = vadd.f32 %v9709_v17, %v11862_v31  ;;  %v9741_v49 = vpop.f32.mrf.mxu0 }
 0x234   : > { %v2821_v50 = vpop.f32.mrf.mxu1 }
 0x235   : > { %10090 = vmatpush3.bf16.msra.mxu1 %v10778_v13  ;;  %v11938_v28 = vadd.f32 %v9741_v49, %v2886_v48  ;;  %v2884_v51 = vadd.f32 %v2821_v50, %v11865_v36  ;;  %v3064_v52 = vpop.f32.mrf.mxu0 }
 0x236   : > { %v9710_v56 = vpop.f32.mrf.mxu1 }
 0x237   : > { %v11941_v58 = vadd.f32 %v3064_v52, %v2884_v51  ;;  %v2887_v29 = vadd.f32 %v9710_v56, %v11873_v7  ;;  %v9742_v62 = vpop.f32.mrf.mxu0  ;;  %v10781_v7 = vld [vmem:[#allocation2 + $0x160] sm:$0xff]  }
 0x238   : > { %10092 = vmatmul.mubr.bf16.vlgmr.msra.gmra.mxu1 %v10779_v54  ;;  %v11944_v63 = vpop.f32.mrf.mxu1 }
 0x239   : > { %10095 = vmatprep.mubr.bf16.mxu1 %v10780_v57  ;;  %v11946_v31 = vadd.f32 %v9742_v62, %v2887_v29  ;;  %v11948_v0 = vpop.f32.mrf.mxu0 }
 0x23a   : > { %v9713_v2 = vpop.f32.mrf.mxu1 }
 0x23b   : > { %v2890_v36 = vadd.f32 %v9713_v2, %v11881_v46  ;;  %v9745_v3 = vpop.f32.mrf.mxu0 }
 0x23c   : > { %v2837_v5 = vpop.f32.mrf.mxu1 }
 0x23d   : > { %v11951_v8 = vadd.f32 %v9745_v3, %v2890_v36  ;;  %v2888_v1 = vadd.f32 %v2837_v5, %v11887_v55  ;;  %v3080_v9 = vpop.f32.mrf.mxu0 }
 0x23e   : > { %v9714_v11 = vpop.f32.mrf.mxu1 }
 0x23f   : > { %v11954_v16 = vadd.f32 %v3080_v9, %v2888_v1  ;;  %v2891_v18 = vadd.f32 %v9714_v11, %v11890_v59  ;;  %v9746_v20 = vpop.f32.mrf.mxu0 }
 0x240   : > { %10096 = vmatmul.mubr.bf16.gmra.mxu1 %v10781_v7  ;;  %v2840_v21 = vpop.f32.mrf.mxu1 }
 0x241   : > { %10099 = vmatprep.mubr.bf16.mxu1 %v10782_v12  ;;  %v3134_v22 = vadd.f32 %v9746_v20, %v2891_v18  ;;  %v3083_v46 = vpop.f32.mrf.mxu0  ;;  %v2646_v18 = vadd.f32 %v11895_v61, %v11893_v60 }
 0x242   : > { %v9717_v27 = vpop.f32.mrf.mxu1 }
 0x243   : > { %v2894_v23 = vadd.f32 %v9717_v27, %v11901_v6  ;;  %v9749_v14 = vpop.f32.mrf.mxu0 }
 0x244   : > { %v2853_v30 = vpop.f32.mrf.mxu1 }
 0x245   : > { %v11958_v55 = vadd.f32 %v9749_v14, %v2894_v23  ;;  %v2892_v32 = vadd.f32 %v2853_v30, %v11907_v4  ;;  %v3096_v33 = vpop.f32.mrf.mxu0  ;;  %v10785_v4 = vld [vmem:[#allocation2 + $0x188] sm:$0xff]   ;;  %v2889_v23 = vadd.f32 %v2840_v21, %v2646_v18 }
 0x246   : > { %v9718_v37 = vpop.f32.mrf.mxu1 }
 0x247   : > { %v11961_v59 = vadd.f32 %v3096_v33, %v2892_v32  ;;  %v2895_v38 = vadd.f32 %v9718_v37, %v11910_v10  ;;  %v9750_v39 = vpop.f32.mrf.mxu0 }
 0x248   : > { %10100 = vmatmul.mubr.bf16.gmra.mxu1 %v10783_v15  ;;  %v2856_v13 = vpop.f32.mrf.mxu1  ;;  %v3132_v15 = vadd.f32 %v3083_v46, %v2889_v23 }
 0x249   : > { %v11964_v19 = vadd.f32 %v9750_v39, %v2895_v38  ;;  %v3099_v6 = vpop.f32.mrf.mxu0  ;;  %10103 = vmatprep.mubr.bf16.mxu1 %v10784_v34  ;;  %v2650_v39 = vadd.f32 %v11915_v26, %v11913_v25 }
 0x24a   : > { %v9721_v43 = vpop.f32.mrf.mxu1 }
 0x24b   : > { %v2898_v44 = vadd.f32 %v9721_v43, %v11921_v35  ;;  %v9753_v17 = vpop.f32.mrf.mxu0 }
 0x24c   : > { %v2869_v48 = vpop.f32.mrf.mxu1 }
 0x24d   : > { %v11967_v49 = vadd.f32 %v9753_v17, %v2898_v44  ;;  %v2896_v50 = vadd.f32 %v2869_v48, %v11927_v42  ;;  %v3112_v51 = vpop.f32.mrf.mxu0  ;;  %v2893_v17 = vadd.f32 %v2856_v13, %v2650_v39  ;;  %v10786_v13 = vld [vmem:[%s12808_s5 + $0x38] sm:$0xff]  }
 0x24e   : > { %v9722_v52 = vpop.f32.mrf.mxu1 }
 0x24f   : > { %v11970_v10 = vadd.f32 %v3112_v51, %v2896_v50  ;;  %v2899_v54 = vadd.f32 %v9722_v52, %v11930_v45  ;;  %v9754_v56 = vpop.f32.mrf.mxu0 }
 0x250   : > { %10104 = vmatmul.mubr.bf16.gmra.mxu1 %v10785_v4  ;;  %v11973_v57 = vpop.f32.mrf.mxu1 }
 0x251   : > { %v11975_v29 = vadd.f32 %v9754_v56, %v2899_v54  ;;  %v11977_v35 = vpop.f32.mrf.mxu0  ;;  %v3136_v54 = vadd.f32 %v3099_v6, %v2893_v17 }
 0x253   : > { %v9773_v62 = vpop.f32.mrf.mxu1 }
 0x254   : > { %v3371_v2 = vadd.f32 %v9773_v62, %v11938_v28  ;;  %v9805_v36 = vpop.f32.mrf.mxu0 }
 0x255   : > { %v3306_v3 = vpop.f32.mrf.mxu1 }
 0x256   : > { %v11980_v42 = vadd.f32 %v9805_v36, %v3371_v2  ;;  %v3369_v5 = vadd.f32 %v3306_v3, %v11941_v58  ;;  %v3548_v1 = vpop.f32.mrf.mxu0  ;;  %v2355_v3 = vadd.f32 %v11870_v40, %v11796_v53 }
 0x257   : > { %v9774_v9 = vpop.f32.mrf.mxu1 }
 0x258   : > { %v11983_v45 = vadd.f32 %v3548_v1, %v3369_v5  ;;  %v3372_v7 = vadd.f32 %v9774_v9, %v11946_v31  ;;  %v9806_v11 = vpop.f32.mrf.mxu0 }
 0x259   : > { %v11986_v12 = vpop.f32.mrf.mxu1 }
 0x25a   : > { %v11990_v20 = vadd.f32 %v9806_v11, %v3372_v7  ;;  %v11992_v28 = vpop.f32.mrf.mxu0  ;;  %v10788_v7 = vld [vmem:[%s12808_s5 + $0x30] sm:$0xff]   ;;  %v2642_v11 = vadd.f32 %v11875_v41, %v2355_v3 }
 0x25b   : > { %v9777_v27 = vpop.f32.mrf.mxu1  ;;  %v10796_v3 = vld [vmem:[%s12808_s5 + $0x10] sm:$0xff]  }
 0x25c   : > { %v3375_v58 = vadd.f32 %v9777_v27, %v11951_v8  ;;  %v9809_v14 = vpop.f32.mrf.mxu0  ;;  %v2885_v27 = vadd.f32 %v11944_v63, %v2642_v11 }
 0x25d   : > { %v3322_v30 = vpop.f32.mrf.mxu1 }
 0x25e   : > { %v11995_v32 = vadd.f32 %v9809_v14, %v3375_v58  ;;  %v3373_v31 = vadd.f32 %v3322_v30, %v11954_v16  ;;  %v3564_v33 = vpop.f32.mrf.mxu0 }
 0x25f   : > { %v9778_v34 = vpop.f32.mrf.mxu1 }
 0x260   : > { %v11998_v37 = vadd.f32 %v3564_v33, %v3373_v31  ;;  %v3376_v60 = vadd.f32 %v9778_v34, %v3134_v22  ;;  %v9810_v61 = vpop.f32.mrf.mxu0  ;;  %v10791_v31 = vld [vmem:[%s12808_s5 + $0x68] sm:$0xff]  }
 0x261   : > { %v3325_v38 = vpop.f32.mrf.mxu1 }
 0x262   : > { %v12002_v21 = vadd.f32 %v9810_v61, %v3376_v60  ;;  %v3374_v8 = vadd.f32 %v3325_v38, %v3132_v15  ;;  %v3567_v43 = vpop.f32.mrf.mxu0  ;;  %v3128_v15 = vadd.f32 %v11948_v0, %v2885_v27  ;;  %v10793_v38 = vld [vmem:[%s12808_s5 + $0x60] sm:$0xff]   ;;  %v10794_v0 = vld [vmem:[%s12808_s5 + $0x18] sm:$0xff]  }
 0x263   : > { %v9781_v44 = vpop.f32.mrf.mxu1 }
 0x264   : > { %v12004_v4 = vadd.f32 %v3567_v43, %v3374_v8  ;;  %v3379_v16 = vadd.f32 %v9781_v44, %v11958_v55  ;;  %v9813_v48 = vpop.f32.mrf.mxu0  ;;  %v10949_v55 = vmov 0.0   ;;  %v3370_v39 = vadd.f32 %v11986_v12, %v3128_v15 }
 0x265   : > { %v3338_v46 = vpop.f32.mrf.mxu1  ;;  %10127 = vmatprep.subr.bf16.mxu1 %v10949_v55  ;;  %10107 = vmatprep.subr.bf16.mxu0 %v10949_v55 }
 0x266   : > { %v12007_v50 = vadd.f32 %v9813_v48, %v3379_v16  ;;  %v3377_v22 = vadd.f32 %v3338_v46, %v11961_v59  ;;  %v3580_v51 = vpop.f32.mrf.mxu0  ;;  %v2654_v59 = vadd.f32 %v11935_v47, %v11933_v24  ;;  %10128 = vmatpush3.bf16.msra.mxu1 %v10786_v13  ;;  %10143 = vmatprep.mubr.msk.bf16.mxu1 %vm10950_vm1, %v10949_v55 }
 0x267   : > { %v9782_v52 = vpop.f32.mrf.mxu1  ;;  %10129 = vmatprep.subr.bf16.mxu1 %v10949_v55  ;;  %10123 = vmatprep.mubr.msk.bf16.mxu0 %vm10950_vm1, %v10949_v55 }
 0x268   : > { %v12010_v25 = vadd.f32 %v3580_v51, %v3377_v22  ;;  %v3380_v26 = vadd.f32 %v9782_v52, %v11964_v19  ;;  %v9814_v56 = vpop.f32.mrf.mxu0  ;;  %v10787_v19 = vld [vmem:[%s12808_s5 + $0x78] sm:$0xff]   ;;  %v2897_v1 = vadd.f32 %v11973_v57, %v2654_v59 }
 0x269   : > { %v3341_v62 = vpop.f32.mrf.mxu1  ;;  %10108 = vmatpush3.bf16.msra.mxu0 %v10787_v19 }
 0x26a   : > { %v12020_v2 = vadd.f32 %v9814_v56, %v3380_v26  ;;  %v3378_v6 = vadd.f32 %v3341_v62, %v3136_v54  ;;  %v3583_v36 = vpop.f32.mrf.mxu0  ;;  %10109 = vmatprep.subr.bf16.mxu0 %v10949_v55  ;;  %10130 = vmatpush3.bf16.msra.mxu1 %v10788_v7  ;;  %v3140_v41 = vadd.f32 %v11977_v35, %v2897_v1 }
 0x26b   : > { %v9785_v5 = vpop.f32.mrf.mxu1  ;;  %10131 = vmatprep.subr.bf16.mxu1 %v10949_v55 }
 0x26c   : > { %v12029_v9 = vadd.f32 %v3583_v36, %v3378_v6  ;;  %v3383_v24 = vadd.f32 %v9785_v5, %v11967_v49  ;;  %v9817_v47 = vpop.f32.mrf.mxu0  ;;  %v10789_v49 = vld [vmem:[%s12808_s5 + $0x70] sm:$0xff]  }
 0x26d   : > { %v3354_v18 = vpop.f32.mrf.mxu1  ;;  %10110 = vmatpush3.bf16.msra.mxu0 %v10789_v49 }
 0x26e   : > { %v12037_v53 = vadd.f32 %v9817_v47, %v3383_v24  ;;  %v3381_v40 = vadd.f32 %v3354_v18, %v11970_v10  ;;  %v3596_v57 = vpop.f32.mrf.mxu0  ;;  %v10790_v10 = vld [vmem:[%s12808_s5 + $0x28] sm:$0xff]   ;;  %10111 = vmatprep.subr.bf16.mxu0 %v10949_v55 }
 0x26f   : > { %v9786_v23 = vpop.f32.mrf.mxu1  ;;  %10132 = vmatpush3.bf16.msra.mxu1 %v10790_v10 }
 0x270   : > { %v12046_v58 = vadd.f32 %v3596_v57, %v3381_v40  ;;  %v3384_v14 = vadd.f32 %v9786_v23, %v11975_v29  ;;  %v9818_v30 = vpop.f32.mrf.mxu0  ;;  %v10792_v29 = vld [vmem:[%s12808_s5 + $0x20] sm:$0xff]   ;;  %10133 = vmatprep.subr.bf16.mxu1 %v10949_v55 }
 0x271   : > { %v3357_v63 = vpop.f32.mrf.mxu1  ;;  %10112 = vmatpush3.bf16.msra.mxu0 %v10791_v31 }
 0x272   : > { %v12056_v33 = vadd.f32 %v9818_v30, %v3384_v14  ;;  %v3382_v35 = vadd.f32 %v3357_v63, %v3140_v41  ;;  %v3599_v34 = vpop.f32.mrf.mxu0  ;;  %10113 = vmatprep.subr.bf16.mxu0 %v10949_v55 }
 0x273   : > { %10134 = vmatpush3.bf16.msra.mxu1 %v10792_v29 }
 0x274   : > { %v12063_v60 = vadd.f32 %v3599_v34, %v3382_v35  ;;  %v9837_v61 = vpop.f32.mrf.mxu1  ;;  %10135 = vmatprep.subr.bf16.mxu1 %v10949_v55 }
 0x275   : > { %v3856_v8 = vadd.f32 %v9837_v61, %v11980_v42  ;;  %v9869_v43 = vpop.f32.mrf.mxu0  ;;  %10114 = vmatpush3.bf16.msra.mxu0 %v10793_v38  ;;  %v3612_v42 = vadd.f32 %v11992_v28, %v3370_v39 }
 0x276   : > { %v3791_v44 = vpop.f32.mrf.mxu1  ;;  %10115 = vmatprep.subr.bf16.mxu0 %v10949_v55 }
 0x277   : > { %v12074_v17 = vadd.f32 %v9869_v43, %v3856_v8  ;;  %v3854_v16 = vadd.f32 %v3791_v44, %v11983_v45  ;;  %v4034_v48 = vpop.f32.mrf.mxu0  ;;  %10136 = vmatpush3.bf16.msra.mxu1 %v10794_v0  ;;  %v10801_v43 = vld [vmem:[%s12808_s5 + $0x40] sm:$0xff]  }
 0x278   : > { %v9838_v46 = vpop.f32.mrf.mxu1  ;;  %10137 = vmatprep.subr.bf16.mxu1 %v10949_v55 }
 0x279   : > { %v12079_v12 = vadd.f32 %v4034_v48, %v3854_v16  ;;  %v3857_v22 = vadd.f32 %v9838_v46, %v11990_v20  ;;  %v9870_v51 = vpop.f32.mrf.mxu0  ;;  %v10795_v20 = vld [vmem:[%s12808_s5 + $0x58] sm:$0xff]  }
 0x27a   : > { %v3794_v52 = vpop.f32.mrf.mxu1  ;;  %10116 = vmatpush3.bf16.msra.mxu0 %v10795_v20 }
 0x27b   : > { %v12083_v54 = vadd.f32 %v9870_v51, %v3857_v22  ;;  %v3855_v26 = vadd.f32 %v3794_v52, %v3612_v42  ;;  %v4037_v45 = vpop.f32.mrf.mxu0  ;;  %10117 = vmatprep.subr.bf16.mxu0 %v10949_v55  ;;  %10138 = vmatpush3.bf16.msra.mxu1 %v10796_v3 }
 0x27c   : > { %v9841_v56 = vpop.f32.mrf.mxu1  ;;  %10139 = vmatprep.subr.bf16.mxu1 %v10949_v55 }
 0x27d   : > { %v12086_v13 = vadd.f32 %v4037_v45, %v3855_v26  ;;  %v3860_v28 = vadd.f32 %v9841_v56, %v11995_v32  ;;  %v9873_v62 = vpop.f32.mrf.mxu0 }
 0x27e   : > { %v3807_v59 = vpop.f32.mrf.mxu1 }
 0x27f   : > { %v12092_v6 = vadd.f32 %v9873_v62, %v3860_v28  ;;  %v3858_v36 = vadd.f32 %v3807_v59, %v11998_v37  ;;  %v4050_v19 = vpop.f32.mrf.mxu0 }
 0x280   : > { %v9842_v5 = vpop.f32.mrf.mxu1 }
 0x281   : > { %v12099_v32 = vadd.f32 %v4050_v19, %v3858_v36  ;;  %v3861_v1 = vadd.f32 %v9842_v5, %v12002_v21  ;;  %v9874_v24 = vpop.f32.mrf.mxu0  ;;  %v10797_v21 = vld [vmem:[%s12808_s5 + $0x50] sm:$0xff]  }
 0x282   : > { %v3810_v47 = vpop.f32.mrf.mxu1  ;;  %10118 = vmatpush3.bf16.msra.mxu0 %v10797_v21 }
 0x283   : > { %v12103_v7 = vadd.f32 %v9874_v24, %v3861_v1  ;;  %v3859_v37 = vadd.f32 %v3810_v47, %v12004_v4  ;;  %v4053_v11 = vpop.f32.mrf.mxu0  ;;  %v10798_v4 = vld [vmem:[%s12808_s5 + $0x8] sm:$0xff]   ;;  %10119 = vmatprep.subr.bf16.mxu0 %v10949_v55 }
 0x284   : > { %v9845_v18 = vpop.f32.mrf.mxu1  ;;  %10140 = vmatpush3.bf16.msra.mxu1 %v10798_v4 }
 0x285   : > { %v12106_v40 = vadd.f32 %v4053_v11, %v3859_v37  ;;  %v3864_v57 = vadd.f32 %v9845_v18, %v12007_v50  ;;  %v9877_v49 = vpop.f32.mrf.mxu0  ;;  %v10799_v50 = vld [vmem:[%s12808_s5 + $0x48] sm:$0xff]   ;;  %10141 = vmatprep.subr.bf16.mxu1 %v10949_v55 }
 0x286   : > { %v3823_v27 = vpop.f32.mrf.mxu1  ;;  %10120 = vmatpush3.bf16.msra.mxu0 %v10799_v50 }
 0x287   : > { %v12112_v23 = vadd.f32 %v9877_v49, %v3864_v57  ;;  %v3862_v41 = vadd.f32 %v3823_v27, %v12010_v25  ;;  %v4066_v14 = vpop.f32.mrf.mxu0  ;;  %v10800_v25 = vld [vmem:[%s12808_s5] sm:$0xff]   ;;  %10121 = vmatprep.subr.bf16.mxu0 %v10949_v55 }
 0x288   : > { %v9846_v30 = vpop.f32.mrf.mxu1  ;;  %10142 = vmatpush3.bf16.msra.mxu1 %v10800_v25 }
 0x289   : > { %v12122_v10 = vadd.f32 %v4066_v14, %v3862_v41  ;;  %v3865_v31 = vadd.f32 %v9846_v30, %v12020_v2  ;;  %v9878_v63 = vpop.f32.mrf.mxu0  ;;  %10167 = vmatprep.subr.bf16.mxu1 %v10949_v55 }
 0x28a   : > { %v3826_v35 = vpop.f32.mrf.mxu1  ;;  %10122 = vmatpush3.bf16.msra.mxu0 %v10801_v43 }
 0x28b   : > { %v12129_v34 = vadd.f32 %v9878_v63, %v3865_v31  ;;  %v3863_v29 = vadd.f32 %v3826_v35, %v12029_v9  ;;  %v4069_v15 = vpop.f32.mrf.mxu0  ;;  %10147 = vmatprep.subr.bf16.mxu0 %v10949_v55 }
 0x28c   : > { %v9849_v61 = vpop.f32.mrf.mxu1 }
 0x28d   : > { %v12133_v38 = vadd.f32 %v4069_v15, %v3863_v29  ;;  %v3868_v2 = vadd.f32 %v9849_v61, %v12037_v53  ;;  %v9881_v39 = vpop.f32.mrf.mxu0 }
 0x28e   : > { %v3839_v8 = vpop.f32.mrf.mxu1 }
 0x28f   : > { %v12140_v44 = vadd.f32 %v9881_v39, %v3868_v2  ;;  %v3866_v9 = vadd.f32 %v3839_v8, %v12046_v58  ;;  %v4082_v0 = vpop.f32.mrf.mxu0 }
 0x290   : > { %v9850_v16 = vpop.f32.mrf.mxu1 }
 0x291   : > { %v4109_v53 = vadd.f32 %v4082_v0, %v3866_v9  ;;  %v3869_v48 = vadd.f32 %v9850_v16, %v12056_v33  ;;  %v9882_v46 = vpop.f32.mrf.mxu0 }
 0x292   : > { %v3842_v42 = vpop.f32.mrf.mxu1 }
 0x293   : > { %v4112_v22 = vadd.f32 %v9882_v46, %v3869_v48  ;;  %v3867_v58 = vadd.f32 %v3842_v42, %v12063_v60  ;;  %v4085_v51 = vpop.f32.mrf.mxu0 }
 0x295   : > { %v4110_v52 = vadd.f32 %v4085_v51, %v3867_v58  ;;  %v9901_v26 = vpop.f32.mrf.mxu1 }
 0x296   : > { %v4341_v45 = vadd.f32 %v9901_v26, %v12074_v17  ;;  %v9933_v56 = vpop.f32.mrf.mxu0 }
 0x297   : > { %v4276_v28 = vpop.f32.mrf.mxu1 }
 0x298   : > { %v4583_v62 = vadd.f32 %v9933_v56, %v4341_v45  ;;  %v12152_v33 = vadd.f32 %v4276_v28, %v12079_v12  ;;  %v12154_v20 = vpop.f32.mrf.mxu0 }
 0x299   : > { %v9902_v59 = vpop.f32.mrf.mxu1 }
 0x29a   : > { %v4342_v36 = vadd.f32 %v9902_v59, %v12083_v54  ;;  %v9934_v19 = vpop.f32.mrf.mxu0 }
 0x29b   : > { %v4279_v3 = vpop.f32.mrf.mxu1 }
 0x29c   : > { %v4584_v5 = vadd.f32 %v9934_v19, %v4342_v36  ;;  %v12158_v60 = vadd.f32 %v4279_v3, %v12086_v13  ;;  %v12160_v1 = vpop.f32.mrf.mxu0 }
 0x29d   : > { %v9905_v17 = vpop.f32.mrf.mxu1 }
 0x29e   : > { %v4345_v24 = vadd.f32 %v9905_v17, %v12092_v6  ;;  %v9937_v47 = vpop.f32.mrf.mxu0 }
 0x29f   : > { %v4292_v37 = vpop.f32.mrf.mxu1 }
 0x2a0   : > { %v4587_v12 = vadd.f32 %v9937_v47, %v4345_v24  ;;  %v4343_v11 = vadd.f32 %v4292_v37, %v12099_v32  ;;  %v4534_v18 = vpop.f32.mrf.mxu0 }
 0x2a1   : > { %v9906_v57 = vpop.f32.mrf.mxu1 }
 0x2a2   : > { %v4585_v49 = vadd.f32 %v4534_v18, %v4343_v11  ;;  %v4346_v54 = vadd.f32 %v9906_v57, %v12103_v7  ;;  %v9938_v21 = vpop.f32.mrf.mxu0 }
 0x2a3   : > { %v4295_v27 = vpop.f32.mrf.mxu1 }
 0x2a4   : > { %v4588_v41 = vadd.f32 %v9938_v21, %v4346_v54  ;;  %v4344_v13 = vadd.f32 %v4295_v27, %v12106_v40  ;;  %v4537_v14 = vpop.f32.mrf.mxu0 }
 0x2a5   : > { %v9909_v4 = vpop.f32.mrf.mxu1 }
 0x2a6   : > { %v4586_v50 = vadd.f32 %v4537_v14, %v4344_v13  ;;  %v4349_v6 = vadd.f32 %v9909_v4, %v12112_v23  ;;  %v9941_v30 = vpop.f32.mrf.mxu0 }
 0x2a7   : > { %v4308_v31 = vpop.f32.mrf.mxu1 }
 0x2a8   : > { %v4591_v63 = vadd.f32 %v9941_v30, %v4349_v6  ;;  %v4347_v32 = vadd.f32 %v4308_v31, %v12122_v10  ;;  %v4550_v25 = vpop.f32.mrf.mxu0 }
 0x2a9   : > { %v9910_v35 = vpop.f32.mrf.mxu1 }
 0x2aa   : > { %v4589_v29 = vadd.f32 %v4550_v25, %v4347_v32  ;;  %v4350_v7 = vadd.f32 %v9910_v35, %v12129_v34  ;;  %v9942_v15 = vpop.f32.mrf.mxu0 }
 0x2ab   : > { %v4311_v61 = vpop.f32.mrf.mxu1 }
 0x2ac   : > { %v4592_v2 = vadd.f32 %v9942_v15, %v4350_v7  ;;  %v4348_v40 = vadd.f32 %v4311_v61, %v12133_v38  ;;  %v4553_v39 = vpop.f32.mrf.mxu0 }
 0x2ad   : > { %v9913_v8 = vpop.f32.mrf.mxu1 }
 0x2ae   : > { %v4590_v43 = vadd.f32 %v4553_v39, %v4348_v40  ;;  %v4353_v23 = vadd.f32 %v9913_v8, %v12140_v44  ;;  %v9945_v9 = vpop.f32.mrf.mxu0 }
 0x2af   : > { %v4324_v0 = vpop.f32.mrf.mxu1 }
 0x2b0   : > { %v4595_v16 = vadd.f32 %v9945_v9, %v4353_v23  ;;  %v4351_v48 = vadd.f32 %v4324_v0, %v4109_v53  ;;  %v4566_v10 = vpop.f32.mrf.mxu0 }
 0x2b1   : > { %v9914_v46 = vpop.f32.mrf.mxu1 }
 0x2b2   : > { %v4593_v42 = vadd.f32 %v4566_v10, %v4351_v48  ;;  %v4354_v58 = vadd.f32 %v9914_v46, %v4112_v22  ;;  %v9946_v51 = vpop.f32.mrf.mxu0 }
 0x2b3   : > { %v4327_v34 = vpop.f32.mrf.mxu1 }
 0x2b4   : > { %v4596_v26 = vadd.f32 %v9946_v51, %v4354_v58  ;;  %v4352_v45 = vadd.f32 %v4327_v34, %v4110_v52  ;;  %v4569_v56 = vpop.f32.mrf.mxu0 }
 0x2b6   : > { %v4594_v28 = vadd.f32 %v4569_v56, %v4352_v45  ;;  %v9965_v38 = vpop.f32.mrf.mxu1 }
 0x2b7   : > { %v4826_v59 = vadd.f32 %v9965_v38, %v4583_v62  ;;  %v9997_v36 = vpop.f32.mrf.mxu0 }
 0x2b8   : > { %v12171_v19 = vpop.f32.mrf.mxu1 }
 0x2b9   : > { %v5069_v44 = vadd.f32 %v9997_v36, %v4826_v59  ;;  %v12173_v3 = vpop.f32.mrf.mxu0 }
 0x2ba   : > { %v9966_v17 = vpop.f32.mrf.mxu1 }
 0x2bb   : > { %v12175_v53 = vadd.f32 %v9966_v17, %v4584_v5  ;;  %v12177_v24 = vpop.f32.mrf.mxu0 }
 0x2bc   : > { %v12179_v22 = vpop.f32.mrf.mxu1 }
 0x2bd   : > { %v12181_v47 = vpop.f32.mrf.mxu0 }
 0x2be   : > { %v9969_v52 = vpop.f32.mrf.mxu1 }
 0x2bf   : > { %v4830_v37 = vadd.f32 %v9969_v52, %v4587_v12  ;;  %v10001_v11 = vpop.f32.mrf.mxu0 }
 0x2c0   : > { %v4777_v18 = vpop.f32.mrf.mxu1 }
 0x2c1   : > { %v5073_v62 = vadd.f32 %v10001_v11, %v4830_v37  ;;  %v4828_v57 = vadd.f32 %v4777_v18, %v4585_v49  ;;  %v5020_v54 = vpop.f32.mrf.mxu0 }
 0x2c2   : > { %v9970_v21 = vpop.f32.mrf.mxu1 }
 0x2c3   : > { %v5071_v27 = vadd.f32 %v5020_v54, %v4828_v57  ;;  %v4831_v13 = vadd.f32 %v9970_v21, %v4588_v41  ;;  %v10002_v14 = vpop.f32.mrf.mxu0 }
 0x2c4   : > { %v4780_v4 = vpop.f32.mrf.mxu1 }
 0x2c5   : > { %v5074_v5 = vadd.f32 %v10002_v14, %v4831_v13  ;;  %v4829_v6 = vadd.f32 %v4780_v4, %v4586_v50  ;;  %v5023_v30 = vpop.f32.mrf.mxu0 }
 0x2c6   : > { %v9973_v31 = vpop.f32.mrf.mxu1 }
 0x2c7   : > { %v5072_v32 = vadd.f32 %v5023_v30, %v4829_v6  ;;  %v4834_v25 = vadd.f32 %v9973_v31, %v4591_v63  ;;  %v10005_v35 = vpop.f32.mrf.mxu0 }
 0x2c8   : > { %v4793_v7 = vpop.f32.mrf.mxu1 }
 0x2c9   : > { %v5077_v15 = vadd.f32 %v10005_v35, %v4834_v25  ;;  %v4832_v12 = vadd.f32 %v4793_v7, %v4589_v29  ;;  %v5036_v61 = vpop.f32.mrf.mxu0 }
 0x2ca   : > { %v9974_v40 = vpop.f32.mrf.mxu1 }
 0x2cb   : > { %v5075_v39 = vadd.f32 %v5036_v61, %v4832_v12  ;;  %v4835_v49 = vadd.f32 %v9974_v40, %v4592_v2  ;;  %v10006_v8 = vpop.f32.mrf.mxu0 }
 0x2cc   : > { %v4796_v23 = vpop.f32.mrf.mxu1 }
 0x2cd   : > { %v5078_v9 = vadd.f32 %v10006_v8, %v4835_v49  ;;  %v4833_v41 = vadd.f32 %v4796_v23, %v4590_v43  ;;  %v5039_v0 = vpop.f32.mrf.mxu0 }
 0x2ce   : > { %v9977_v48 = vpop.f32.mrf.mxu1 }
 0x2cf   : > { %v5076_v10 = vadd.f32 %v5039_v0, %v4833_v41  ;;  %v4838_v50 = vadd.f32 %v9977_v48, %v4595_v16  ;;  %v10009_v46 = vpop.f32.mrf.mxu0 }
 0x2d0   : > { %v4809_v58 = vpop.f32.mrf.mxu1 }
 0x2d1   : > { %v5081_v51 = vadd.f32 %v10009_v46, %v4838_v50  ;;  %v4836_v63 = vadd.f32 %v4809_v58, %v4593_v42  ;;  %v5052_v34 = vpop.f32.mrf.mxu0 }
 0x2d2   : > { %v9978_v45 = vpop.f32.mrf.mxu1 }
 0x2d3   : > { %v5079_v56 = vadd.f32 %v5052_v34, %v4836_v63  ;;  %v4839_v29 = vadd.f32 %v9978_v45, %v4596_v26  ;;  %v10010_v38 = vpop.f32.mrf.mxu0 }
 0x2d4   : > { %v4812_v59 = vpop.f32.mrf.mxu1 }
 0x2d5   : > { %v5082_v36 = vadd.f32 %v10010_v38, %v4839_v29  ;;  %v4837_v2 = vadd.f32 %v4812_v59, %v4594_v28  ;;  %v5055_v17 = vpop.f32.mrf.mxu0 }
 0x2d7   : > { %v5080_v52 = vadd.f32 %v5055_v17, %v4837_v2  ;;  %v10029_v37 = vpop.f32.mrf.mxu1 }
 0x2d8   : > { %v5312_v43 = vadd.f32 %v10029_v37, %v5069_v44  ;;  %v10061_v11 = vpop.f32.mrf.mxu0 }
 0x2d9   : > { %v5247_v18 = vpop.f32.mrf.mxu1 }
 0x2da   : > { %v5490_v16 = vpop.f32.mrf.mxu0 }
 0x2db   : > { %v10030_v57 = vpop.f32.mrf.mxu1 }
 0x2dc   : > { %v10062_v13 = vpop.f32.mrf.mxu0 }
 0x2dd   : > { %v5250_v54 = vpop.f32.mrf.mxu1 }
 0x2de   : > { %v5493_v26 = vpop.f32.mrf.mxu0 }
 0x2df   : > { %v10033_v21 = vpop.f32.mrf.mxu1 }
 0x2e0   : > { %v5316_v42 = vadd.f32 %v10033_v21, %v5073_v62  ;;  %v10065_v35 = vpop.f32.mrf.mxu0  ;;  %v4581_v62 = vadd.f32 %v12154_v20, %v12152_v33 }
 0x2e1   : > { %v5263_v14 = vpop.f32.mrf.mxu1 }
 0x2e2   : > { %v5314_v4 = vadd.f32 %v5263_v14, %v5071_v27  ;;  %v5506_v40 = vpop.f32.mrf.mxu0  ;;  %v5559_v37 = vadd.f32 %v10065_v35, %v5316_v42 }
 0x2e3   : > { %v10034_v6 = vpop.f32.mrf.mxu1 }
 0x2e4   : > { %v12183_v30 = vadd.f32 %v10034_v6, %v5074_v5  ;;  %v10066_v23 = vpop.f32.mrf.mxu0 }
 0x2e5   : > { %v5266_v31 = vpop.f32.mrf.mxu1 }
 0x2e6   : > { %v12185_v28 = vadd.f32 %v5266_v31, %v5072_v32  ;;  %v4824_v32 = vadd.f32 %v12171_v19, %v4581_v62  ;;  %v5509_v20 = vpop.f32.mrf.mxu0  ;;  %v5070_v19 = vadd.f32 %v12177_v24, %v12175_v53  ;;  %v5560_v42 = vadd.f32 %v10066_v23, %v12183_v30 }
 0x2e7   : > { %v10037_v25 = vpop.f32.mrf.mxu1 }
 0x2e8   : > { %v12187_v44 = vadd.f32 %v10037_v25, %v5077_v15  ;;  %v4582_v15 = vadd.f32 %v12160_v1, %v12158_v60  ;;  %v5555_v1 = vadd.f32 %v10061_v11, %v5312_v43  ;;  %v10069_v63 = vpop.f32.mrf.mxu0 }
 0x2e9   : > { %v5279_v7 = vpop.f32.mrf.mxu1 }
 0x2ea   : > { %v12189_v12 = vadd.f32 %v5279_v7, %v5075_v39  ;;  %v4825_v48 = vadd.f32 %v12179_v22, %v4582_v15  ;;  %v5522_v38 = vpop.f32.mrf.mxu0 }
 0x2eb   : > { %v10038_v61 = vpop.f32.mrf.mxu1 }
 0x2ec   : > { %v12191_v49 = vadd.f32 %v10038_v61, %v5078_v9  ;;  %v5067_v9 = vadd.f32 %v12173_v3, %v4824_v32  ;;  %v5068_v60 = vadd.f32 %v12181_v47, %v4825_v48 }
 0x2ed   : > { %v5282_v27 = vpop.f32.mrf.mxu1 }
 0x2ee   : > { %v12195_v5 = vadd.f32 %v5282_v27, %v5076_v10  ;;  %v5310_v50 = vadd.f32 %v5247_v18, %v5067_v9  ;;  %v5311_v45 = vadd.f32 %v5250_v54, %v5068_v60  ;;  %v5557_v18 = vadd.f32 %v5506_v40, %v5314_v4  ;;  %v10802_v4 = vld [vmem:[%s12808_s5 + $0xf8] sm:$0xff]  }
 0x2ef   : > { %v10041_v8 = vpop.f32.mrf.mxu1  ;;  %v5558_v40 = vadd.f32 %v5509_v20, %v12185_v28  ;;  %v5563_v9 = vadd.f32 %v10069_v63, %v12187_v44  ;;  %v10804_v28 = vld [vmem:[%s12808_s5 + $0xf0] sm:$0xff]   ;;  %v5561_v20 = vadd.f32 %v5522_v38, %v12189_v12 }
 0x2f0   : > { %v12198_v41 = vadd.f32 %v10041_v8, %v5081_v51  ;;  %v5313_v51 = vadd.f32 %v10030_v57, %v5070_v19  ;;  %v5553_v3 = vadd.f32 %v5490_v16, %v5310_v50  ;;  %v10070_v57 = vpop.f32.mrf.mxu0 }
 0x2f1   : > { %v5295_v39 = vpop.f32.mrf.mxu1 }
 0x2f2   : > { %v12202_v0 = vadd.f32 %v5295_v39, %v5079_v56  ;;  %v12216_v56 = vld [vmem:[%s12807_s4] ss:$0 sm:$0xff]  ;;  %v5556_v53 = vadd.f32 %v10062_v13, %v5313_v51  ;;  %v5525_v35 = vpop.f32.mrf.mxu0  ;;  %v10803_v39 = vld [vmem:[%s12808_s5 + $0xb8] sm:$0xff]  }
 0x2f3   : > { %v10042_v33 = vpop.f32.mrf.mxu1 }
 0x2f4   : > { %v12206_v10 = vadd.f32 %v10042_v33, %v5082_v36  ;;  %v5554_v36 = vadd.f32 %v5493_v26, %v5311_v45  ;;  %v10073_v32 = vpop.f32.mrf.mxu0 }
 0x2f5   : > { %v5298_v46 = vpop.f32.mrf.mxu1 }
 0x2f6   : > { %v12210_v58 = vadd.f32 %v5298_v46, %v5080_v52  ;;  %v5564_v46 = vadd.f32 %v10070_v57, %v12191_v49  ;;  %v5538_v60 = vpop.f32.mrf.mxu0 }
 0x2f8   : > { %v10093_v34 = vpop.f32.mrf.mxu1 }
 0x2f9   : > { %v5798_v22 = vadd.f32 %v10093_v34, %v5555_v1  ;;  %v10805_v34 = vld [vmem:[%s12808_s5 + $0xb0] sm:$0xff]  }
 0x2fa   : > { %v5733_v29 = vpop.f32.mrf.mxu1 }
 0x2fb   : > { %v5796_v24 = vadd.f32 %v5733_v29, %v5553_v3  ;;  %v5821_v47 = vadd.f32 %v12216_v56, %v5798_v22 }
 0x2fc   : > { %v10094_v59 = vpop.f32.mrf.mxu1 }
 0x2fd   : > { %v5799_v2 = vadd.f32 %v10094_v59, %v5556_v53  ;;  %v5819_v17 = vadd.f32 %v12216_v56, %v5796_v24  ;;  %v5837_v54 = vmax.f32 %v5821_v47, 0.0  ;;  %v10806_v53 = vld [vmem:[%s12808_s5 + $0xe8] sm:$0xff]   ;;  %v5562_v24 = vadd.f32 %v5525_v35, %v12195_v5  ;;  %v10074_v47 = vpop.f32.mrf.mxu0  ;;  %v10810_v35 = vld [vmem:[%s12808_s5 + $0xd8] sm:$0xff]  }
 0x2fe   : > { %v5736_v52 = vpop.f32.mrf.mxu1  ;;  %v5565_v5 = vadd.f32 %v5538_v60, %v12202_v0  ;;  %v10809_v0 = vld [vmem:[%s12808_s5 + $0xa0] sm:$0xff]  }
 0x2ff   : > { %v5822_v43 = vadd.f32 %v12216_v56, %v5799_v2  ;;  %v5797_v11 = vadd.f32 %v5736_v52, %v5554_v36  ;;  %v5835_v6 = vmax.f32 %v5819_v17, 0.0  ;;  %v10807_v17 = vld [vmem:[%s12808_s5 + $0xa8] sm:$0xff]   ;;  %v5567_v52 = vadd.f32 %v10073_v32, %v12198_v41  ;;  %v5541_v41 = vpop.f32.mrf.mxu0 }
 0x300   : > { %v10097_v16 = vpop.f32.mrf.mxu1 }
 0x301   : > { %v5838_v21 = vmax.f32 %v5822_v43, 0.0  ;;  %v5820_v13 = vadd.f32 %v12216_v56, %v5797_v11  ;;  %v5802_v14 = vadd.f32 %v10097_v16, %v5559_v37 }
 0x302   : > { %v5749_v26 = vpop.f32.mrf.mxu1 }
 0x303   : > { %v12222_v31 = vpack.c.bf16 %v5838_v21, %v5837_v54  ;;  %v5836_v25 = vmax.f32 %v5820_v13, 0.0  ;;  %v5825_v7 = vadd.f32 %v12216_v56, %v5802_v14  ;;  %v5800_v61 = vadd.f32 %v5749_v26, %v5557_v18  ;;  %v10808_v18 = vld [vmem:[%s12808_s5 + $0xe0] sm:$0xff]  }
 0x304   : > { %v10098_v62 = vpop.f32.mrf.mxu1 }
 0x305   : > { %v5851_v27 = vpack.c.bf16 %v5836_v25, %v5835_v6  ;;  %v5803_v8 = vadd.f32 %v10098_v62, %v5560_v42  ;;  %v5823_v30 = vadd.f32 %v12216_v56, %v5800_v61  ;;  %v5841_v1 = vmax.f32 %v5825_v7, 0.0 }
 0x306   : > { %v5752_v15 = vpop.f32.mrf.mxu1  ;;  %v5568_v61 = vadd.f32 %v10074_v47, %v12206_v10  ;;  %v5566_v62 = vadd.f32 %v5541_v41, %v12210_v58  ;;  %v10811_v10 = vld [vmem:[%s12808_s5 + $0x98] sm:$0xff]   ;;  %v10812_v58 = vld [vmem:[%s12808_s5 + $0xd0] sm:$0xff]   ;;  %v6195_v60 = vrot.slane %v12222_v31, 4  ;;  %v10833_v47 = vld [vmem:[%s12808_s5 + $0x100] sm:$0xff]  }
 0x307   : > { %v5893_v48 = vrot.slane %v5851_v27, 4  ;;  %v5801_v23 = vadd.f32 %v5752_v15, %v5558_v40  ;;  %10144 = vmatmul.mubr.bf16.vlgmr.msra.gmra.mxu1 %v5851_v27  ;;  %v5826_v33 = vadd.f32 %v12216_v56, %v5803_v8  ;;  %v5839_v12 = vmax.f32 %v5823_v30, 0.0  ;;  %v10813_v30 = vld [vmem:[%s12808_s5 + $0x90] sm:$0xff]   ;;  %v10846_v41 = vld [vmem:[%s12808_s5 + $0x1c8] sm:$0xff]  }
 0x308   : > { %10168 = vmatpush3.bf16.msra.mxu1 %v10802_v4  ;;  %v10101_v19 = vpop.f32.mrf.mxu1  ;;  %10183 = vmatprep.mubr.msk.bf16.mxu1 %vm10950_vm1, %v10949_v55 }
 0x309   : > { %v5824_v44 = vadd.f32 %v12216_v56, %v5801_v23  ;;  %v5806_v50 = vadd.f32 %v10101_v19, %v5563_v9  ;;  %10124 = vmatmul.mubr.bf16.vlgmr.msra.gmra.mxu0 %v5893_v48  ;;  %10169 = vmatprep.subr.bf16.mxu1 %v10949_v55  ;;  %v5842_v51 = vmax.f32 %v5826_v33, 0.0 }
 0x30a   : > { %10148 = vmatpush3.bf16.msra.mxu0 %v10803_v39  ;;  %v5765_v63 = vpop.f32.mrf.mxu1  ;;  %10163 = vmatprep.mubr.msk.bf16.mxu0 %vm10950_vm1, %v10949_v55 }
 0x30b   : > { %v5840_v3 = vmax.f32 %v5824_v44, 0.0  ;;  %v5829_v45 = vadd.f32 %v12216_v56, %v5806_v50  ;;  %v5804_v22 = vadd.f32 %v5765_v63, %v5561_v20  ;;  %10149 = vmatprep.subr.bf16.mxu0 %v10949_v55  ;;  %v12252_v49 = vpack.c.bf16 %v5842_v51, %v5841_v1  ;;  %v10815_v20 = vld [vmem:[%s12808_s5 + $0x88] sm:$0xff]   ;;  %v10816_v44 = vld [vmem:[%s12808_s5 + $0xc0] sm:$0xff]   ;;  %v10819_v1 = vld [vmem:[%s12808_s5 + $0x138] sm:$0xff]  }
 0x30c   : > { %10170 = vmatpush3.bf16.msra.mxu1 %v10804_v28  ;;  %v10102_v29 = vpop.f32.mrf.mxu1  ;;  %v10817_v50 = vld [vmem:[%s12808_s5 + $0x80] sm:$0xff]   ;;  %v10820_v51 = vld [vmem:[%s12808_s5 + $0x170] sm:$0xff]  }
 0x30d   : > { %v12258_v38 = vpack.c.bf16 %v5840_v3, %v5839_v12  ;;  %v5827_v59 = vadd.f32 %v12216_v56, %v5804_v22  ;;  %v5807_v36 = vadd.f32 %v10102_v29, %v5564_v46  ;;  %10171 = vmatprep.subr.bf16.mxu1 %v10949_v55  ;;  %v5845_v57 = vmax.f32 %v5829_v45, 0.0  ;;  %v10818_v46 = vld [vmem:[%s12808_s5 + $0x178] sm:$0xff]   ;;  %v10821_v63 = vld [vmem:[%s12808_s5 + $0x130] sm:$0xff]   ;;  %v10824_v12 = vld [vmem:[%s12808_s5 + $0x160] sm:$0xff]  }
 0x30e   : > { %10150 = vmatpush3.bf16.msra.mxu0 %v10805_v34  ;;  %v5768_v2 = vpop.f32.mrf.mxu1  ;;  %v10822_v34 = vld [vmem:[%s12808_s5 + $0x168] sm:$0xff]   ;;  %v10825_v3 = vld [vmem:[%s12808_s5 + $0x120] sm:$0xff]   ;;  %v10826_v45 = vld [vmem:[%s12808_s5 + $0x158] sm:$0xff]  }
 0x30f   : > { %v5830_v37 = vadd.f32 %v12216_v56, %v5807_v36  ;;  %v5805_v43 = vadd.f32 %v5768_v2, %v5562_v24  ;;  %10151 = vmatprep.subr.bf16.mxu0 %v10949_v55  ;;  %v5843_v13 = vmax.f32 %v5827_v59, 0.0  ;;  %v10827_v22 = vld [vmem:[%s12808_s5 + $0x118] sm:$0xff]   ;;  %v10828_v29 = vld [vmem:[%s12808_s5 + $0x150] sm:$0xff]   ;;  %v10830_v24 = vld [vmem:[%s12808_s5 + $0x148] sm:$0xff]  }
 0x310   : > { %10172 = vmatpush3.bf16.msra.mxu1 %v10806_v53  ;;  %v10105_v11 = vpop.f32.mrf.mxu1  ;;  %v10829_v53 = vld [vmem:[%s12808_s5 + $0x110] sm:$0xff]   ;;  %v10831_v59 = vld [vmem:[%s12808_s5 + $0x108] sm:$0xff]   ;;  %v10832_v36 = vld [vmem:[%s12808_s5 + $0x140] sm:$0xff]  }
 0x311   : > { %v5846_v16 = vmax.f32 %v5830_v37, 0.0  ;;  %v5828_v54 = vadd.f32 %v12216_v56, %v5805_v43  ;;  %v5810_v21 = vadd.f32 %v10105_v11, %v5567_v52  ;;  %10173 = vmatprep.subr.bf16.mxu1 %v10949_v55  ;;  %v10834_v2 = vld [vmem:[%s12808_s5 + $0x1f8] sm:$0xff]   ;;  %v10836_v37 = vld [vmem:[%s12808_s5 + $0x1f0] sm:$0xff]   ;;  %v10840_v11 = vld [vmem:[%s12808_s5 + $0x1e0] sm:$0xff]  }
 0x312   : > { %10152 = vmatpush3.bf16.msra.mxu0 %v10807_v17  ;;  %v5781_v14 = vpop.f32.mrf.mxu1  ;;  %v6410_v17 = vrot.slane %v12258_v38, 4  ;;  %v10835_v52 = vld [vmem:[%s12808_s5 + $0x1b8] sm:$0xff]   ;;  %v10837_v43 = vld [vmem:[%s12808_s5 + $0x1b0] sm:$0xff]  }
 0x313   : > { %v12277_v6 = vpack.c.bf16 %v5846_v16, %v5845_v57  ;;  %v5844_v26 = vmax.f32 %v5828_v54, 0.0  ;;  %v5833_v25 = vadd.f32 %v12216_v56, %v5810_v21  ;;  %v5808_v7 = vadd.f32 %v5781_v14, %v5565_v5  ;;  %10153 = vmatprep.subr.bf16.mxu0 %v10949_v55  ;;  %v10838_v5 = vld [vmem:[%s12808_s5 + $0x1e8] sm:$0xff]   ;;  %v10842_v57 = vld [vmem:[%s12808_s5 + $0x1d8] sm:$0xff]   ;;  %v10844_v54 = vld [vmem:[%s12808_s5 + $0x1d0] sm:$0xff]  }
 0x314   : > { %10174 = vmatpush3.bf16.msra.mxu1 %v10808_v18  ;;  %v10106_v42 = vpop.f32.mrf.mxu1  ;;  %v10841_v18 = vld [vmem:[%s12808_s5 + $0x1a0] sm:$0xff]   ;;  %v10843_v16 = vld [vmem:[%s12808_s5 + $0x198] sm:$0xff]   ;;  %v10845_v21 = vld [vmem:[%s12808_s5 + $0x190] sm:$0xff]  }
 0x315   : > { %v12286_v4 = vpack.c.bf16 %v5844_v26, %v5843_v13  ;;  %v5831_v40 = vadd.f32 %v12216_v56, %v5808_v7  ;;  %10175 = vmatprep.subr.bf16.mxu1 %v10949_v55  ;;  %v5811_v27 = vadd.f32 %v10106_v42, %v5568_v61  ;;  %v5849_v9 = vmax.f32 %v5833_v25, 0.0  ;;  %v10847_v13 = vld [vmem:[%s12808_s5 + $0x188] sm:$0xff]   ;;  %v10848_v14 = vld [vmem:[%s12808_s5 + $0x1c0] sm:$0xff]   ;;  %v10850_v26 = vld [vmem:[%s12808_s5 + $0x278] sm:$0xff]  }
 0x316   : > { %10154 = vmatpush3.bf16.msra.mxu0 %v10809_v0  ;;  %v5784_v32 = vpop.f32.mrf.mxu1  ;;  %v10849_v0 = vld [vmem:[%s12808_s5 + $0x180] sm:$0xff]   ;;  %v6625_v25 = vrot.slane %v12252_v49, 4  ;;  %v10851_v7 = vld [vmem:[%s12808_s5 + $0x238] sm:$0xff]   ;;  %v10852_v61 = vld [vmem:[%s12808_s5 + $0x270] sm:$0xff]  }
 0x317   : > { %v5809_v8 = vadd.f32 %v5784_v32, %v5566_v62  ;;  %10155 = vmatprep.subr.bf16.mxu0 %v10949_v55  ;;  %v5834_v15 = vadd.f32 %v12216_v56, %v5811_v27  ;;  %v5847_v23 = vmax.f32 %v5831_v40, 0.0  ;;  %v10853_v42 = vld [vmem:[%s12808_s5 + $0x230] sm:$0xff]   ;;  %v10856_v62 = vld [vmem:[%s12808_s5 + $0x260] sm:$0xff]   ;;  %v10858_v27 = vld [vmem:[%s12808_s5 + $0x258] sm:$0xff]  }
 0x318   : > { %10176 = vmatpush3.bf16.msra.mxu1 %v10810_v35  ;;  %v10854_v35 = vld [vmem:[%s12808_s5 + $0x268] sm:$0xff]   ;;  %v10857_v40 = vld [vmem:[%s12808_s5 + $0x220] sm:$0xff]   ;;  %v10859_v32 = vld [vmem:[%s12808_s5 + $0x218] sm:$0xff]  }
 0x319   : > { %v5832_v39 = vadd.f32 %v12216_v56, %v5809_v8  ;;  %10177 = vmatprep.subr.bf16.mxu1 %v10949_v55  ;;  %v5850_v48 = vmax.f32 %v5834_v15, 0.0  ;;  %v10814_v56 = vld [vmem:[%s12808_s5 + $0xc8] sm:$0xff]   ;;  %v10861_v8 = vld [vmem:[%s12808_s5 + $0x210] sm:$0xff]  }
 0x31a   : > { %10156 = vmatpush3.bf16.msra.mxu0 %v10811_v10  ;;  %v10860_v10 = vld [vmem:[%s12808_s5 + $0x250] sm:$0xff]   ;;  %v10862_v15 = vld [vmem:[%s12808_s5 + $0x248] sm:$0xff]  }
 0x31b   : > { %v5848_v33 = vmax.f32 %v5832_v39, 0.0  ;;  %10157 = vmatprep.subr.bf16.mxu0 %v10949_v55  ;;  %v12304_v19 = vpack.c.bf16 %v5850_v48, %v5849_v9  ;;  %v10864_v39 = vld [vmem:[%s12808_s5 + $0x240] sm:$0xff]   ;;  %v10866_v48 = vld [vmem:[%s12808_s5 + $0x2f8] sm:$0xff]  }
 0x31c   : > { %10178 = vmatpush3.bf16.msra.mxu1 %v10812_v58  ;;  %v10863_v58 = vld [vmem:[%s12808_s5 + $0x208] sm:$0xff]   ;;  %v10865_v9 = vld [vmem:[%s12808_s5 + $0x200] sm:$0xff]  }
 0x31d   : > { %v12309_v28 = vpack.c.bf16 %v5848_v33, %v5847_v23  ;;  %10179 = vmatprep.subr.bf16.mxu1 %v10949_v55  ;;  %v10867_v23 = vld [vmem:[%s12808_s5 + $0x2b8] sm:$0xff]   ;;  %v10868_v33 = vld [vmem:[%s12808_s5 + $0x2f0] sm:$0xff]  }
 0x31e   : > { %10158 = vmatpush3.bf16.msra.mxu0 %v10813_v30  ;;  %v6840_v30 = vrot.slane %v12286_v4, 4 }
 0x31f   : > { %10159 = vmatprep.subr.bf16.mxu0 %v10949_v55 }
 0x320   : > { %10180 = vmatpush3.bf16.msra.mxu1 %v10814_v56  ;;  %v10869_v56 = vld [vmem:[%s12808_s5 + $0x2b0] sm:$0xff]  }
 0x321   : > { %10181 = vmatprep.subr.bf16.mxu1 %v10949_v55 }
 0x322   : > { %10160 = vmatpush3.bf16.msra.mxu0 %v10815_v20  ;;  %v10870_v20 = vld [vmem:[%s12808_s5 + $0x2e8] sm:$0xff]  }
 0x323   : > { %10161 = vmatprep.subr.bf16.mxu0 %v10949_v55 }
 0x324   : > { %10182 = vmatpush3.bf16.msra.mxu1 %v10816_v44  ;;  %v10872_v44 = vld [vmem:[%s12808_s5 + $0x2e0] sm:$0xff]  }
 0x325   : > { %10207 = vmatprep.subr.bf16.mxu1 %v10949_v55 }
 0x326   : > { %10162 = vmatpush3.bf16.msra.mxu0 %v10817_v50  ;;  %v10873_v50 = vld [vmem:[%s12808_s5 + $0x2a0] sm:$0xff]  }
 0x327   : > { %10184 = vmatmul.mubr.bf16.vlgmr.msra.gmra.mxu1 %v6195_v60  ;;  %10187 = vmatprep.subr.bf16.mxu0 %v10949_v55  ;;  %v10875_v60 = vld [vmem:[%s12808_s5 + $0x298] sm:$0xff]  }
 0x328   : > { %10208 = vmatpush3.bf16.msra.mxu1 %v10818_v46  ;;  %10223 = vmatprep.mubr.msk.bf16.mxu1 %vm10950_vm1, %v10949_v55  ;;  %v10874_v46 = vld [vmem:[%s12808_s5 + $0x2d8] sm:$0xff]  }
 0x329   : > { %10164 = vmatmul.mubr.bf16.vlgmr.msra.gmra.mxu0 %v12222_v31  ;;  %10209 = vmatprep.subr.bf16.mxu1 %v10949_v55  ;;  %v10823_v31 = vld [vmem:[%s12808_s5 + $0x128] sm:$0xff]  }
 0x32a   : > { %10188 = vmatpush3.bf16.msra.mxu0 %v10819_v1  ;;  %10203 = vmatprep.mubr.msk.bf16.mxu0 %vm10950_vm1, %v10949_v55  ;;  %v10876_v1 = vld [vmem:[%s12808_s5 + $0x2d0] sm:$0xff]  }
 0x32b   : > { %10189 = vmatprep.subr.bf16.mxu0 %v10949_v55 }
 0x32c   : > { %10210 = vmatpush3.bf16.msra.mxu1 %v10820_v51  ;;  %v10877_v51 = vld [vmem:[%s12808_s5 + $0x290] sm:$0xff]  }
 0x32d   : > { %10211 = vmatprep.subr.bf16.mxu1 %v10949_v55 }
 0x32e   : > { %10190 = vmatpush3.bf16.msra.mxu0 %v10821_v63  ;;  %v10878_v63 = vld [vmem:[%s12808_s5 + $0x2c8] sm:$0xff]  }
 0x32f   : > { %10191 = vmatprep.subr.bf16.mxu0 %v10949_v55 }
 0x330   : > { %10212 = vmatpush3.bf16.msra.mxu1 %v10822_v34  ;;  %v10879_v34 = vld [vmem:[%s12808_s5 + $0x288] sm:$0xff]  }
 0x331   : > { %10213 = vmatprep.subr.bf16.mxu1 %v10949_v55 }
 0x332   : > { %10192 = vmatpush3.bf16.msra.mxu0 %v10823_v31  ;;  %v10880_v31 = vld [vmem:[%s12808_s5 + $0x2c0] sm:$0xff]  }
 0x333   : > { %10193 = vmatprep.subr.bf16.mxu0 %v10949_v55 }
 0x334   : > { %10214 = vmatpush3.bf16.msra.mxu1 %v10824_v12  ;;  %v10881_v12 = vld [vmem:[%s12808_s5 + $0x280] sm:$0xff]  }
 0x335   : > { %10215 = vmatprep.subr.bf16.mxu1 %v10949_v55 }
 0x336   : > { %10194 = vmatpush3.bf16.msra.mxu0 %v10825_v3  ;;  %v10882_v3 = vld [vmem:[%s12808_s5 + $0x378] sm:$0xff]  }
 0x337   : > { %10195 = vmatprep.subr.bf16.mxu0 %v10949_v55 }
 0x338   : > { %10216 = vmatpush3.bf16.msra.mxu1 %v10826_v45  ;;  %v7055_v45 = vrot.slane %v12277_v6, 4 }
 0x339   : > { %10217 = vmatprep.subr.bf16.mxu1 %v10949_v55 }
 0x33a   : > { %10196 = vmatpush3.bf16.msra.mxu0 %v10827_v22  ;;  %v10883_v22 = vld [vmem:[%s12808_s5 + $0x338] sm:$0xff]  }
 0x33b   : > { %10197 = vmatprep.subr.bf16.mxu0 %v10949_v55 }
 0x33c   : > { %10218 = vmatpush3.bf16.msra.mxu1 %v10828_v29  ;;  %v10884_v29 = vld [vmem:[%s12808_s5 + $0x370] sm:$0xff]  }
 0x33d   : > { %10219 = vmatprep.subr.bf16.mxu1 %v10949_v55 }
 0x33e   : > { %10198 = vmatpush3.bf16.msra.mxu0 %v10829_v53  ;;  %v10885_v53 = vld [vmem:[%s12808_s5 + $0x330] sm:$0xff]  }
 0x33f   : > { %10199 = vmatprep.subr.bf16.mxu0 %v10949_v55 }
 0x340   : > { %10220 = vmatpush3.bf16.msra.mxu1 %v10830_v24  ;;  %v10886_v24 = vld [vmem:[%s12808_s5 + $0x368] sm:$0xff]  }
 0x341   : > { %10221 = vmatprep.subr.bf16.mxu1 %v10949_v55 }
 0x342   : > { %10200 = vmatpush3.bf16.msra.mxu0 %v10831_v59  ;;  %v10888_v59 = vld [vmem:[%s12808_s5 + $0x360] sm:$0xff]  }
 0x343   : > { %10201 = vmatprep.subr.bf16.mxu0 %v10949_v55 }
 0x344   : > { %10222 = vmatpush3.bf16.msra.mxu1 %v10832_v36  ;;  %v10889_v36 = vld [vmem:[%s12808_s5 + $0x320] sm:$0xff]  }
 0x345   : > { %10247 = vmatprep.subr.bf16.mxu1 %v10949_v55 }
 0x346   : > { %10202 = vmatpush3.bf16.msra.mxu0 %v10833_v47  ;;  %v10890_v47 = vld [vmem:[%s12808_s5 + $0x358] sm:$0xff]  }
 0x347   : > { %10224 = vmatmul.mubr.bf16.vlgmr.msra.gmra.mxu1 %v6410_v17  ;;  %10227 = vmatprep.subr.bf16.mxu0 %v10949_v55  ;;  %v10892_v17 = vld [vmem:[%s12808_s5 + $0x350] sm:$0xff]  }
 0x348   : > { %10248 = vmatpush3.bf16.msra.mxu1 %v10834_v2  ;;  %10263 = vmatprep.mubr.msk.bf16.mxu1 %vm10950_vm1, %v10949_v55  ;;  %v10891_v2 = vld [vmem:[%s12808_s5 + $0x318] sm:$0xff]  }
 0x349   : > { %10204 = vmatmul.mubr.bf16.vlgmr.msra.gmra.mxu0 %v12258_v38  ;;  %10249 = vmatprep.subr.bf16.mxu1 %v10949_v55  ;;  %v10839_v38 = vld [vmem:[%s12808_s5 + $0x1a8] sm:$0xff]  }
 0x34a   : > { %10228 = vmatpush3.bf16.msra.mxu0 %v10835_v52  ;;  %10243 = vmatprep.mubr.msk.bf16.mxu0 %vm10950_vm1, %v10949_v55  ;;  %v10893_v52 = vld [vmem:[%s12808_s5 + $0x310] sm:$0xff]  }
 0x34b   : > { %10229 = vmatprep.subr.bf16.mxu0 %v10949_v55 }
 0x34c   : > { %10250 = vmatpush3.bf16.msra.mxu1 %v10836_v37  ;;  %v10894_v37 = vld [vmem:[%s12808_s5 + $0x348] sm:$0xff]  }
 0x34d   : > { %10251 = vmatprep.subr.bf16.mxu1 %v10949_v55 }
 0x34e   : > { %10230 = vmatpush3.bf16.msra.mxu0 %v10837_v43  ;;  %v10895_v43 = vld [vmem:[%s12808_s5 + $0x308] sm:$0xff]  }
 0x34f   : > { %10231 = vmatprep.subr.bf16.mxu0 %v10949_v55 }
 0x350   : > { %10252 = vmatpush3.bf16.msra.mxu1 %v10838_v5  ;;  %v10896_v5 = vld [vmem:[%s12808_s5 + $0x340] sm:$0xff]  }
 0x351   : > { %10253 = vmatprep.subr.bf16.mxu1 %v10949_v55 }
 0x352   : > { %10232 = vmatpush3.bf16.msra.mxu0 %v10839_v38  ;;  %v10897_v38 = vld [vmem:[%s12808_s5 + $0x300] sm:$0xff]  }
 0x353   : > { %10233 = vmatprep.subr.bf16.mxu0 %v10949_v55 }
 0x354   : > { %10254 = vmatpush3.bf16.msra.mxu1 %v10840_v11  ;;  %v10898_v11 = vld [vmem:[%s12808_s5 + $0x3f8] sm:$0xff]  }
 0x355   : > { %10255 = vmatprep.subr.bf16.mxu1 %v10949_v55 }
 0x356   : > { %10234 = vmatpush3.bf16.msra.mxu0 %v10841_v18  ;;  %v7270_v18 = vrot.slane %v12309_v28, 4 }
 0x357   : > { %10235 = vmatprep.subr.bf16.mxu0 %v10949_v55 }
 0x358   : > { %10256 = vmatpush3.bf16.msra.mxu1 %v10842_v57  ;;  %v10899_v57 = vld [vmem:[%s12808_s5 + $0x3b8] sm:$0xff]  }
 0x359   : > { %10257 = vmatprep.subr.bf16.mxu1 %v10949_v55 }
 0x35a   : > { %10236 = vmatpush3.bf16.msra.mxu0 %v10843_v16 }
 0x35b   : > { %10237 = vmatprep.subr.bf16.mxu0 %v10949_v55 }
 0x35c   : > { %10258 = vmatpush3.bf16.msra.mxu1 %v10844_v54  ;;  %v10900_v54 = vld [vmem:[%s12808_s5 + $0x3f0] sm:$0xff]  }
 0x35d   : > { %10259 = vmatprep.subr.bf16.mxu1 %v10949_v55 }
 0x35e   : > { %10238 = vmatpush3.bf16.msra.mxu0 %v10845_v21 }
 0x35f   : > { %10239 = vmatprep.subr.bf16.mxu0 %v10949_v55 }
 0x360   : > { %10260 = vmatpush3.bf16.msra.mxu1 %v10846_v41 }
 0x361   : > { %10261 = vmatprep.subr.bf16.mxu1 %v10949_v55 }
 0x362   : > { %10240 = vmatpush3.bf16.msra.mxu0 %v10847_v13 }
 0x363   : > { %10241 = vmatprep.subr.bf16.mxu0 %v10949_v55 }
 0x364   : > { %10262 = vmatpush3.bf16.msra.mxu1 %v10848_v14  ;;  %v10901_v14 = vld [vmem:[%s12808_s5 + $0x3b0] sm:$0xff]  }
 0x365   : > { %10287 = vmatprep.subr.bf16.mxu1 %v10949_v55 }
 0x366   : > { %10242 = vmatpush3.bf16.msra.mxu0 %v10849_v0 }
 0x367   : > { %10264 = vmatmul.mubr.bf16.vlgmr.msra.gmra.mxu1 %v6625_v25  ;;  %10267 = vmatprep.subr.bf16.mxu0 %v10949_v55 }
 0x368   : > { %10288 = vmatpush3.bf16.msra.mxu1 %v10850_v26  ;;  %10303 = vmatprep.mubr.msk.bf16.mxu1 %vm10950_vm1, %v10949_v55 }
 0x369   : > { %10244 = vmatmul.mubr.bf16.vlgmr.msra.gmra.mxu0 %v12252_v49  ;;  %10289 = vmatprep.subr.bf16.mxu1 %v10949_v55  ;;  %v10855_v49 = vld [vmem:[%s12808_s5 + $0x228] sm:$0xff]  }
 0x36a   : > { %10268 = vmatpush3.bf16.msra.mxu0 %v10851_v7  ;;  %10283 = vmatprep.mubr.msk.bf16.mxu0 %vm10950_vm1, %v10949_v55 }
 0x36b   : > { %10269 = vmatprep.subr.bf16.mxu0 %v10949_v55 }
 0x36c   : > { %10290 = vmatpush3.bf16.msra.mxu1 %v10852_v61  ;;  %v10903_v61 = vld [vmem:[%s12808_s5 + $0x3a8] sm:$0xff]  }
 0x36d   : > { %10291 = vmatprep.subr.bf16.mxu1 %v10949_v55 }
 0x36e   : > { %10270 = vmatpush3.bf16.msra.mxu0 %v10853_v42 }
 0x36f   : > { %10271 = vmatprep.subr.bf16.mxu0 %v10949_v55 }
 0x370   : > { %10292 = vmatpush3.bf16.msra.mxu1 %v10854_v35  ;;  %v10904_v35 = vld [vmem:[%s12808_s5 + $0x3e0] sm:$0xff]  }
 0x371   : > { %10293 = vmatprep.subr.bf16.mxu1 %v10949_v55 }
 0x372   : > { %10272 = vmatpush3.bf16.msra.mxu0 %v10855_v49  ;;  %v10905_v49 = vld [vmem:[%s12808_s5 + $0x3a0] sm:$0xff]  }
 0x373   : > { %10273 = vmatprep.subr.bf16.mxu0 %v10949_v55 }
 0x374   : > { %10294 = vmatpush3.bf16.msra.mxu1 %v10856_v62  ;;  %v10906_v62 = vld [vmem:[%s12808_s5 + $0x3d8] sm:$0xff]  }
 0x375   : > { %10295 = vmatprep.subr.bf16.mxu1 %v10949_v55 }
 0x376   : > { %10274 = vmatpush3.bf16.msra.mxu0 %v10857_v40  ;;  %v10907_v40 = vld [vmem:[%s12808_s5 + $0x398] sm:$0xff]  }
 0x377   : > { %10275 = vmatprep.subr.bf16.mxu0 %v10949_v55 }
 0x378   : > { %10296 = vmatpush3.bf16.msra.mxu1 %v10858_v27  ;;  %v10908_v27 = vld [vmem:[%s12808_s5 + $0x3d0] sm:$0xff]  }
 0x379   : > { %10297 = vmatprep.subr.bf16.mxu1 %v10949_v55 }
 0x37a   : > { %10276 = vmatpush3.bf16.msra.mxu0 %v10859_v32  ;;  %v10909_v32 = vld [vmem:[%s12808_s5 + $0x390] sm:$0xff]  }
 0x37b   : > { %10277 = vmatprep.subr.bf16.mxu0 %v10949_v55 }
 0x37c   : > { %10298 = vmatpush3.bf16.msra.mxu1 %v10860_v10  ;;  %v10910_v10 = vld [vmem:[%s12808_s5 + $0x3c8] sm:$0xff]  }
 0x37d   : > { %10299 = vmatprep.subr.bf16.mxu1 %v10949_v55 }
 0x37e   : > { %10278 = vmatpush3.bf16.msra.mxu0 %v10861_v8  ;;  %v10911_v8 = vld [vmem:[%s12808_s5 + $0x388] sm:$0xff]  }
 0x37f   : > { %10279 = vmatprep.subr.bf16.mxu0 %v10949_v55 }
 0x380   : > { %10300 = vmatpush3.bf16.msra.mxu1 %v10862_v15  ;;  %v10912_v15 = vld [vmem:[%s12808_s5 + $0x3c0] sm:$0xff]  }
 0x381   : > { %10301 = vmatprep.subr.bf16.mxu1 %v10949_v55 }
 0x382   : > { %10280 = vmatpush3.bf16.msra.mxu0 %v10863_v58  ;;  %v10913_v58 = vld [vmem:[%s12808_s5 + $0x380] sm:$0xff]  }
 0x383   : > { %10281 = vmatprep.subr.bf16.mxu0 %v10949_v55 }
 0x384   : > { %10302 = vmatpush3.bf16.msra.mxu1 %v10864_v39  ;;  %v7485_v39 = vrot.slane %v12304_v19, 4 }
 0x385   : > { %10327 = vmatprep.subr.bf16.mxu1 %v10949_v55 }
 0x386   : > { %10282 = vmatpush3.bf16.msra.mxu0 %v10865_v9 }
 0x387   : > { %10304 = vmatmul.mubr.bf16.vlgmr.msra.gmra.mxu1 %v6840_v30  ;;  %10307 = vmatprep.subr.bf16.mxu0 %v10949_v55 }
 0x388   : > { %10328 = vmatpush3.bf16.msra.mxu1 %v10866_v48  ;;  %10343 = vmatprep.mubr.msk.bf16.mxu1 %vm10950_vm1, %v10949_v55 }
 0x389   : > { %10284 = vmatmul.mubr.bf16.vlgmr.msra.gmra.mxu0 %v12286_v4  ;;  %10329 = vmatprep.subr.bf16.mxu1 %v10949_v55  ;;  %v10871_v4 = vld [vmem:[%s12808_s5 + $0x2a8] sm:$0xff]  }
 0x38a   : > { %10308 = vmatpush3.bf16.msra.mxu0 %v10867_v23  ;;  %10323 = vmatprep.mubr.msk.bf16.mxu0 %vm10950_vm1, %v10949_v55 }
 0x38b   : > { %10309 = vmatprep.subr.bf16.mxu0 %v10949_v55 }
 0x38c   : > { %10330 = vmatpush3.bf16.msra.mxu1 %v10868_v33 }
 0x38d   : > { %10331 = vmatprep.subr.bf16.mxu1 %v10949_v55 }
 0x38e   : > { %10310 = vmatpush3.bf16.msra.mxu0 %v10869_v56 }
 0x38f   : > { %10311 = vmatprep.subr.bf16.mxu0 %v10949_v55 }
 0x390   : > { %10332 = vmatpush3.bf16.msra.mxu1 %v10870_v20 }
 0x391   : > { %10333 = vmatprep.subr.bf16.mxu1 %v10949_v55 }
 0x392   : > { %10312 = vmatpush3.bf16.msra.mxu0 %v10871_v4 }
 0x393   : > { %10313 = vmatprep.subr.bf16.mxu0 %v10949_v55 }
 0x394   : > { %10334 = vmatpush3.bf16.msra.mxu1 %v10872_v44 }
 0x395   : > { %10335 = vmatprep.subr.bf16.mxu1 %v10949_v55 }
 0x396   : > { %10314 = vmatpush3.bf16.msra.mxu0 %v10873_v50 }
 0x397   : > { %10315 = vmatprep.subr.bf16.mxu0 %v10949_v55 }
 0x398   : > { %10336 = vmatpush3.bf16.msra.mxu1 %v10874_v46 }
 0x399   : > { %10337 = vmatprep.subr.bf16.mxu1 %v10949_v55 }
 0x39a   : > { %10316 = vmatpush3.bf16.msra.mxu0 %v10875_v60 }
 0x39b   : > { %10317 = vmatprep.subr.bf16.mxu0 %v10949_v55 }
 0x39c   : > { %10338 = vmatpush3.bf16.msra.mxu1 %v10876_v1 }
 0x39d   : > { %10339 = vmatprep.subr.bf16.mxu1 %v10949_v55 }
 0x39e   : > { %10318 = vmatpush3.bf16.msra.mxu0 %v10877_v51 }
 0x39f   : > { %10319 = vmatprep.subr.bf16.mxu0 %v10949_v55 }
 0x3a0   : > { %10340 = vmatpush3.bf16.msra.mxu1 %v10878_v63 }
 0x3a1   : > { %10341 = vmatprep.subr.bf16.mxu1 %v10949_v55 }
 0x3a2   : > { %10320 = vmatpush3.bf16.msra.mxu0 %v10879_v34 }
 0x3a3   : > { %10321 = vmatprep.subr.bf16.mxu0 %v10949_v55 }
 0x3a4   : > { %10342 = vmatpush3.bf16.msra.mxu1 %v10880_v31 }
 0x3a5   : > { %10367 = vmatprep.subr.bf16.mxu1 %v10949_v55 }
 0x3a6   : > { %10322 = vmatpush3.bf16.msra.mxu0 %v10881_v12 }
 0x3a7   : > { %10344 = vmatmul.mubr.bf16.vlgmr.msra.gmra.mxu1 %v7055_v45  ;;  %10347 = vmatprep.subr.bf16.mxu0 %v10949_v55  ;;  %v10914_v45 = vld [vmem:[%s12810_s7 + $0x38] sm:$0xff]  }
 0x3a8   : > { %10368 = vmatpush3.bf16.msra.mxu1 %v10882_v3  ;;  %10383 = vmatprep.mubr.msk.bf16.mxu1 %vm10950_vm1, %v10949_v55 }
 0x3a9   : > { %10324 = vmatmul.mubr.bf16.vlgmr.msra.gmra.mxu0 %v12277_v6  ;;  %10369 = vmatprep.subr.bf16.mxu1 %v10949_v55  ;;  %v10887_v6 = vld [vmem:[%s12808_s5 + $0x328] sm:$0xff]  }
 0x3aa   : > { %10348 = vmatpush3.bf16.msra.mxu0 %v10883_v22  ;;  %10363 = vmatprep.mubr.msk.bf16.mxu0 %vm10950_vm1, %v10949_v55  ;;  %v10915_v22 = vld [vmem:[%s12810_s7 + $0x30] sm:$0xff]  }
 0x3ab   : > { %10349 = vmatprep.subr.bf16.mxu0 %v10949_v55 }
 0x3ac   : > { %10370 = vmatpush3.bf16.msra.mxu1 %v10884_v29  ;;  %v10916_v29 = vld [vmem:[%s12810_s7 + $0x28] sm:$0xff]  }
 0x3ad   : > { %10371 = vmatprep.subr.bf16.mxu1 %v10949_v55 }
 0x3ae   : > { %10350 = vmatpush3.bf16.msra.mxu0 %v10885_v53  ;;  %v10917_v53 = vld [vmem:[%s12810_s7 + $0x20] sm:$0xff]  }
 0x3af   : > { %10351 = vmatprep.subr.bf16.mxu0 %v10949_v55 }
 0x3b0   : > { %10372 = vmatpush3.bf16.msra.mxu1 %v10886_v24  ;;  %v10918_v24 = vld [vmem:[%s12810_s7 + $0x18] sm:$0xff]  }
 0x3b1   : > { %10373 = vmatprep.subr.bf16.mxu1 %v10949_v55 }
 0x3b2   : > { %10352 = vmatpush3.bf16.msra.mxu0 %v10887_v6 }
 0x3b3   : > { %10353 = vmatprep.subr.bf16.mxu0 %v10949_v55 }
 0x3b4   : > { %10374 = vmatpush3.bf16.msra.mxu1 %v10888_v59 }
 0x3b5   : > { %10375 = vmatprep.subr.bf16.mxu1 %v10949_v55 }
 0x3b6   : > { %10354 = vmatpush3.bf16.msra.mxu0 %v10889_v36 }
 0x3b7   : > { %10355 = vmatprep.subr.bf16.mxu0 %v10949_v55 }
 0x3b8   : > { %10376 = vmatpush3.bf16.msra.mxu1 %v10890_v47 }
 0x3b9   : > { %10377 = vmatprep.subr.bf16.mxu1 %v10949_v55 }
 0x3ba   : > { %10356 = vmatpush3.bf16.msra.mxu0 %v10891_v2 }
 0x3bb   : > { %10357 = vmatprep.subr.bf16.mxu0 %v10949_v55 }
 0x3bc   : > { %10378 = vmatpush3.bf16.msra.mxu1 %v10892_v17 }
 0x3bd   : > { %10379 = vmatprep.subr.bf16.mxu1 %v10949_v55 }
 0x3be   : > { %10358 = vmatpush3.bf16.msra.mxu0 %v10893_v52 }
 0x3bf   : > { %10359 = vmatprep.subr.bf16.mxu0 %v10949_v55 }
 0x3c0   : > { %10380 = vmatpush3.bf16.msra.mxu1 %v10894_v37 }
 0x3c1   : > { %10381 = vmatprep.subr.bf16.mxu1 %v10949_v55 }
 0x3c2   : > { %10360 = vmatpush3.bf16.msra.mxu0 %v10895_v43 }
 0x3c3   : > { %10361 = vmatprep.subr.bf16.mxu0 %v10949_v55 }
 0x3c4   : > { %10382 = vmatpush3.bf16.msra.mxu1 %v10896_v5 }
 0x3c5   : > { %10407 = vmatprep.subr.bf16.mxu1 %v10949_v55 }
 0x3c6   : > { %10362 = vmatpush3.bf16.msra.mxu0 %v10897_v38  ;;  %v10919_v38 = vld [vmem:[%s12810_s7 + $0x10] sm:$0xff]  }
 0x3c7   : > { %10384 = vmatmul.mubr.bf16.vlgmr.msra.gmra.mxu1 %v7270_v18  ;;  %v6065_v16 = vpop.f32.mrf.mxu1  ;;  %10387 = vmatprep.subr.bf16.mxu0 %v10949_v55  ;;  %v10921_v18 = vld [vmem:[%s12810_s7] sm:$0xff]  }
 0x3c8   : > { %10408 = vmatpush3.bf16.msra.mxu1 %v10898_v11  ;;  %10423 = vmatprep.mubr.msk.bf16.mxu1 %vm10950_vm1, %v10949_v55  ;;  %v10920_v11 = vld [vmem:[%s12810_s7 + $0x8] sm:$0xff]  }
 0x3c9   : > { %10364 = vmatmul.mubr.bf16.vlgmr.msra.gmra.mxu0 %v12309_v28  ;;  %v5977_v21 = vpop.f32.mrf.mxu0  ;;  %v10145_v41 = vpop.f32.mrf.mxu1  ;;  %10409 = vmatprep.subr.bf16.mxu1 %v10949_v55  ;;  %v10902_v28 = vld [vmem:[%s12808_s5 + $0x3e8] sm:$0xff]  }
 0x3ca   : > { %v6066_v13 = vadd.f32 %v6065_v16, %v5977_v21  ;;  %10388 = vmatpush3.bf16.msra.mxu0 %v10899_v57  ;;  %10403 = vmatprep.mubr.msk.bf16.mxu0 %vm10950_vm1, %v10949_v55 }
 0x3cb   : > { %v10125_v0 = vpop.f32.mrf.mxu0  ;;  %v6068_v26 = vpop.f32.mrf.mxu1  ;;  %10389 = vmatprep.subr.bf16.mxu0 %v10949_v55 }
 0x3cc   : > { %10410 = vmatpush3.bf16.msra.mxu1 %v10900_v54 }
 0x3cd   : > { %v5980_v25 = vpop.f32.mrf.mxu0  ;;  %v10146_v7 = vpop.f32.mrf.mxu1  ;;  %10411 = vmatprep.subr.bf16.mxu1 %v10949_v55 }
 0x3ce   : > { %10390 = vmatpush3.bf16.msra.mxu0 %v10901_v14 }
 0x3cf   : > { %v10126_v42 = vpop.f32.mrf.mxu0  ;;  %10391 = vmatprep.subr.bf16.mxu0 %v10949_v55 }
 0x3d0   : > { %10412 = vmatpush3.bf16.msra.mxu1 %v10902_v28 }
 0x3d1   : > { %10413 = vmatprep.subr.bf16.mxu1 %v10949_v55 }
 0x3d2   : > { %10392 = vmatpush3.bf16.msra.mxu0 %v10903_v61 }
 0x3d3   : > { %10393 = vmatprep.subr.bf16.mxu0 %v10949_v55 }
 0x3d4   : > { %10414 = vmatpush3.bf16.msra.mxu1 %v10904_v35 }
 0x3d5   : > { %10415 = vmatprep.subr.bf16.mxu1 %v10949_v55 }
 0x3d6   : > { %10394 = vmatpush3.bf16.msra.mxu0 %v10905_v49 }
 0x3d7   : > { %10395 = vmatprep.subr.bf16.mxu0 %v10949_v55 }
 0x3d8   : > { %10416 = vmatpush3.bf16.msra.mxu1 %v10906_v62 }
 0x3d9   : > { %10417 = vmatprep.subr.bf16.mxu1 %v10949_v55 }
 0x3da   : > { %10396 = vmatpush3.bf16.msra.mxu0 %v10907_v40 }
 0x3db   : > { %10397 = vmatprep.subr.bf16.mxu0 %v10949_v55 }
 0x3dc   : > { %10418 = vmatpush3.bf16.msra.mxu1 %v10908_v27 }
 0x3dd   : > { %10419 = vmatprep.subr.bf16.mxu1 %v10949_v55 }
 0x3de   : > { %10398 = vmatpush3.bf16.msra.mxu0 %v10909_v32 }
 0x3df   : > { %10399 = vmatprep.subr.bf16.mxu0 %v10949_v55 }
 0x3e0   : > { %10420 = vmatpush3.bf16.msra.mxu1 %v10910_v10 }
 0x3e1   : > { %10421 = vmatprep.subr.bf16.mxu1 %v10949_v55 }
 0x3e2   : > { %10400 = vmatpush3.bf16.msra.mxu0 %v10911_v8 }
 0x3e3   : > { %10401 = vmatprep.subr.bf16.mxu0 %v10949_v55 }
 0x3e4   : > { %10422 = vmatpush3.bf16.msra.mxu1 %v10912_v15 }
 0x3e6   : > { %10402 = vmatpush3.bf16.msra.mxu0 %v10913_v58 }
 0x3e7   : > { %v6279_v9 = vpop.f32.mrf.mxu1  ;;  %10424 = vmatmul.mubr.bf16.vlgmr.msra.gmra.mxu1 %v7485_v39  ;;  %10427 = vmatprep.subr.bf16.mxu0 %v10949_v55 }
 0x3e9   : > { %v6170_v48 = vpop.f32.mrf.mxu0  ;;  %v10185_v30 = vpop.f32.mrf.mxu1  ;;  %10404 = vmatmul.mubr.bf16.vlgmr.msra.gmra.mxu0 %v12304_v19 }
 0x3ea   : > { %v6176_v23 = vadd.f32 %v6170_v48, %v6066_v13  ;;  %10443 = vmatprep.mubr.msk.bf16.mxu0 %vm10950_vm1, %v10949_v55  ;;  %10428 = vmatpush3.bf16.msra.mxu0 %v10914_v45 }
 0x3eb   : > { %v10165_v33 = vpop.f32.mrf.mxu0  ;;  %v6282_v56 = vpop.f32.mrf.mxu1  ;;  %10429 = vmatprep.subr.bf16.mxu0 %v10949_v55 }
 0x3ec   : > { %v6285_v20 = vadd.f32 %v6279_v9, %v6176_v23 }
 0x3ed   : > { %v6173_v4 = vpop.f32.mrf.mxu0  ;;  %v10186_v44 = vpop.f32.mrf.mxu1 }
 0x3ee   : > { %10430 = vmatpush3.bf16.msra.mxu0 %v10915_v22  ;;  %v8824_v44 = vld [vmem:[%s12809_s6] ss:$0 sm:$0xff] }
 0x3ef   : > { %v10166_v50 = vpop.f32.mrf.mxu0  ;;  %10431 = vmatprep.subr.bf16.mxu0 %v10949_v55 }
 0x3f2   : > { %10432 = vmatpush3.bf16.msra.mxu0 %v10916_v29 }
 0x3f3   : > { %10433 = vmatprep.subr.bf16.mxu0 %v10949_v55 }
 0x3f6   : > { %10434 = vmatpush3.bf16.msra.mxu0 %v10917_v53 }
 0x3f7   : > { %10435 = vmatprep.subr.bf16.mxu0 %v10949_v55 }
 0x3fa   : > { %10436 = vmatpush3.bf16.msra.mxu0 %v10918_v24 }
 0x3fb   : > { %10437 = vmatprep.subr.bf16.mxu0 %v10949_v55 }
 0x3fe   : > { %10438 = vmatpush3.bf16.msra.mxu0 %v10919_v38 }
 0x3ff   : > { %10439 = vmatprep.subr.bf16.mxu0 %v10949_v55 }
 0x402   : > { %10440 = vmatpush3.bf16.msra.mxu0 %v10920_v11 }
 0x403   : > { %10441 = vmatprep.subr.bf16.mxu0 %v10949_v55 }
 0x406   : > { %10442 = vmatpush3.bf16.msra.mxu0 %v10921_v18 }
 0x407   : > { %v6494_v46 = vpop.f32.mrf.mxu1 }
 0x409   : > { %v6385_v60 = vpop.f32.mrf.mxu0  ;;  %v10225_v1 = vpop.f32.mrf.mxu1 }
 0x40a   : > { %v6391_v51 = vadd.f32 %v6385_v60, %v6285_v20 }
 0x40b   : > { %v10205_v63 = vpop.f32.mrf.mxu0  ;;  %v6497_v34 = vpop.f32.mrf.mxu1 }
 0x40c   : > { %v6500_v31 = vadd.f32 %v6494_v46, %v6391_v51 }
 0x40d   : > { %v6388_v12 = vpop.f32.mrf.mxu0  ;;  %v10226_v3 = vpop.f32.mrf.mxu1 }
 0x40e   : > { %v8825_v3 = vld [vmem:[%s12811_s8] ss:$0 sm:$0xff] }
 0x40f   : > { %v10206_v19 = vpop.f32.mrf.mxu0 }
 0x427   : > { %v6709_v6 = vpop.f32.mrf.mxu1 }
 0x429   : > { %v6600_v59 = vpop.f32.mrf.mxu0  ;;  %v10265_v36 = vpop.f32.mrf.mxu1 }
 0x42a   : > { %v6606_v47 = vadd.f32 %v6600_v59, %v6500_v31 }
 0x42b   : > { %v10245_v2 = vpop.f32.mrf.mxu0  ;;  %v6712_v17 = vpop.f32.mrf.mxu1 }
 0x42c   : > { %v6715_v52 = vadd.f32 %v6709_v6, %v6606_v47 }
 0x42d   : > { %v6603_v37 = vpop.f32.mrf.mxu0  ;;  %v10266_v43 = vpop.f32.mrf.mxu1 }
 0x42f   : > { %v10246_v5 = vpop.f32.mrf.mxu0 }
 0x447   : > { %v6924_v57 = vpop.f32.mrf.mxu1 }
 0x449   : > { %v6815_v16 = vpop.f32.mrf.mxu0  ;;  %v10305_v54 = vpop.f32.mrf.mxu1 }
 0x44a   : > { %v6821_v21 = vadd.f32 %v6815_v16, %v6715_v52 }
 0x44b   : > { %v10285_v41 = vpop.f32.mrf.mxu0  ;;  %v6927_v13 = vpop.f32.mrf.mxu1 }
 0x44c   : > { %v6930_v14 = vadd.f32 %v6924_v57, %v6821_v21 }
 0x44d   : > { %v6818_v0 = vpop.f32.mrf.mxu0  ;;  %v10306_v26 = vpop.f32.mrf.mxu1 }
 0x44f   : > { %v10286_v28 = vpop.f32.mrf.mxu0 }
 0x467   : > { %v7139_v25 = vpop.f32.mrf.mxu1 }
 0x469   : > { %v7030_v7 = vpop.f32.mrf.mxu0  ;;  %v10345_v61 = vpop.f32.mrf.mxu1 }
 0x46a   : > { %v7036_v9 = vadd.f32 %v7030_v7, %v6930_v14 }
 0x46b   : > { %v10325_v42 = vpop.f32.mrf.mxu0  ;;  %v7142_v35 = vpop.f32.mrf.mxu1 }
 0x46c   : > { %v7145_v48 = vadd.f32 %v7139_v25, %v7036_v9 }
 0x46d   : > { %v7033_v49 = vpop.f32.mrf.mxu0  ;;  %v10346_v62 = vpop.f32.mrf.mxu1 }
 0x46f   : > { %v10326_v40 = vpop.f32.mrf.mxu0 }
 0x487   : > { %v7354_v55 = vpop.f32.mrf.mxu1 }
 0x489   : > { %v7245_v27 = vpop.f32.mrf.mxu0  ;;  %v10385_v32 = vpop.f32.mrf.mxu1 }
 0x48a   : > { %v7251_v30 = vadd.f32 %v7245_v27, %v7145_v48 }
 0x48b   : > { %v10365_v10 = vpop.f32.mrf.mxu0  ;;  %v7357_v8 = vpop.f32.mrf.mxu1 }
 0x48c   : > { %v7360_v33 = vadd.f32 %v7354_v55, %v7251_v30 }
 0x48d   : > { %v7248_v15 = vpop.f32.mrf.mxu0  ;;  %v10386_v58 = vpop.f32.mrf.mxu1 }
 0x48f   : > { %v10366_v39 = vpop.f32.mrf.mxu0 }
 0x4a7   : > { %v7569_v23 = vpop.f32.mrf.mxu1 }
 0x4a9   : > { %v7460_v56 = vpop.f32.mrf.mxu0  ;;  %v10425_v20 = vpop.f32.mrf.mxu1 }
 0x4aa   : > { %v7466_v4 = vadd.f32 %v7460_v56, %v7360_v33 }
 0x4ab   : > { %v10405_v50 = vpop.f32.mrf.mxu0  ;;  %v7572_v46 = vpop.f32.mrf.mxu1 }
 0x4ac   : > { %v7575_v60 = vadd.f32 %v7569_v23, %v7466_v4 }
 0x4ad   : > { %v7463_v1 = vpop.f32.mrf.mxu0  ;;  %v10426_v51 = vpop.f32.mrf.mxu1 }
 0x4ae   : > { %v7583_v63 = vadd.f32 %v8824_v44, %v7575_v60 }
 0x4af   : > { %v10406_v34 = vpop.f32.mrf.mxu0 }
 0x4b0   : > { %v7584_v31 = vmax.f32 %v7583_v63, 0.0 }
 0x4b2   : > { %v7585_v12 = vpack.c.bf16 %v7584_v31, %v7584_v31 }
 0x4b4   : > { %10444 = vmatmul.mubr.bf16.vlgmr.msra.gmra.mxu0 %v7585_v12 }
 0x574   : > { %v7691_v19 = vpop.f32.mrf.mxu0 }
 0x575   : > { %v7692_v45 = vadd.f32 %v8825_v3, %v7691_v19 }
 0x576   : > { %v10445_v22 = vpop.f32.mrf.mxu0 }
 0x577   : > { %7697 = vst [vmem:[%s625_s27] sm:$0xff] %v7692_v45 }
 0x578   : > { %v7694_v29 = vpop.f32.mrf.mxu0 }
 0x57a   : > { %v10446_v53 = vpop.f32.mrf.mxu0 }
 0x57b PF: > { %p16_p9 = scmp.ge.s32.totalorder %s11018_s13, 4   ;;  %s12813_s30 = smov %s10942_s10 }
 0x57c   : > { %s12814_s10 = smov %s11027_s16  ;;  %s12815_s11 = smov %s11018_s13 }
 0x57d   :  { %18 = sbr.rel (!%p16_p9) target bundleno = 2 (0x2), region = 180 }

</bundles_post_ra>
